<compile_context>
chip_gen: v5e
topology: v5e:2x2
jax: 0.10.0
libtpu: 0.0.40
codegen_flags: <defaults>
</compile_context>

<pallas_src>
import functools
import math

import jax
import jax.numpy as jnp
from jax.experimental import pallas as pl
from jax.experimental.pallas import tpu as pltpu

_EPS = 1e-5


# ---------------------------------------------------------------------------
# In-kernel helpers
# ---------------------------------------------------------------------------
def _partial_stats(y, *, hw, tn, need_mask):
    """Per-channel partial sum / sum-of-squares of y (Cout, tn) -> two (Cout, 1)."""
    if need_mask:  # static flag: only traced when the hw axis was zero-padded
        col = pl.program_id(1) * tn + jax.lax.broadcasted_iota(jnp.int32, y.shape, 1)
        y = jnp.where(col < hw, y, 0.0)
    s = jnp.sum(y, axis=1, keepdims=True)
    ss = jnp.sum(y * y, axis=1, keepdims=True)
    return s, ss


def _fold_bn(st, gamma, beta, *, inv_m, cout, eps):
    """Fold summed batch stats + affine into per-channel (scale, shift), (cout, 1) f32."""
    tot = jnp.sum(st, axis=0)                                   # (2*cout, 1): [sum; sumsq]
    mean = tot[:cout] * inv_m
    var = jnp.maximum(tot[cout:] * inv_m - mean * mean, 0.0)    # clamp one-pass variance
    scale = gamma * jax.lax.rsqrt(var + eps)
    shift = beta - mean * scale
    return scale, shift


# ---------------------------------------------------------------------------
# Kernels
# ---------------------------------------------------------------------------
def _stats1_kernel(x_ref, w1_ref, st1_ref, *, cb, hw, tn, need_mask):
    # x_ref: (C, tn) f32 tile; w1_ref: (Cb, C) bf16 resident.
    x = x_ref[...].astype(w1_ref.dtype)
    y1 = jnp.dot(w1_ref[...], x, preferred_element_type=jnp.float32)     # (Cb, tn)
    s, ss = _partial_stats(y1, hw=hw, tn=tn, need_mask=need_mask)
    st1_ref[:cb, :] = s
    st1_ref[cb:, :] = ss


def _stats2_kernel(x_ref, w1_ref, w2_ref, st1_ref, g1_ref, b1_ref, st2_ref,
                   *, c, cb, inv_m, hw, tn, need_mask, eps):
    # Fold BN1 from the resident partial stats, recompute y1, stats of y2.
    scale1, shift1 = _fold_bn(st1_ref[...], g1_ref[...], b1_ref[...],
                              inv_m=inv_m, cout=cb, eps=eps)
    x = x_ref[...].astype(w1_ref.dtype)
    y1 = jnp.dot(w1_ref[...], x, preferred_element_type=jnp.float32)     # (Cb, tn)
    h = jnp.maximum(y1 * scale1 + shift1, 0.0)
    y2 = jnp.dot(w2_ref[...], h.astype(w2_ref.dtype),
                 preferred_element_type=jnp.float32)                     # (C, tn)
    s, ss = _partial_stats(y2, hw=hw, tn=tn, need_mask=need_mask)
    st2_ref[:c, :] = s
    st2_ref[c:, :] = ss


def _final_kernel(x_ref, w1_ref, w2_ref, st1_ref, g1_ref, b1_ref,
                  st2_ref, g2_ref, b2_ref, o_ref, *, c, cb, inv_m, eps):
    scale1, shift1 = _fold_bn(st1_ref[...], g1_ref[...], b1_ref[...],
                              inv_m=inv_m, cout=cb, eps=eps)
    scale2, shift2 = _fold_bn(st2_ref[...], g2_ref[...], b2_ref[...],
                              inv_m=inv_m, cout=c, eps=eps)
    x_f32 = x_ref[...]                                                   # residual in f32
    y1 = jnp.dot(w1_ref[...], x_f32.astype(w1_ref.dtype),
                 preferred_element_type=jnp.float32)
    h = jnp.maximum(y1 * scale1 + shift1, 0.0)
    y2 = jnp.dot(w2_ref[...], h.astype(w2_ref.dtype),
                 preferred_element_type=jnp.float32)
    o_ref[...] = jnp.maximum(x_f32 + y2 * scale2 + shift2, 0.0).astype(o_ref.dtype)


# ---------------------------------------------------------------------------
# Wrapper
# ---------------------------------------------------------------------------
def _pick_tn(hw_pad, batch, max_tn=2048, target_steps=8):
    """Lane-tile size: multiple of 128 dividing hw_pad; as large as possible while
    keeping >= target_steps total grid steps (v7x: both TCs busy, pipelines full)."""
    cands = [t for t in range(128, min(hw_pad, max_tn) + 1, 128) if hw_pad % t == 0]
    for t in sorted(cands, reverse=True):
        if batch * (hw_pad // t) >= target_steps:
            return t
    return cands[0]   # tiny problems: take the smallest tile (most steps available)


def multi_scale_combiner_forward(x, w1, w2, gamma1, beta1, gamma2, beta2, eps=_EPS):
    """x: (B, 4*vd, H, W); w1: (bottle, 4*vd); w2: (4*vd, bottle); BN affine params.

    BatchNorm uses batch statistics (PyTorch training-mode forward); Dropout is identity.
    """
    # TODO(synk): dropout (p=0.3) and eval-mode BN running statistics not implemented.
    B, C, H, W = x.shape
    Cb = w1.shape[0]
    assert w1.shape == (Cb, C) and w2.shape == (C, Cb)
    assert gamma1.shape == (Cb,) and beta1.shape == (Cb,)
    assert gamma2.shape == (C,) and beta2.shape == (C,)

    HW = H * W
    M = B * HW                                    # BN2d statistics count (true pixels)
    hw_pad = ((HW + 127) // 128) * 128            # lane-align the pixel axis
    need_mask = hw_pad != HW

    x3 = x.astype(jnp.float32).reshape(B, C, HW)  # free: layout-preserving reshape
    if need_mask:
        # Rare path (HW not a multiple of 128): one pad copy + one slice copy; padded
        # columns are masked out of the statistics in-kernel.
        x3 = jnp.pad(x3, ((0, 0), (0, 0), (0, hw_pad - HW)))

    tn = _pick_tn(hw_pad, B)
    n_hw = hw_pad // tn
    nt = B * n_hw                                 # total grid steps / stat tiles

    w1b = w1.astype(jnp.bfloat16)                 # (Cb, C), used untransposed
    w2b = w2.astype(jnp.bfloat16)                 # (C, Cb)
    g1 = gamma1.astype(jnp.float32).reshape(Cb, 1)
    b1 = beta1.astype(jnp.float32).reshape(Cb, 1)
    g2 = gamma2.astype(jnp.float32).reshape(C, 1)
    b2 = beta2.astype(jnp.float32).reshape(C, 1)

    cparams = pltpu.CompilerParams(
        dimension_semantics=("parallel", "parallel"),   # (batch, hw-tile)
        vmem_limit_bytes=32 * 1024 * 1024,              # safe within v7x's 64 MiB physical
    )

    x_spec = pl.BlockSpec((None, C, tn), lambda b, j: (b, 0, j))
    w1_spec = pl.BlockSpec((Cb, C), lambda b, j: (0, 0))
    w2_spec = pl.BlockSpec((C, Cb), lambda b, j: (0, 0))
    g1_spec = pl.BlockSpec((Cb, 1), lambda b, j: (0, 0))
    g2_spec = pl.BlockSpec((C, 1), lambda b, j: (0, 0))
    # Full partial-stats arrays stay VMEM-resident in the consuming passes
    # (nt is small here; for very large nt reduce the partials in XLA instead).
    st1_full = pl.BlockSpec((nt, 2 * Cb, 1), lambda b, j: (0, 0, 0))
    st2_full = pl.BlockSpec((nt, 2 * C, 1), lambda b, j: (0, 0, 0))

    def st_out(cout):
        shape = jax.ShapeDtypeStruct((nt, 2 * cout, 1), jnp.float32)
        spec = pl.BlockSpec((None, 2 * cout, 1), lambda b, j: (b * n_hw + j, 0, 0))
        return shape, spec

    x_bytes = B * C * hw_pad * 4
    mm_flops = 2 * B * hw_pad * C * Cb

    # Pass 1: partial per-channel stats of y1 = W1 @ x.
    st1_shape, st1_spec = st_out(Cb)
    st1 = pl.pallas_call(
        functools.partial(_stats1_kernel, cb=Cb, hw=HW, tn=tn, need_mask=need_mask),
        out_shape=st1_shape,
        grid_spec=pltpu.PrefetchScalarGridSpec(
            num_scalar_prefetch=0, grid=(B, n_hw),
            in_specs=[x_spec, w1_spec],
            out_specs=st1_spec),
        compiler_params=cparams,
        cost_estimate=pl.CostEstimate(
            flops=mm_flops, transcendentals=0,
            bytes_accessed=x_bytes + w1b.size * 2 + nt * 2 * Cb * 4),
    )(x3, w1b)

    # Pass 2: fold BN1 in-kernel, recompute y1, partial stats of y2 = W2 @ relu(BN1(y1)).
    st2_shape, st2_spec = st_out(C)
    st2 = pl.pallas_call(
        functools.partial(_stats2_kernel, c=C, cb=Cb, inv_m=1.0 / M,
                          hw=HW, tn=tn, need_mask=need_mask, eps=eps),
        out_shape=st2_shape,
        grid_spec=pltpu.PrefetchScalarGridSpec(
            num_scalar_prefetch=0, grid=(B, n_hw),
            in_specs=[x_spec, w1_spec, w2_spec, st1_full, g1_spec, g1_spec],
            out_specs=st2_spec),
        compiler_params=cparams,
        cost_estimate=pl.CostEstimate(
            flops=2 * mm_flops, transcendentals=Cb,
            bytes_accessed=x_bytes + (w1b.size + w2b.size) * 2
                           + nt * 2 * (Cb + C) * 4),
    )(x3, w1b, w2b, st1, g1, b1)

    # Pass 3: fold BN1 + BN2 in-kernel, recompute, write relu(x + BN2(y2)) in NCHW.
    out3 = pl.pallas_call(
        functools.partial(_final_kernel, c=C, cb=Cb, inv_m=1.0 / M, eps=eps),
        out_shape=jax.ShapeDtypeStruct((B, C, hw_pad), jnp.float32),
        grid_spec=pltpu.PrefetchScalarGridSpec(
            num_scalar_prefetch=0, grid=(B, n_hw),
            in_specs=[x_spec, w1_spec, w2_spec, st1_full, g1_spec, g1_spec,
                      st2_full, g2_spec, g2_spec],
            out_specs=pl.BlockSpec((None, C, tn), lambda b, j: (b, 0, j))),
        compiler_params=cparams,
        cost_estimate=pl.CostEstimate(
            flops=2 * mm_flops, transcendentals=Cb + C,
            bytes_accessed=2 * x_bytes + (w1b.size + w2b.size) * 2
                           + nt * 2 * (Cb + C) * 4),
    )(x3, w1b, w2b, st1, g1, b1, st2, g2, b2)

    if need_mask:
        out3 = out3[:, :, :HW]
    return out3.reshape(B, C, H, W)


# ---------------------------------------------------------------------------
# Pure-JAX reference (same bf16 matmul inputs, f32 accumulation / statistics)
# ---------------------------------------------------------------------------
def reference_forward(x, w1, w2, gamma1, beta1, gamma2, beta2, eps=_EPS):
    B, C, H, W = x.shape
    Cb = w1.shape[0]
    xf = x.astype(jnp.float32).reshape(B, C, H * W)
    y1 = jnp.einsum("oc,bcn->bon", w1.astype(jnp.bfloat16), xf.astype(jnp.bfloat16),
                    preferred_element_type=jnp.float32)
    mean1 = jnp.mean(y1, axis=(0, 2), keepdims=True)
    var1 = jnp.mean((y1 - mean1) ** 2, axis=(0, 2), keepdims=True)
    h = jnp.maximum((y1 - mean1) * jax.lax.rsqrt(var1 + eps)
                    * gamma1.reshape(1, Cb, 1) + beta1.reshape(1, Cb, 1), 0.0)
    y2 = jnp.einsum("co,bon->bcn", w2.astype(jnp.bfloat16), h.astype(jnp.bfloat16),
                    preferred_element_type=jnp.float32)
    mean2 = jnp.mean(y2, axis=(0, 2), keepdims=True)
    var2 = jnp.mean((y2 - mean2) ** 2, axis=(0, 2), keepdims=True)
    out = jnp.maximum(xf + (y2 - mean2) * jax.lax.rsqrt(var2 + eps)
                      * gamma2.reshape(1, C, 1) + beta2.reshape(1, C, 1), 0.0)
    return out.reshape(B, C, H, W)


if __name__ == "__main__":
    # Small shapes consistent with the module: x is (B, 4*vision_dim, H, W).
    B, H, W = 2, 16, 16
    vision_dim = 32
    C = 4 * vision_dim          # 128 channels -> lane / sublane friendly
    bottle_dim = 64

    key = jax.random.PRNGKey(0)
    kx, kw1, kw2, kg1, kb1, kg2, kb2 = jax.random.split(key, 7)

    x = jax.random.normal(kx, (B, C, H, W), dtype=jnp.float32)
    # 1x1 conv weights (kernel dims squeezed), kaiming-style scale.
    w1 = jax.random.normal(kw1, (bottle_dim, C), dtype=jnp.float32) * math.sqrt(2.0 / C)
    w2 = jax.random.normal(kw2, (C, bottle_dim), dtype=jnp.float32) * math.sqrt(2.0 / bottle_dim)
    # BN affine params (non-trivial values to exercise the folded scale/shift path).
    gamma1 = jax.random.uniform(kg1, (bottle_dim,), jnp.float32, 0.5, 1.5)
    beta1 = 0.1 * jax.random.normal(kb1, (bottle_dim,), dtype=jnp.float32)
    gamma2 = jax.random.uniform(kg2, (C,), jnp.float32, 0.5, 1.5)
    beta2 = 0.1 * jax.random.normal(kb2, (C,), dtype=jnp.float32)

    fwd = jax.jit(multi_scale_combiner_forward)
    out = jax.block_until_ready(fwd(x, w1, w2, gamma1, beta1, gamma2, beta2))

    ref = reference_forward(x, w1, w2, gamma1, beta1, gamma2, beta2)
    assert out.shape == (B, C, H, W)
    max_err = float(jnp.max(jnp.abs(out - ref)))
    assert jnp.allclose(out, ref, atol=2e-2, rtol=2e-2), f"mismatch vs reference: {max_err}"

    print("KERNEL_OK")
</pallas_src>

<mosaic_0001>
module attributes {stable_mosaic.version = 11 : i64} {
  func.func @_stats1_kernel(%arg0: i32, %arg1: i32, %arg2: memref<1x128x128xf32, #tpu.memory_space<vmem>>, %arg3: memref<64x128xbf16, #tpu.memory_space<vmem>>, %arg4: memref<1x128x1xf32, #tpu.memory_space<vmem>>) attributes {dimension_semantics = [#tpu.dimension_semantics<parallel>, #tpu.dimension_semantics<parallel>], iteration_bounds = array<i64: 2, 2>, scalar_prefetch = 0 : i64, scratch_operands = 0 : i64, tpu.core_type = #tpu.core_type<tc>, window_params = [{transform_indices = @transform_0, window_bounds = array<i64: 1, 128, 128>}, {pipeline_mode = #tpu.pipeline_mode<synchronous>, transform_indices = @transform_1, window_bounds = array<i64: 64, 128>}, {transform_indices = @transform_2, window_bounds = array<i64: 1, 128, 1>}]} {
    %c0 = arith.constant 0 : index
    %c0_0 = arith.constant 0 : index
    %c0_1 = arith.constant 0 : index
    %0 = vector.load %arg2[%c0, %c0_0, %c0_1] : memref<1x128x128xf32, #tpu.memory_space<vmem>>, vector<1x128x128xf32>
    %1 = vector.shape_cast %0 : vector<1x128x128xf32> to vector<128x128xf32>
    %2 = arith.truncf %1 : vector<128x128xf32> to vector<128x128xbf16>
    %c0_2 = arith.constant 0 : index
    %c0_3 = arith.constant 0 : index
    %3 = vector.load %arg3[%c0_2, %c0_3] : memref<64x128xbf16, #tpu.memory_space<vmem>>, vector<64x128xbf16>
    %cst = arith.constant dense<0.000000e+00> : vector<64x128xf32>
    %4 = tpu.matmul %3, %2, %cst {dimension_numbers = #tpu.dot_dimension_numbers<[1], [0], [0], [1], [0, 0, 1, 1], [], []>} : vector<64x128xbf16>, vector<128x128xbf16>, vector<64x128xf32> -> vector<64x128xf32>
    %cst_4 = arith.constant dense<0.000000e+00> : vector<64xf32>
    %5 = vector.multi_reduction <add>, %4, %cst_4 [1] : vector<64x128xf32> to vector<64xf32>
    %6 = vector.shape_cast %5 : vector<64xf32> to vector<64x1xf32>
    %7 = arith.mulf %4, %4 : vector<64x128xf32>
    %cst_5 = arith.constant dense<0.000000e+00> : vector<64xf32>
    %8 = vector.multi_reduction <add>, %7, %cst_5 [1] : vector<64x128xf32> to vector<64xf32>
    %9 = vector.shape_cast %8 : vector<64xf32> to vector<64x1xf32>
    %c0_6 = arith.constant 0 : index
    %c0_7 = arith.constant 0 : index
    %c0_8 = arith.constant 0 : index
    %10 = vector.load %arg4[%c0_6, %c0_7, %c0_8] : memref<1x128x1xf32, #tpu.memory_space<vmem>>, vector<1x64x1xf32>
    %11 = vector.shape_cast %10 : vector<1x64x1xf32> to vector<64x1xf32>
    %12 = vector.shape_cast %6 : vector<64x1xf32> to vector<1x64x1xf32>
    tpu.vector_store %arg4[%c0_6, %c0_7, %c0_8], %12 {strides = array<i32>} : memref<1x128x1xf32, #tpu.memory_space<vmem>>, vector<1x64x1xf32>,
    %c0_9 = arith.constant 0 : index
    %c64 = arith.constant 64 : index
    %c0_10 = arith.constant 0 : index
    %13 = vector.load %arg4[%c0_9, %c64, %c0_10] : memref<1x128x1xf32, #tpu.memory_space<vmem>>, vector<1x64x1xf32>
    %14 = vector.shape_cast %13 : vector<1x64x1xf32> to vector<64x1xf32>
    %15 = vector.shape_cast %9 : vector<64x1xf32> to vector<1x64x1xf32>
    tpu.vector_store %arg4[%c0_9, %c64, %c0_10], %15 {strides = array<i32>} : memref<1x128x1xf32, #tpu.memory_space<vmem>>, vector<1x64x1xf32>,
    return
  }
  func.func @transform_0(%arg0: i32, %arg1: i32) -> (i32, i32, i32) {
    %c0_i32 = arith.constant 0 : i32
    %c0_i32_0 = arith.constant 0 : i32
    return %arg0, %c0_i32, %arg1 : i32, i32, i32
  }
  func.func @transform_1(%arg0: i32, %arg1: i32) -> (i32, i32) {
    %c0_i32 = arith.constant 0 : i32
    %c0_i32_0 = arith.constant 0 : i32
    %c0_i32_1 = arith.constant 0 : i32
    return %c0_i32, %c0_i32_0 : i32, i32
  }
  func.func @transform_2(%arg0: i32, %arg1: i32) -> (i32, i32, i32) {
    %c2_i32 = arith.constant 2 : i32
    %0 = arith.muli %arg0, %c2_i32 : i32
    %1 = arith.addi %0, %arg1 : i32
    %c0_i32 = arith.constant 0 : i32
    %c0_i32_0 = arith.constant 0 : i32
    %c0_i32_1 = arith.constant 0 : i32
    return %1, %c0_i32, %c0_i32_0 : i32, i32, i32
  }
}

module attributes {stable_mosaic.version = 11 : i64} {
  func.func @_stats2_kernel(%arg0: i32, %arg1: i32, %arg2: memref<1x128x128xf32, #tpu.memory_space<vmem>>, %arg3: memref<64x128xbf16, #tpu.memory_space<vmem>>, %arg4: memref<128x64xbf16, #tpu.memory_space<vmem>>, %arg5: memref<4x128x1xf32, #tpu.memory_space<vmem>>, %arg6: memref<64x1xf32, #tpu.memory_space<vmem>>, %arg7: memref<64x1xf32, #tpu.memory_space<vmem>>, %arg8: memref<1x256x1xf32, #tpu.memory_space<vmem>>) attributes {dimension_semantics = [#tpu.dimension_semantics<parallel>, #tpu.dimension_semantics<parallel>], iteration_bounds = array<i64: 2, 2>, scalar_prefetch = 0 : i64, scratch_operands = 0 : i64, tpu.core_type = #tpu.core_type<tc>, window_params = [{transform_indices = @transform_0, window_bounds = array<i64: 1, 128, 128>}, {pipeline_mode = #tpu.pipeline_mode<synchronous>, transform_indices = @transform_1, window_bounds = array<i64: 64, 128>}, {pipeline_mode = #tpu.pipeline_mode<synchronous>, transform_indices = @transform_2, window_bounds = array<i64: 128, 64>}, {pipeline_mode = #tpu.pipeline_mode<synchronous>, transform_indices = @transform_3, window_bounds = array<i64: 4, 128, 1>}, {pipeline_mode = #tpu.pipeline_mode<synchronous>, transform_indices = @transform_4, window_bounds = array<i64: 64, 1>}, {pipeline_mode = #tpu.pipeline_mode<synchronous>, transform_indices = @transform_5, window_bounds = array<i64: 64, 1>}, {transform_indices = @transform_6, window_bounds = array<i64: 1, 256, 1>}]} {
    %c0 = arith.constant 0 : index
    %c0_0 = arith.constant 0 : index
    %c0_1 = arith.constant 0 : index
    %0 = vector.load %arg5[%c0, %c0_0, %c0_1] : memref<4x128x1xf32, #tpu.memory_space<vmem>>, vector<4x128x1xf32>
    %c0_2 = arith.constant 0 : index
    %c0_3 = arith.constant 0 : index
    %1 = vector.load %arg6[%c0_2, %c0_3] : memref<64x1xf32, #tpu.memory_space<vmem>>, vector<64x1xf32>
    %c0_4 = arith.constant 0 : index
    %c0_5 = arith.constant 0 : index
    %2 = vector.load %arg7[%c0_4, %c0_5] : memref<64x1xf32, #tpu.memory_space<vmem>>, vector<64x1xf32>
    %cst = arith.constant dense<0.000000e+00> : vector<128x1xf32>
    %3 = vector.multi_reduction <add>, %0, %cst [0] : vector<4x128x1xf32> to vector<128x1xf32>
    %4 = vector.extract_strided_slice %3 {offsets = [0, 0], sizes = [64, 1], strides = [1, 1]} : vector<128x1xf32> to vector<64x1xf32>
    %cst_6 = arith.constant 0.001953125 : f32
    %5 = vector.broadcast %cst_6 : f32 to vector<64x1xf32>
    %6 = arith.mulf %4, %5 : vector<64x1xf32>
    %7 = vector.extract_strided_slice %3 {offsets = [64, 0], sizes = [64, 1], strides = [1, 1]} : vector<128x1xf32> to vector<64x1xf32>
    %cst_7 = arith.constant 0.001953125 : f32
    %8 = vector.broadcast %cst_7 : f32 to vector<64x1xf32>
    %9 = arith.mulf %7, %8 : vector<64x1xf32>
    %10 = arith.mulf %6, %6 : vector<64x1xf32>
    %11 = arith.subf %9, %10 : vector<64x1xf32>
    %cst_8 = arith.constant 0.000000e+00 : f32
    %12 = vector.broadcast %cst_8 : f32 to vector<64x1xf32>
    %13 = arith.maximumf %11, %12 : vector<64x1xf32>
    %cst_9 = arith.constant 9.99999974E-6 : f32
    %14 = vector.broadcast %cst_9 : f32 to vector<64x1xf32>
    %15 = arith.addf %13, %14 : vector<64x1xf32>
    %16 = math.rsqrt %15 : vector<64x1xf32>
    %17 = arith.mulf %1, %16 : vector<64x1xf32>
    %18 = arith.mulf %6, %17 : vector<64x1xf32>
    %19 = arith.subf %2, %18 : vector<64x1xf32>
    %c0_10 = arith.constant 0 : index
    %c0_11 = arith.constant 0 : index
    %c0_12 = arith.constant 0 : index
    %20 = vector.load %arg2[%c0_10, %c0_11, %c0_12] : memref<1x128x128xf32, #tpu.memory_space<vmem>>, vector<1x128x128xf32>
    %21 = vector.shape_cast %20 : vector<1x128x128xf32> to vector<128x128xf32>
    %22 = arith.truncf %21 : vector<128x128xf32> to vector<128x128xbf16>
    %c0_13 = arith.constant 0 : index
    %c0_14 = arith.constant 0 : index
    %23 = vector.load %arg3[%c0_13, %c0_14] : memref<64x128xbf16, #tpu.memory_space<vmem>>, vector<64x128xbf16>
    %cst_15 = arith.constant dense<0.000000e+00> : vector<64x128xf32>
    %24 = tpu.matmul %23, %22, %cst_15 {dimension_numbers = #tpu.dot_dimension_numbers<[1], [0], [0], [1], [0, 0, 1, 1], [], []>} : vector<64x128xbf16>, vector<128x128xbf16>, vector<64x128xf32> -> vector<64x128xf32>
    %25 = vector.broadcast %17 : vector<64x1xf32> to vector<64x128xf32>
    %26 = arith.mulf %24, %25 : vector<64x128xf32>
    %27 = vector.broadcast %19 : vector<64x1xf32> to vector<64x128xf32>
    %28 = arith.addf %26, %27 : vector<64x128xf32>
    %cst_16 = arith.constant 0.000000e+00 : f32
    %29 = vector.broadcast %cst_16 : f32 to vector<64x128xf32>
    %30 = arith.maximumf %28, %29 : vector<64x128xf32>
    %c0_17 = arith.constant 0 : index
    %c0_18 = arith.constant 0 : index
    %31 = vector.load %arg4[%c0_17, %c0_18] : memref<128x64xbf16, #tpu.memory_space<vmem>>, vector<128x64xbf16>
    %32 = arith.truncf %30 : vector<64x128xf32> to vector<64x128xbf16>
    %cst_19 = arith.constant dense<0.000000e+00> : vector<128x128xf32>
    %33 = tpu.matmul %31, %32, %cst_19 {dimension_numbers = #tpu.dot_dimension_numbers<[1], [0], [0], [1], [0, 0, 1, 1], [], []>} : vector<128x64xbf16>, vector<64x128xbf16>, vector<128x128xf32> -> vector<128x128xf32>
    %cst_20 = arith.constant dense<0.000000e+00> : vector<128xf32>
    %34 = vector.multi_reduction <add>, %33, %cst_20 [1] : vector<128x128xf32> to vector<128xf32>
    %35 = vector.shape_cast %34 : vector<128xf32> to vector<128x1xf32>
    %36 = arith.mulf %33, %33 : vector<128x128xf32>
    %cst_21 = arith.constant dense<0.000000e+00> : vector<128xf32>
    %37 = vector.multi_reduction <add>, %36, %cst_21 [1] : vector<128x128xf32> to vector<128xf32>
    %38 = vector.shape_cast %37 : vector<128xf32> to vector<128x1xf32>
    %c0_22 = arith.constant 0 : index
    %c0_23 = arith.constant 0 : index
    %c0_24 = arith.constant 0 : index
    %39 = vector.load %arg8[%c0_22, %c0_23, %c0_24] : memref<1x256x1xf32, #tpu.memory_space<vmem>>, vector<1x128x1xf32>
    %40 = vector.shape_cast %39 : vector<1x128x1xf32> to vector<128x1xf32>
    %41 = vector.shape_cast %35 : vector<128x1xf32> to vector<1x128x1xf32>
    tpu.vector_store %arg8[%c0_22, %c0_23, %c0_24], %41 {strides = array<i32>} : memref<1x256x1xf32, #tpu.memory_space<vmem>>, vector<1x128x1xf32>,
    %c0_25 = arith.constant 0 : index
    %c128 = arith.constant 128 : index
    %c0_26 = arith.constant 0 : index
    %42 = vector.load %arg8[%c0_25, %c128, %c0_26] : memref<1x256x1xf32, #tpu.memory_space<vmem>>, vector<1x128x1xf32>
    %43 = vector.shape_cast %42 : vector<1x128x1xf32> to vector<128x1xf32>
    %44 = vector.shape_cast %38 : vector<128x1xf32> to vector<1x128x1xf32>
    tpu.vector_store %arg8[%c0_25, %c128, %c0_26], %44 {strides = array<i32>} : memref<1x256x1xf32, #tpu.memory_space<vmem>>, vector<1x128x1xf32>,
    return
  }
  func.func @transform_0(%arg0: i32, %arg1: i32) -> (i32, i32, i32) {
    %c0_i32 = arith.constant 0 : i32
    %c0_i32_0 = arith.constant 0 : i32
    return %arg0, %c0_i32, %arg1 : i32, i32, i32
  }
  func.func @transform_1(%arg0: i32, %arg1: i32) -> (i32, i32) {
    %c0_i32 = arith.constant 0 : i32
    %c0_i32_0 = arith.constant 0 : i32
    %c0_i32_1 = arith.constant 0 : i32
    return %c0_i32, %c0_i32_0 : i32, i32
  }
  func.func @transform_2(%arg0: i32, %arg1: i32) -> (i32, i32) {
    %c0_i32 = arith.constant 0 : i32
    %c0_i32_0 = arith.constant 0 : i32
    %c0_i32_1 = arith.constant 0 : i32
    return %c0_i32, %c0_i32_0 : i32, i32
  }
  func.func @transform_3(%arg0: i32, %arg1: i32) -> (i32, i32, i32) {
    %c0_i32 = arith.constant 0 : i32
    %c0_i32_0 = arith.constant 0 : i32
    %c0_i32_1 = arith.constant 0 : i32
    %c0_i32_2 = arith.constant 0 : i32
    return %c0_i32, %c0_i32_0, %c0_i32_1 : i32, i32, i32
  }
  func.func @transform_4(%arg0: i32, %arg1: i32) -> (i32, i32) {
    %c0_i32 = arith.constant 0 : i32
    %c0_i32_0 = arith.constant 0 : i32
    %c0_i32_1 = arith.constant 0 : i32
    return %c0_i32, %c0_i32_0 : i32, i32
  }
  func.func @transform_5(%arg0: i32, %arg1: i32) -> (i32, i32) {
    %c0_i32 = arith.constant 0 : i32
    %c0_i32_0 = arith.constant 0 : i32
    %c0_i32_1 = arith.constant 0 : i32
    return %c0_i32, %c0_i32_0 : i32, i32
  }
  func.func @transform_6(%arg0: i32, %arg1: i32) -> (i32, i32, i32) {
    %c2_i32 = arith.constant 2 : i32
    %0 = arith.muli %arg0, %c2_i32 : i32
    %1 = arith.addi %0, %arg1 : i32
    %c0_i32 = arith.constant 0 : i32
    %c0_i32_0 = arith.constant 0 : i32
    %c0_i32_1 = arith.constant 0 : i32
    return %1, %c0_i32, %c0_i32_0 : i32, i32, i32
  }
}

module attributes {stable_mosaic.version = 11 : i64} {
  func.func @_final_kernel(%arg0: i32, %arg1: i32, %arg2: memref<1x128x128xf32, #tpu.memory_space<vmem>>, %arg3: memref<64x128xbf16, #tpu.memory_space<vmem>>, %arg4: memref<128x64xbf16, #tpu.memory_space<vmem>>, %arg5: memref<4x128x1xf32, #tpu.memory_space<vmem>>, %arg6: memref<64x1xf32, #tpu.memory_space<vmem>>, %arg7: memref<64x1xf32, #tpu.memory_space<vmem>>, %arg8: memref<4x256x1xf32, #tpu.memory_space<vmem>>, %arg9: memref<128x1xf32, #tpu.memory_space<vmem>>, %arg10: memref<128x1xf32, #tpu.memory_space<vmem>>, %arg11: memref<1x128x128xf32, #tpu.memory_space<vmem>>) attributes {dimension_semantics = [#tpu.dimension_semantics<parallel>, #tpu.dimension_semantics<parallel>], iteration_bounds = array<i64: 2, 2>, scalar_prefetch = 0 : i64, scratch_operands = 0 : i64, tpu.core_type = #tpu.core_type<tc>, window_params = [{transform_indices = @transform_0, window_bounds = array<i64: 1, 128, 128>}, {pipeline_mode = #tpu.pipeline_mode<synchronous>, transform_indices = @transform_1, window_bounds = array<i64: 64, 128>}, {pipeline_mode = #tpu.pipeline_mode<synchronous>, transform_indices = @transform_2, window_bounds = array<i64: 128, 64>}, {pipeline_mode = #tpu.pipeline_mode<synchronous>, transform_indices = @transform_3, window_bounds = array<i64: 4, 128, 1>}, {pipeline_mode = #tpu.pipeline_mode<synchronous>, transform_indices = @transform_4, window_bounds = array<i64: 64, 1>}, {pipeline_mode = #tpu.pipeline_mode<synchronous>, transform_indices = @transform_5, window_bounds = array<i64: 64, 1>}, {pipeline_mode = #tpu.pipeline_mode<synchronous>, transform_indices = @transform_6, window_bounds = array<i64: 4, 256, 1>}, {pipeline_mode = #tpu.pipeline_mode<synchronous>, transform_indices = @transform_7, window_bounds = array<i64: 128, 1>}, {pipeline_mode = #tpu.pipeline_mode<synchronous>, transform_indices = @transform_8, window_bounds = array<i64: 128, 1>}, {transform_indices = @transform_9, window_bounds = array<i64: 1, 128, 128>}]} {
    %c0 = arith.constant 0 : index
    %c0_0 = arith.constant 0 : index
    %c0_1 = arith.constant 0 : index
    %0 = vector.load %arg5[%c0, %c0_0, %c0_1] : memref<4x128x1xf32, #tpu.memory_space<vmem>>, vector<4x128x1xf32>
    %c0_2 = arith.constant 0 : index
    %c0_3 = arith.constant 0 : index
    %1 = vector.load %arg6[%c0_2, %c0_3] : memref<64x1xf32, #tpu.memory_space<vmem>>, vector<64x1xf32>
    %c0_4 = arith.constant 0 : index
    %c0_5 = arith.constant 0 : index
    %2 = vector.load %arg7[%c0_4, %c0_5] : memref<64x1xf32, #tpu.memory_space<vmem>>, vector<64x1xf32>
    %cst = arith.constant dense<0.000000e+00> : vector<128x1xf32>
    %3 = vector.multi_reduction <add>, %0, %cst [0] : vector<4x128x1xf32> to vector<128x1xf32>
    %4 = vector.extract_strided_slice %3 {offsets = [0, 0], sizes = [64, 1], strides = [1, 1]} : vector<128x1xf32> to vector<64x1xf32>
    %cst_6 = arith.constant 0.001953125 : f32
    %5 = vector.broadcast %cst_6 : f32 to vector<64x1xf32>
    %6 = arith.mulf %4, %5 : vector<64x1xf32>
    %7 = vector.extract_strided_slice %3 {offsets = [64, 0], sizes = [64, 1], strides = [1, 1]} : vector<128x1xf32> to vector<64x1xf32>
    %cst_7 = arith.constant 0.001953125 : f32
    %8 = vector.broadcast %cst_7 : f32 to vector<64x1xf32>
    %9 = arith.mulf %7, %8 : vector<64x1xf32>
    %10 = arith.mulf %6, %6 : vector<64x1xf32>
    %11 = arith.subf %9, %10 : vector<64x1xf32>
    %cst_8 = arith.constant 0.000000e+00 : f32
    %12 = vector.broadcast %cst_8 : f32 to vector<64x1xf32>
    %13 = arith.maximumf %11, %12 : vector<64x1xf32>
    %cst_9 = arith.constant 9.99999974E-6 : f32
    %14 = vector.broadcast %cst_9 : f32 to vector<64x1xf32>
    %15 = arith.addf %13, %14 : vector<64x1xf32>
    %16 = math.rsqrt %15 : vector<64x1xf32>
    %17 = arith.mulf %1, %16 : vector<64x1xf32>
    %18 = arith.mulf %6, %17 : vector<64x1xf32>
    %19 = arith.subf %2, %18 : vector<64x1xf32>
    %c0_10 = arith.constant 0 : index
    %c0_11 = arith.constant 0 : index
    %c0_12 = arith.constant 0 : index
    %20 = vector.load %arg8[%c0_10, %c0_11, %c0_12] : memref<4x256x1xf32, #tpu.memory_space<vmem>>, vector<4x256x1xf32>
    %c0_13 = arith.constant 0 : index
    %c0_14 = arith.constant 0 : index
    %21 = vector.load %arg9[%c0_13, %c0_14] : memref<128x1xf32, #tpu.memory_space<vmem>>, vector<128x1xf32>
    %c0_15 = arith.constant 0 : index
    %c0_16 = arith.constant 0 : index
    %22 = vector.load %arg10[%c0_15, %c0_16] : memref<128x1xf32, #tpu.memory_space<vmem>>, vector<128x1xf32>
    %cst_17 = arith.constant dense<0.000000e+00> : vector<256x1xf32>
    %23 = vector.multi_reduction <add>, %20, %cst_17 [0] : vector<4x256x1xf32> to vector<256x1xf32>
    %24 = vector.extract_strided_slice %23 {offsets = [0, 0], sizes = [128, 1], strides = [1, 1]} : vector<256x1xf32> to vector<128x1xf32>
    %cst_18 = arith.constant 0.001953125 : f32
    %25 = vector.broadcast %cst_18 : f32 to vector<128x1xf32>
    %26 = arith.mulf %24, %25 : vector<128x1xf32>
    %27 = vector.extract_strided_slice %23 {offsets = [128, 0], sizes = [128, 1], strides = [1, 1]} : vector<256x1xf32> to vector<128x1xf32>
    %cst_19 = arith.constant 0.001953125 : f32
    %28 = vector.broadcast %cst_19 : f32 to vector<128x1xf32>
    %29 = arith.mulf %27, %28 : vector<128x1xf32>
    %30 = arith.mulf %26, %26 : vector<128x1xf32>
    %31 = arith.subf %29, %30 : vector<128x1xf32>
    %cst_20 = arith.constant 0.000000e+00 : f32
    %32 = vector.broadcast %cst_20 : f32 to vector<128x1xf32>
    %33 = arith.maximumf %31, %32 : vector<128x1xf32>
    %cst_21 = arith.constant 9.99999974E-6 : f32
    %34 = vector.broadcast %cst_21 : f32 to vector<128x1xf32>
    %35 = arith.addf %33, %34 : vector<128x1xf32>
    %36 = math.rsqrt %35 : vector<128x1xf32>
    %37 = arith.mulf %21, %36 : vector<128x1xf32>
    %38 = arith.mulf %26, %37 : vector<128x1xf32>
    %39 = arith.subf %22, %38 : vector<128x1xf32>
    %c0_22 = arith.constant 0 : index
    %c0_23 = arith.constant 0 : index
    %c0_24 = arith.constant 0 : index
    %40 = vector.load %arg2[%c0_22, %c0_23, %c0_24] : memref<1x128x128xf32, #tpu.memory_space<vmem>>, vector<1x128x128xf32>
    %41 = vector.shape_cast %40 : vector<1x128x128xf32> to vector<128x128xf32>
    %c0_25 = arith.constant 0 : index
    %c0_26 = arith.constant 0 : index
    %42 = vector.load %arg3[%c0_25, %c0_26] : memref<64x128xbf16, #tpu.memory_space<vmem>>, vector<64x128xbf16>
    %43 = arith.truncf %41 : vector<128x128xf32> to vector<128x128xbf16>
    %cst_27 = arith.constant dense<0.000000e+00> : vector<64x128xf32>
    %44 = tpu.matmul %42, %43, %cst_27 {dimension_numbers = #tpu.dot_dimension_numbers<[1], [0], [0], [1], [0, 0, 1, 1], [], []>} : vector<64x128xbf16>, vector<128x128xbf16>, vector<64x128xf32> -> vector<64x128xf32>
    %45 = vector.broadcast %17 : vector<64x1xf32> to vector<64x128xf32>
    %46 = arith.mulf %44, %45 : vector<64x128xf32>
    %47 = vector.broadcast %19 : vector<64x1xf32> to vector<64x128xf32>
    %48 = arith.addf %46, %47 : vector<64x128xf32>
    %cst_28 = arith.constant 0.000000e+00 : f32
    %49 = vector.broadcast %cst_28 : f32 to vector<64x128xf32>
    %50 = arith.maximumf %48, %49 : vector<64x128xf32>
    %c0_29 = arith.constant 0 : index
    %c0_30 = arith.constant 0 : index
    %51 = vector.load %arg4[%c0_29, %c0_30] : memref<128x64xbf16, #tpu.memory_space<vmem>>, vector<128x64xbf16>
    %52 = arith.truncf %50 : vector<64x128xf32> to vector<64x128xbf16>
    %cst_31 = arith.constant dense<0.000000e+00> : vector<128x128xf32>
    %53 = tpu.matmul %51, %52, %cst_31 {dimension_numbers = #tpu.dot_dimension_numbers<[1], [0], [0], [1], [0, 0, 1, 1], [], []>} : vector<128x64xbf16>, vector<64x128xbf16>, vector<128x128xf32> -> vector<128x128xf32>
    %54 = vector.broadcast %37 : vector<128x1xf32> to vector<128x128xf32>
    %55 = arith.mulf %53, %54 : vector<128x128xf32>
    %56 = arith.addf %41, %55 : vector<128x128xf32>
    %57 = vector.broadcast %39 : vector<128x1xf32> to vector<128x128xf32>
    %58 = arith.addf %56, %57 : vector<128x128xf32>
    %cst_32 = arith.constant 0.000000e+00 : f32
    %59 = vector.broadcast %cst_32 : f32 to vector<128x128xf32>
    %60 = arith.maximumf %58, %59 : vector<128x128xf32>
    %c0_33 = arith.constant 0 : index
    %c0_34 = arith.constant 0 : index
    %c0_35 = arith.constant 0 : index
    %61 = vector.load %arg11[%c0_33, %c0_34, %c0_35] : memref<1x128x128xf32, #tpu.memory_space<vmem>>, vector<1x128x128xf32>
    %62 = vector.shape_cast %61 : vector<1x128x128xf32> to vector<128x128xf32>
    %63 = vector.shape_cast %60 : vector<128x128xf32> to vector<1x128x128xf32>
    tpu.vector_store %arg11[%c0_33, %c0_34, %c0_35], %63 {strides = array<i32>} : memref<1x128x128xf32, #tpu.memory_space<vmem>>, vector<1x128x128xf32>,
    return
  }
  func.func @transform_0(%arg0: i32, %arg1: i32) -> (i32, i32, i32) {
    %c0_i32 = arith.constant 0 : i32
    %c0_i32_0 = arith.constant 0 : i32
    return %arg0, %c0_i32, %arg1 : i32, i32, i32
  }
  func.func @transform_1(%arg0: i32, %arg1: i32) -> (i32, i32) {
    %c0_i32 = arith.constant 0 : i32
    %c0_i32_0 = arith.constant 0 : i32
    %c0_i32_1 = arith.constant 0 : i32
    return %c0_i32, %c0_i32_0 : i32, i32
  }
  func.func @transform_2(%arg0: i32, %arg1: i32) -> (i32, i32) {
    %c0_i32 = arith.constant 0 : i32
    %c0_i32_0 = arith.constant 0 : i32
    %c0_i32_1 = arith.constant 0 : i32
    return %c0_i32, %c0_i32_0 : i32, i32
  }
  func.func @transform_3(%arg0: i32, %arg1: i32) -> (i32, i32, i32) {
    %c0_i32 = arith.constant 0 : i32
    %c0_i32_0 = arith.constant 0 : i32
    %c0_i32_1 = arith.constant 0 : i32
    %c0_i32_2 = arith.constant 0 : i32
    return %c0_i32, %c0_i32_0, %c0_i32_1 : i32, i32, i32
  }
  func.func @transform_4(%arg0: i32, %arg1: i32) -> (i32, i32) {
    %c0_i32 = arith.constant 0 : i32
    %c0_i32_0 = arith.constant 0 : i32
    %c0_i32_1 = arith.constant 0 : i32
    return %c0_i32, %c0_i32_0 : i32, i32
  }
  func.func @transform_5(%arg0: i32, %arg1: i32) -> (i32, i32) {
    %c0_i32 = arith.constant 0 : i32
    %c0_i32_0 = arith.constant 0 : i32
    %c0_i32_1 = arith.constant 0 : i32
    return %c0_i32, %c0_i32_0 : i32, i32
  }
  func.func @transform_6(%arg0: i32, %arg1: i32) -> (i32, i32, i32) {
    %c0_i32 = arith.constant 0 : i32
    %c0_i32_0 = arith.constant 0 : i32
    %c0_i32_1 = arith.constant 0 : i32
    %c0_i32_2 = arith.constant 0 : i32
    return %c0_i32, %c0_i32_0, %c0_i32_1 : i32, i32, i32
  }
  func.func @transform_7(%arg0: i32, %arg1: i32) -> (i32, i32) {
    %c0_i32 = arith.constant 0 : i32
    %c0_i32_0 = arith.constant 0 : i32
    %c0_i32_1 = arith.constant 0 : i32
    return %c0_i32, %c0_i32_0 : i32, i32
  }
  func.func @transform_8(%arg0: i32, %arg1: i32) -> (i32, i32) {
    %c0_i32 = arith.constant 0 : i32
    %c0_i32_0 = arith.constant 0 : i32
    %c0_i32_1 = arith.constant 0 : i32
    return %c0_i32, %c0_i32_0 : i32, i32
  }
  func.func @transform_9(%arg0: i32, %arg1: i32) -> (i32, i32, i32) {
    %c0_i32 = arith.constant 0 : i32
    %c0_i32_0 = arith.constant 0 : i32
    return %arg0, %c0_i32, %arg1 : i32, i32, i32
  }
}

</mosaic_0001>

<bundles_post_ra>
// kernel: multi_scale_combiner_forward.3
= control target key start
LH: loop header
LB: loop body
LE: loop exit
PB: predicated region body
PF: predicated region fallthrough
CT: control target
= control target key end

     0   :  { %s676_s9 = smov 0   ;;  %s678_s10 = smov 0   ;;  %s847_s0 = inlined_call_operand.vmem [shape: f32[2,128,256], index: 0, kind: input, shape index: {}]   ;;  %s848_s1 = inlined_call_operand.vmem [shape: bf16[64,128], index: 1, kind: input, shape index: {}]   ;;  %s849_s2 = inlined_call_operand.vmem [shape: f32[4,128,1], index: 2, kind: output, shape index: {}]  }
   0x1   :  { %s680_s11 = smov 0   ;;  %s682_s12 = smov 0  }
   0x2   :  { %s684_s13 = smov 0   ;;  %s686_s14 = smov 0  }
   0x3   :  { %s688_s15 = smov 0  }
   0x4 LB: > { %s21_s16 = sadd.s32 1, %s651_s13  ;;  %s24_s17 = sadd.s32 1, %s655_s14  ;;  %s659_s15 = sphi %s688_s15, %s12_s15   ;;  %s655_s14 = sphi %s686_s14, %s855_s14   ;;  %s651_s13 = sphi %s684_s13, %s854_s13   ;;  %s647_s12 = sphi %s682_s12, %s853_s12   ;;  %s643_s11 = sphi %s680_s11, %s852_s11   ;;  %s639_s10 = sphi %s678_s10, %s851_s10   ;;  %s635_s9 = sphi %s676_s9, %s850_s9  }
   0x5   : > { %p22_p0 = scmp.ge.s32.totalorder %s21_s16, 2  ;;  %p40_p1 = scmp.ne.s32.totalorder %s639_s10, %s635_s9 }
   0x6   : > { %p41_p2 = scmp.eq.s32.totalorder %s659_s15, 0  ;;  %s33_s21 = sadd.s32 1, %s639_s10 }
   0x7   : > { %s857_s16 = smov (%p22_p0, %s21_s16), 0  ;;  %s859_s17 = smov (!%p22_p0, %s24_s17), %s655_s14 }
   0x8   : > { %p42_p3 = por %p41_p2, %p40_p1  ;;  %p26_p4 = scmp.ge.s32.totalorder %s859_s17, 2 }
   0x9   : > { %s29_s18 = ssub.s32 %s651_s13, %s857_s16  ;;  %p493_p6 = scmp.ge.s32.totalorder %s659_s15, 4 }
   0xa   : > { %s861_s17 = smov (%p26_p4, %s859_s17), 0 }
   0xb   : > { %s28_s19 = ssub.s32 %s655_s14, %s861_s17  ;;  %120 = sbr.rel (%p493_p6) target bundleno = 38 (0x26), region = 20 }
   0xc   : > { %s30_s20 = sor.u32 %s29_s18, %s28_s19 }
   0xd   : > { %p31_p5 = scmp.eq.s32.totalorder %s30_s20, 0 }
   0xf   : > { %s727_s22 = scalar_select %p31_p5, %s639_s10, %s33_s21  }
  0x10   : > { %123 = sbr.rel (!%p42_p3) target bundleno = 38 (0x26), region = 24  ;;  %s125_s23 = sand.u32 (%p42_p3), 1, %s639_s10  }
  0x11   : > { %s495_s24 = sshll.u32 (%p42_p3), %s655_s14, 5  ;;  %s494_s25 = sshll.u32 (%p42_p3), %s125_s23, 7 }
  0x12   : > { %s129_s26 = sadd.s32 (%p42_p3), %s651_s13, %s495_s24  ;;  %s127_s3 = scalar_lea.vmem (%p42_p3), [#allocation2], %s494_s25 }
  0x13   : > { %s496_s27 = sshll.u32 (%p42_p3), %s129_s26, 3 }
  0x14   : > { %s736_s30 = scalar_lea.vmem (%p42_p3), %s847_s0, %s496_s27 }
  0x15   : > { %v190_v0 = vld [vmem:[%s736_s30] sm:$0xff]  ;;  %v192_v1 = vld [vmem:[%s736_s30 + $0x10] sm:$0xff] }
  0x16   : > { %v194_v2 = vld [vmem:[%s736_s30 + $0x20] sm:$0xff]  ;;  %191 = vst [vmem:[%s127_s3] sm:$0xff] %v190_v0  ;;  %v196_v3 = vld [vmem:[%s736_s30 + $0x30] sm:$0xff] }
  0x17   : > { %193 = vst [vmem:[%s127_s3 + $0x8] sm:$0xff] %v192_v1  ;;  %v198_v4 = vld [vmem:[%s736_s30 + $0x40] sm:$0xff]  ;;  %v200_v5 = vld [vmem:[%s736_s30 + $0x50] sm:$0xff] }
  0x18   : > { %195 = vst [vmem:[%s127_s3 + $0x10] sm:$0xff] %v194_v2  ;;  %v202_v6 = vld [vmem:[%s736_s30 + $0x60] sm:$0xff]  ;;  %v204_v7 = vld [vmem:[%s736_s30 + $0x70] sm:$0xff] }
  0x19   : > { %197 = vst [vmem:[%s127_s3 + $0x18] sm:$0xff] %v196_v3  ;;  %v206_v8 = vld [vmem:[%s736_s30 + $0x80] sm:$0xff]  ;;  %v208_v9 = vld [vmem:[%s736_s30 + $0x90] sm:$0xff] }
  0x1a   : > { %199 = vst [vmem:[%s127_s3 + $0x20] sm:$0xff] %v198_v4  ;;  %v210_v10 = vld [vmem:[%s736_s30 + $0xa0] sm:$0xff]  ;;  %v212_v11 = vld [vmem:[%s736_s30 + $0xb0] sm:$0xff] }
  0x1b   : > { %201 = vst [vmem:[%s127_s3 + $0x28] sm:$0xff] %v200_v5  ;;  %v214_v12 = vld [vmem:[%s736_s30 + $0xc0] sm:$0xff]  ;;  %v216_v13 = vld [vmem:[%s736_s30 + $0xd0] sm:$0xff] }
  0x1c   : > { %203 = vst [vmem:[%s127_s3 + $0x30] sm:$0xff] %v202_v6  ;;  %v218_v14 = vld [vmem:[%s736_s30 + $0xe0] sm:$0xff]  ;;  %v220_v15 = vld [vmem:[%s736_s30 + $0xf0] sm:$0xff] }
  0x1d   : > { %205 = vst [vmem:[%s127_s3 + $0x38] sm:$0xff] %v204_v7 }
  0x1e   : > { %207 = vst [vmem:[%s127_s3 + $0x40] sm:$0xff] %v206_v8 }
  0x1f   : > { %209 = vst [vmem:[%s127_s3 + $0x48] sm:$0xff] %v208_v9 }
  0x20   : > { %211 = vst [vmem:[%s127_s3 + $0x50] sm:$0xff] %v210_v10 }
  0x21   : > { %213 = vst [vmem:[%s127_s3 + $0x58] sm:$0xff] %v212_v11 }
  0x22   : > { %215 = vst [vmem:[%s127_s3 + $0x60] sm:$0xff] %v214_v12 }
  0x23   : > { %217 = vst [vmem:[%s127_s3 + $0x68] sm:$0xff] %v216_v13 }
  0x24   : > { %219 = vst [vmem:[%s127_s3 + $0x70] sm:$0xff] %v218_v14 }
  0x25   : > { %221 = vst [vmem:[%s127_s3 + $0x78] sm:$0xff] %v220_v15 }
  0x26 PF: > { %p497_p7 = scmp.ge.s32.totalorder %s659_s15, 1  ;;  %p226_p8 = scmp.lt.s32.totalorder %s659_s15, 5 }
  0x28   : > { %p227_p9 = pnand %p497_p7, %p226_p8 }
  0x29   : > { %s233_s4 = sand.u32 (!%p227_p9), 1, %s635_s9   ;;  %s499_s24 = sshll.u32 (!%p227_p9), %s647_s12, 1 }
  0x2a   : > { %230 = sbr.rel (%p227_p9) target bundleno = 364 (0x16c), region = 62  ;;  %s498_s5 = sshll.u32 (!%p227_p9), %s233_s4, 7 }
  0x2b   : > { %s757_s6 = scalar_lea.vmem (!%p227_p9), [#allocation2], %s498_s5  ;;  %s257_s25 = sadd.s32 (!%p227_p9), %s643_s11, %s499_s24 }
  0x2c   : > { %p258_p10 = scmp.lt.s32.totalorder (!%p227_p9), %s257_s25, 3 }
  0x2f   : > { %v279_v16 = vld [vmem:[%s757_s6 + $0x70] sm:$0xff]  ;;  %v280_v17 = vld [vmem:[%s757_s6 + $0x78] sm:$0xff]  ;;  %v277_v18 = vld [vmem:[%s757_s6 + $0x60] sm:$0xff]  ;;  %s863_s25 = smov (!%p258_p10, %s257_s25), 3  ;;  %vm390_vm0 = vcmask 7168  }
  0x30   : > { %v288_v19 = vpack.c.bf16 %v280_v17, %v279_v16  ;;  %v278_v20 = vld [vmem:[%s757_s6 + $0x68] sm:$0xff]  ;;  %v275_v22 = vld [vmem:[%s757_s6 + $0x50] sm:$0xff]  ;;  %v276_v23 = vld [vmem:[%s757_s6 + $0x58] sm:$0xff]  ;;  %s520_s26 = sshll.u32 %s863_s25, 7 }
  0x31   : > { %v287_v21 = vpack.c.bf16 %v278_v20, %v277_v18  ;;  %v286_v24 = vpack.c.bf16 %v276_v23, %v275_v22  ;;  %v273_v25 = vld [vmem:[%s757_s6 + $0x40] sm:$0xff]  ;;  %v274_v26 = vld [vmem:[%s757_s6 + $0x48] sm:$0xff]  ;;  %v271_v28 = vld [vmem:[%s757_s6 + $0x30] sm:$0xff]  ;;  %s792_s29 = scalar_lea.vmem %s849_s2, %s520_s26 }
  0x32   : > { %321 = vmatpush.bf16.msra.mxu0 %v288_v19  ;;  %525 = vmatpush.bf16.msra.mxu1 %v288_v19  ;;  %v285_v27 = vpack.c.bf16 %v274_v26, %v273_v25  ;;  %v272_v29 = vld [vmem:[%s757_s6 + $0x38] sm:$0xff]  ;;  %v269_v31 = vld [vmem:[%s757_s6 + $0x20] sm:$0xff]  ;;  %v270_v32 = vld [vmem:[%s757_s6 + $0x28] sm:$0xff] }
  0x33   : > { %527 = vmatpush.bf16.msra.mxu3 %v288_v19  ;;  %526 = vmatpush.bf16.msra.mxu2 %v288_v19  ;;  %v284_v30 = vpack.c.bf16 %v272_v29, %v271_v28  ;;  %v283_v33 = vpack.c.bf16 %v270_v32, %v269_v31  ;;  %v267_v34 = vld [vmem:[%s757_s6 + $0x10] sm:$0xff]  ;;  %v268_v35 = vld [vmem:[%s757_s6 + $0x18] sm:$0xff]  ;;  %v265_v37 = vld [vmem:[%s757_s6] sm:$0xff] }
  0x34   : > { %v282_v36 = vpack.c.bf16 %v268_v35, %v267_v34  ;;  %v266_v38 = vld [vmem:[%s757_s6 + $0x8] sm:$0xff]  ;;  %v521_v40 = vld [vmem:[%s848_s1] sm:$0xff]  ;;  %v524_v42 = vld [vmem:[%s848_s1 + $0x18] sm:$0xff] }
  0x35   : > { %v281_v39 = vpack.c.bf16 %v266_v38, %v265_v37  ;;  %v522_v41 = vld [vmem:[%s848_s1 + $0x8] sm:$0xff]  ;;  %v523_v43 = vld [vmem:[%s848_s1 + $0x10] sm:$0xff] }
  0x36   : > { %322 = vmatpush.bf16.msra.mxu0 %v287_v21  ;;  %528 = vmatpush.bf16.msra.mxu1 %v287_v21 }
  0x37   : > { %530 = vmatpush.bf16.msra.mxu3 %v287_v21  ;;  %529 = vmatpush.bf16.msra.mxu2 %v287_v21 }
  0x3a   : > { %323 = vmatpush.bf16.msra.mxu0 %v286_v24  ;;  %531 = vmatpush.bf16.msra.mxu1 %v286_v24 }
  0x3b   : > { %533 = vmatpush.bf16.msra.mxu3 %v286_v24  ;;  %532 = vmatpush.bf16.msra.mxu2 %v286_v24 }
  0x3e   : > { %324 = vmatpush.bf16.msra.mxu0 %v285_v27  ;;  %534 = vmatpush.bf16.msra.mxu1 %v285_v27 }
  0x3f   : > { %536 = vmatpush.bf16.msra.mxu3 %v285_v27  ;;  %535 = vmatpush.bf16.msra.mxu2 %v285_v27 }
  0x42   : > { %325 = vmatpush.bf16.msra.mxu0 %v284_v30  ;;  %537 = vmatpush.bf16.msra.mxu1 %v284_v30 }
  0x43   : > { %539 = vmatpush.bf16.msra.mxu3 %v284_v30  ;;  %538 = vmatpush.bf16.msra.mxu2 %v284_v30 }
  0x46   : > { %326 = vmatpush.bf16.msra.mxu0 %v283_v33  ;;  %540 = vmatpush.bf16.msra.mxu1 %v283_v33 }
  0x47   : > { %542 = vmatpush.bf16.msra.mxu3 %v283_v33  ;;  %541 = vmatpush.bf16.msra.mxu2 %v283_v33 }
  0x4a   : > { %327 = vmatpush.bf16.msra.mxu0 %v282_v36  ;;  %543 = vmatpush.bf16.msra.mxu1 %v282_v36 }
  0x4b   : > { %545 = vmatpush.bf16.msra.mxu3 %v282_v36  ;;  %544 = vmatpush.bf16.msra.mxu2 %v282_v36 }
  0x4e   : > { %328 = vmatpush.bf16.msra.mxu0 %v281_v39  ;;  %546 = vmatpush.bf16.msra.mxu1 %v281_v39 }
  0x4f   : > { %548 = vmatpush.bf16.msra.mxu3 %v281_v39  ;;  %547 = vmatpush.bf16.msra.mxu2 %v281_v39 }
  0x51   : > { %329 = vmatmul.bf16.vlgmr.msra.gmra.mxu0 %v521_v40  ;;  %334 = vmatmul.bf16.vlgmr.msra.gmra.mxu1 %v522_v41 }
  0x52   : > { %344 = vmatmul.bf16.vlgmr.msra.gmra.mxu3 %v524_v42  ;;  %339 = vmatmul.bf16.vlgmr.msra.gmra.mxu2 %v523_v43 }
  0xce   : > { %v330_v44 = vpop.f32.mrf.mxu0  ;;  %v335_v45 = vpop.f32.mrf.mxu1 }
  0xcf   : > { %354 = vadd.xlane.f32.xlu1 %v335_v45  ;;  %350 = vadd.xlane.f32.xlu0 %v330_v44  ;;  %v366_v46 = vmul.f32 %v330_v44, %v330_v44  ;;  %v368_v47 = vmul.f32 %v335_v45, %v335_v45 }
  0xd1   : > { %374 = vadd.xlane.f32.xlu2 %v366_v46 }
  0xd5   : > { %v345_v48 = vpop.f32.mrf.mxu3  ;;  %v340_v49 = vpop.f32.mrf.mxu2 }
  0xd6   : > { %v337_v50 = vpop.f32.mrf.mxu1  ;;  %v332_v51 = vpop.f32.mrf.mxu0  ;;  %v370_v53 = vmul.f32 %v340_v49, %v340_v49  ;;  %v372_v58 = vmul.f32 %v345_v48, %v345_v48 }
  0xd7   : > { %378 = vadd.xlane.f32.xlu1 %v368_v47  ;;  %362 = vadd.xlane.f32.xlu0 %v345_v48  ;;  %v369_v52 = vmul.f32 %v337_v50, %v337_v50  ;;  %v367_v56 = vmul.f32 %v332_v51, %v332_v51 }
  0xd9   : > { %358 = vadd.xlane.f32.xlu2 %v340_v49 }
  0xdd   : > { %v347_v54 = vpop.f32.mrf.mxu3  ;;  %v342_v55 = vpop.f32.mrf.mxu2 }
  0xde   : > { %v371_v57 = vmul.f32 %v342_v55, %v342_v55  ;;  %v373_v59 = vmul.f32 %v347_v54, %v347_v54 }
  0xdf   : > { %356 = vadd.xlane.f32.xlu1 %v337_v50  ;;  %352 = vadd.xlane.f32.xlu0 %v332_v51 }
  0xe1   : > { %380 = vadd.xlane.f32.xlu2 %v369_v52 }
  0xe7   : > { %364 = vadd.xlane.f32.xlu1 %v347_v54  ;;  %382 = vadd.xlane.f32.xlu0 %v370_v53 }
  0xe9   : > { %360 = vadd.xlane.f32.xlu2 %v342_v55 }
  0xef   : > { %384 = vadd.xlane.f32.xlu1 %v371_v57  ;;  %376 = vadd.xlane.f32.xlu0 %v367_v56 }
  0xf1   : > { %386 = vadd.xlane.f32.xlu2 %v372_v58 }
  0xf7   : > { %388 = vadd.xlane.f32.xlu0 %v373_v59 }
 0x142   : > { %v355_v60 = vpop.xlane.xlu1 %354  ;;  %v351_v61 = vpop.xlane.xlu0 %350 }
 0x143   : > { %393 = vst.msk [vmem:[%s792_s29 + $0x10] sm:$0xff] %vm390_vm0, %v355_v60 }
 0x144   : > { %391 = vst.msk [vmem:[%s792_s29] sm:$0xff] %vm390_vm0, %v351_v61  ;;  %v375_v62 = vpop.xlane.xlu2 %374 }
 0x145   : > { %399 = vst.msk [vmem:[%s792_s29 + $0x40] sm:$0xff] %vm390_vm0, %v375_v62 }
 0x14a   : > { %v379_v63 = vpop.xlane.xlu1 %378  ;;  %v363_v0 = vpop.xlane.xlu0 %362 }
 0x14b   : > { %401 = vst.msk [vmem:[%s792_s29 + $0x50] sm:$0xff] %vm390_vm0, %v379_v63 }
 0x14c   : > { %397 = vst.msk [vmem:[%s792_s29 + $0x30] sm:$0xff] %vm390_vm0, %v363_v0  ;;  %v359_v1 = vpop.xlane.xlu2 %358 }
 0x14d   : > { %395 = vst.msk [vmem:[%s792_s29 + $0x20] sm:$0xff] %vm390_vm0, %v359_v1 }
 0x152   : > { %v357_v2 = vpop.xlane.xlu1 %356  ;;  %v353_v3 = vpop.xlane.xlu0 %352 }
 0x153   : > { %394 = vst.msk [vmem:[%s792_s29 + $0x18] sm:$0xff] %vm390_vm0, %v357_v2 }
 0x154   : > { %392 = vst.msk [vmem:[%s792_s29 + $0x8] sm:$0xff] %vm390_vm0, %v353_v3  ;;  %v381_v4 = vpop.xlane.xlu2 %380 }
 0x155   : > { %402 = vst.msk [vmem:[%s792_s29 + $0x58] sm:$0xff] %vm390_vm0, %v381_v4 }
 0x15a   : > { %v365_v5 = vpop.xlane.xlu1 %364  ;;  %v383_v6 = vpop.xlane.xlu0 %382 }
 0x15b   : > { %398 = vst.msk [vmem:[%s792_s29 + $0x38] sm:$0xff] %vm390_vm0, %v365_v5 }
 0x15c   : > { %403 = vst.msk [vmem:[%s792_s29 + $0x60] sm:$0xff] %vm390_vm0, %v383_v6  ;;  %v361_v7 = vpop.xlane.xlu2 %360 }
 0x15d   : > { %396 = vst.msk [vmem:[%s792_s29 + $0x28] sm:$0xff] %vm390_vm0, %v361_v7 }
 0x162   : > { %v385_v8 = vpop.xlane.xlu1 %384  ;;  %v377_v9 = vpop.xlane.xlu0 %376 }
 0x163   : > { %404 = vst.msk [vmem:[%s792_s29 + $0x68] sm:$0xff] %vm390_vm0, %v385_v8 }
 0x164   : > { %400 = vst.msk [vmem:[%s792_s29 + $0x48] sm:$0xff] %vm390_vm0, %v377_v9  ;;  %v387_v10 = vpop.xlane.xlu2 %386 }
 0x165   : > { %405 = vst.msk [vmem:[%s792_s29 + $0x70] sm:$0xff] %vm390_vm0, %v387_v10 }
 0x16a   : > { %v389_v11 = vpop.xlane.xlu0 %388 }
 0x16b   : > { %406 = vst.msk [vmem:[%s792_s29 + $0x78] sm:$0xff] %vm390_vm0, %v389_v11 }
 0x16c PF: > { %s12_s15 = sadd.s32 1, %s659_s15   ;;  %s850_s9 = smov %s639_s10 }
 0x16d   : > { %p9_p11 = scmp.ge.s32.totalorder %s12_s15, 6   ;;  %s851_s10 = smov %s727_s22 }
 0x16e   : > { %s852_s11 = smov %s651_s13  ;;  %s853_s12 = smov %s655_s14 }
 0x16f   : > { %s854_s13 = smov %s857_s16  ;;  %s855_s14 = smov %s861_s17 }
 0x170   :  { %11 = sbr.rel (!%p9_p11) target bundleno = 4 (0x4), region = 101 }

// kernel: multi_scale_combiner_forward.4
= control target key start
LH: loop header
LB: loop body
LE: loop exit
PB: predicated region body
PF: predicated region fallthrough
CT: control target
= control target key end

     0   :  { %s1504_s21 = smov 0   ;;  %s1506_s22 = smov 0   ;;  %s2191_s0 = inlined_call_operand.vmem [shape: f32[2,128,256], index: 0, kind: input, shape index: {}]   ;;  %s2192_s1 = inlined_call_operand.vmem [shape: bf16[64,128], index: 1, kind: input, shape index: {}]   ;;  %s2193_s2 = inlined_call_operand.vmem [shape: bf16[128,64], index: 2, kind: input, shape index: {}]   ;;  %s2194_s3 = inlined_call_operand.vmem [shape: f32[4,128,1], index: 3, kind: input, shape index: {}]   ;;  %s2195_s4 = inlined_call_operand.vmem [shape: f32[64,1], index: 4, kind: input, shape index: {}]   ;;  %s2196_s5 = inlined_call_operand.vmem [shape: f32[64,1], index: 5, kind: input, shape index: {}]   ;;  %s2197_s6 = inlined_call_operand.vmem [shape: f32[4,256,1], index: 6, kind: output, shape index: {}]  }
   0x1   :  { %s1508_s23 = smov 0   ;;  %s1510_s24 = smov 0  }
   0x2   :  { %s1512_s25 = smov 0   ;;  %s1514_s26 = smov 0  }
   0x3   :  { %s1516_s27 = smov 0  }
   0x4 LB: > { %s25_s28 = sadd.s32 1, %s1458_s25  ;;  %s28_s29 = sadd.s32 1, %s1462_s26  ;;  %s1466_s27 = sphi %s1516_s27, %s16_s27   ;;  %s1462_s26 = sphi %s1514_s26, %s2211_s26   ;;  %s1458_s25 = sphi %s1512_s25, %s2210_s25   ;;  %s1454_s24 = sphi %s1510_s24, %s2209_s24   ;;  %s1450_s23 = sphi %s1508_s23, %s2208_s23   ;;  %s1446_s22 = sphi %s1506_s22, %s2207_s22   ;;  %s1442_s21 = sphi %s1504_s21, %s2206_s21  }
   0x5   : > { %p26_p0 = scmp.ge.s32.totalorder %s25_s28, 2  ;;  %p44_p1 = scmp.ne.s32.totalorder %s1446_s22, %s1442_s21 }
   0x6   : > { %p45_p2 = scmp.eq.s32.totalorder %s1466_s27, 0  ;;  %s37_s9 = sadd.s32 1, %s1446_s22 }
   0x7   : > { %s2213_s28 = smov (%p26_p0, %s25_s28), 0  ;;  %s2215_s29 = smov (!%p26_p0, %s28_s29), %s1462_s26 }
   0x8   : > { %p46_p3 = por %p45_p2, %p44_p1  ;;  %p30_p4 = scmp.ge.s32.totalorder %s2215_s29, 2 }
   0x9   : > { %s33_s30 = ssub.s32 %s1458_s25, %s2213_s28  ;;  %p1240_p6 = scmp.ge.s32.totalorder %s1466_s27, 4 }
   0xa   : > { %s2217_s29 = smov (%p30_p4, %s2215_s29), 0 }
   0xb   : > { %s32_s7 = ssub.s32 %s1462_s26, %s2217_s29  ;;  %220 = sbr.rel (%p1240_p6) target bundleno = 38 (0x26), region = 36 }
   0xc   : > { %s34_s8 = sor.u32 %s33_s30, %s32_s7 }
   0xd   : > { %p35_p5 = scmp.eq.s32.totalorder %s34_s8, 0 }
   0xf   : > { %s1555_s10 = scalar_select %p35_p5, %s1446_s22, %s37_s9  }
  0x10   : > { %223 = sbr.rel (!%p46_p3) target bundleno = 38 (0x26), region = 40  ;;  %s225_s11 = sand.u32 (%p46_p3), 1, %s1446_s22  }
  0x11   : > { %s1242_s12 = sshll.u32 (%p46_p3), %s1462_s26, 5  ;;  %s1241_s13 = sshll.u32 (%p46_p3), %s225_s11, 7 }
  0x12   : > { %s229_s14 = sadd.s32 (%p46_p3), %s1458_s25, %s1242_s12  ;;  %s227_s19 = scalar_lea.vmem (%p46_p3), [#allocation2], %s1241_s13 }
  0x13   : > { %s1243_s15 = sshll.u32 (%p46_p3), %s229_s14, 3 }
  0x14   : > { %s1564_s18 = scalar_lea.vmem (%p46_p3), %s2191_s0, %s1243_s15 }
  0x15   : > { %v290_v0 = vld [vmem:[%s1564_s18] sm:$0xff]  ;;  %v292_v1 = vld [vmem:[%s1564_s18 + $0x10] sm:$0xff] }
  0x16   : > { %v294_v2 = vld [vmem:[%s1564_s18 + $0x20] sm:$0xff]  ;;  %291 = vst [vmem:[%s227_s19] sm:$0xff] %v290_v0  ;;  %v296_v3 = vld [vmem:[%s1564_s18 + $0x30] sm:$0xff] }
  0x17   : > { %293 = vst [vmem:[%s227_s19 + $0x8] sm:$0xff] %v292_v1  ;;  %v298_v4 = vld [vmem:[%s1564_s18 + $0x40] sm:$0xff]  ;;  %v300_v5 = vld [vmem:[%s1564_s18 + $0x50] sm:$0xff] }
  0x18   : > { %295 = vst [vmem:[%s227_s19 + $0x10] sm:$0xff] %v294_v2  ;;  %v302_v6 = vld [vmem:[%s1564_s18 + $0x60] sm:$0xff]  ;;  %v304_v7 = vld [vmem:[%s1564_s18 + $0x70] sm:$0xff] }
  0x19   : > { %297 = vst [vmem:[%s227_s19 + $0x18] sm:$0xff] %v296_v3  ;;  %v306_v8 = vld [vmem:[%s1564_s18 + $0x80] sm:$0xff]  ;;  %v308_v9 = vld [vmem:[%s1564_s18 + $0x90] sm:$0xff] }
  0x1a   : > { %299 = vst [vmem:[%s227_s19 + $0x20] sm:$0xff] %v298_v4  ;;  %v310_v10 = vld [vmem:[%s1564_s18 + $0xa0] sm:$0xff]  ;;  %v312_v11 = vld [vmem:[%s1564_s18 + $0xb0] sm:$0xff] }
  0x1b   : > { %301 = vst [vmem:[%s227_s19 + $0x28] sm:$0xff] %v300_v5  ;;  %v314_v12 = vld [vmem:[%s1564_s18 + $0xc0] sm:$0xff]  ;;  %v316_v13 = vld [vmem:[%s1564_s18 + $0xd0] sm:$0xff] }
  0x1c   : > { %303 = vst [vmem:[%s227_s19 + $0x30] sm:$0xff] %v302_v6  ;;  %v318_v14 = vld [vmem:[%s1564_s18 + $0xe0] sm:$0xff]  ;;  %v320_v15 = vld [vmem:[%s1564_s18 + $0xf0] sm:$0xff] }
  0x1d   : > { %305 = vst [vmem:[%s227_s19 + $0x38] sm:$0xff] %v304_v7 }
  0x1e   : > { %307 = vst [vmem:[%s227_s19 + $0x40] sm:$0xff] %v306_v8 }
  0x1f   : > { %309 = vst [vmem:[%s227_s19 + $0x48] sm:$0xff] %v308_v9 }
  0x20   : > { %311 = vst [vmem:[%s227_s19 + $0x50] sm:$0xff] %v310_v10 }
  0x21   : > { %313 = vst [vmem:[%s227_s19 + $0x58] sm:$0xff] %v312_v11 }
  0x22   : > { %315 = vst [vmem:[%s227_s19 + $0x60] sm:$0xff] %v314_v12 }
  0x23   : > { %317 = vst [vmem:[%s227_s19 + $0x68] sm:$0xff] %v316_v13 }
  0x24   : > { %319 = vst [vmem:[%s227_s19 + $0x70] sm:$0xff] %v318_v14 }
  0x25   : > { %321 = vst [vmem:[%s227_s19 + $0x78] sm:$0xff] %v320_v15 }
  0x26 PF: > { %p1244_p7 = scmp.ge.s32.totalorder %s1466_s27, 1  ;;  %p326_p8 = scmp.lt.s32.totalorder %s1466_s27, 5 }
  0x28   : > { %p327_p9 = pnand %p1244_p7, %p326_p8 }
  0x29   : > { %s333_s20 = sand.u32 (!%p327_p9), 1, %s1442_s21   ;;  %s1246_s21 = sshll.u32 (!%p327_p9), %s1454_s24, 1 }
  0x2a   : > { %330 = sbr.rel (%p327_p9) target bundleno = 614 (0x266), region = 78  ;;  %s1245_s13 = sshll.u32 (!%p327_p9), %s333_s20, 7 }
  0x2b   : > { %s1612_s8 = scalar_lea.vmem (!%p327_p9), [#allocation2], %s1245_s13  ;;  %s365_s17 = sadd.s32 (!%p327_p9), %s1450_s23, %s1246_s21 }
  0x2c   : > { %p366_p10 = scmp.lt.s32.totalorder (!%p327_p9), %s365_s17, 3 }
  0x2f   : > { %v380_v16 = vld [vmem:[%s2194_s3 + $0x30] sm:$0xff]  ;;  %vm454_vm0 = vcmask 7168   ;;  %v734_v29 = vld [vmem:[%s1612_s8 + $0x78] sm:$0xff]  ;;  %v731_v30 = vld [vmem:[%s1612_s8 + $0x60] sm:$0xff]  ;;  %v1468_v31 = vmov 0   ;;  %s2219_s17 = smov (!%p366_p10, %s365_s17), 3 }
  0x30   : > { %v388_v17 = vld [vmem:[%s2194_s3 + $0x70] sm:$0xff]  ;;  %v497_v22 = vsel %vm454_vm0, %v380_v16, 0.0  ;;  %1393 = vset.pattern.permute.xlu0 %v1468_v31  ;;  %1395 = vset.pattern.permute.xlu1 %v1468_v31  ;;  %v732_v36 = vld [vmem:[%s1612_s8 + $0x68] sm:$0xff]  ;;  %v730_v38 = vld [vmem:[%s1612_s8 + $0x58] sm:$0xff] }
  0x31   : > { %v396_v18 = vld [vmem:[%s2194_s3 + $0xb0] sm:$0xff]  ;;  %v553_v33 = vsel %vm454_vm0, %v388_v17, 0.0  ;;  %1394 = vset.pattern.permute.xlu2 %v1468_v31  ;;  %v727_v42 = vld [vmem:[%s1612_s8 + $0x40] sm:$0xff]  ;;  %v728_v43 = vld [vmem:[%s1612_s8 + $0x48] sm:$0xff]  ;;  %v741_v46 = vpack.c.bf16 %v732_v36, %v731_v30 }
  0x32   : > { %v404_v19 = vld [vmem:[%s2194_s3 + $0xf0] sm:$0xff]  ;;  %v498_v23 = vsel %vm454_vm0, %v396_v18, 0.0  ;;  %v726_v47 = vld [vmem:[%s1612_s8 + $0x38] sm:$0xff]  ;;  %v723_v48 = vld [vmem:[%s1612_s8 + $0x20] sm:$0xff]  ;;  %v739_v55 = vpack.c.bf16 %v728_v43, %v727_v42 }
  0x33   : > { %v412_v20 = vld [vmem:[%s2194_s3 + $0x130] sm:$0xff]  ;;  %v499_v26 = vadd.f32 %v498_v23, %v497_v22  ;;  %v554_v34 = vsel %vm454_vm0, %v404_v19, 0.0  ;;  %v724_v49 = vld [vmem:[%s1612_s8 + $0x28] sm:$0xff]  ;;  %v381_v58 = vld [vmem:[%s2194_s3 + $0x38] sm:$0xff] }
  0x34   : > { %v420_v21 = vld [vmem:[%s2194_s3 + $0x170] sm:$0xff]  ;;  %v500_v27 = vsel %vm454_vm0, %v412_v20, 0.0  ;;  %v555_v40 = vadd.f32 %v554_v34, %v553_v33  ;;  %v1635_v57 = vpack.c.bf16 %v724_v49, %v723_v48  ;;  %v389_v59 = vld [vmem:[%s2194_s3 + $0x78] sm:$0xff]  ;;  %v504_v2 = vsel %vm454_vm0, %v381_v58, 0.0  ;;  %v379_v31 = vld [vmem:[%s2194_s3 + $0x28] sm:$0xff] }
  0x35   : > { %v428_v24 = vld [vmem:[%s2194_s3 + $0x1b0] sm:$0xff]  ;;  %v501_v39 = vadd.f32 %v500_v27, %v499_v26  ;;  %v556_v41 = vsel %vm454_vm0, %v420_v21, 0.0  ;;  %v397_v60 = vld [vmem:[%s2194_s3 + $0xb8] sm:$0xff]  ;;  %v560_v8 = vsel %vm454_vm0, %v389_v59, 0.0  ;;  %v411_v42 = vld [vmem:[%s2194_s3 + $0x128] sm:$0xff]  ;;  %v490_v48 = vsel %vm454_vm0, %v379_v31, 0.0 }
  0x36   : > { %v436_v25 = vld [vmem:[%s2194_s3 + $0x1f0] sm:$0xff]  ;;  %v502_v32 = vsel %vm454_vm0, %v428_v24, 0.0  ;;  %v557_v51 = vadd.f32 %v556_v41, %v555_v40  ;;  %v405_v63 = vld [vmem:[%s2194_s3 + $0xf8] sm:$0xff]  ;;  %v505_v3 = vsel %vm454_vm0, %v397_v60, 0.0  ;;  %v395_v41 = vld [vmem:[%s2194_s3 + $0xa8] sm:$0xff] }
  0x37   : > { %v733_v28 = vld [vmem:[%s1612_s8 + $0x70] sm:$0xff]  ;;  %v558_v45 = vsel %vm454_vm0, %v436_v25, 0.0  ;;  %v503_v50 = vadd.f32 %v502_v32, %v501_v39  ;;  %v413_v0 = vld [vmem:[%s2194_s3 + $0x138] sm:$0xff]  ;;  %v506_v6 = vadd.f32 %v505_v3, %v504_v2  ;;  %v561_v9 = vsel %vm454_vm0, %v405_v63, 0.0  ;;  %v378_v2 = vld [vmem:[%s2194_s3 + $0x20] sm:$0xff] }
  0x38   : > { %v742_v35 = vpack.c.bf16 %v734_v29, %v733_v28  ;;  %v729_v37 = vld [vmem:[%s1612_s8 + $0x50] sm:$0xff]  ;;  %v559_v52 = vadd.f32 %v558_v45, %v557_v51  ;;  %v421_v1 = vld [vmem:[%s2194_s3 + $0x178] sm:$0xff]  ;;  %v507_v7 = vsel %vm454_vm0, %v413_v0, 0.0  ;;  %v562_v13 = vadd.f32 %v561_v9, %v560_v8  ;;  %v394_v3 = vld [vmem:[%s2194_s3 + $0xa0] sm:$0xff] }
  0x39   : > { %v725_v44 = vld [vmem:[%s1612_s8 + $0x30] sm:$0xff]  ;;  %v1631_v53 = vmul.f32 0.001953125, %v503_v50  ;;  %v740_v54 = vpack.c.bf16 %v730_v38, %v729_v37  ;;  %v429_v4 = vld [vmem:[%s2194_s3 + $0x1b8] sm:$0xff]  ;;  %v563_v14 = vsel %vm454_vm0, %v421_v1, 0.0  ;;  %v508_v19 = vadd.f32 %v507_v7, %v506_v6  ;;  %v410_v8 = vld [vmem:[%s2194_s3 + $0x120] sm:$0xff] }
  0x3a   : > { %1320 = vmatpush.bf16.msra.mxu3 %v742_v35  ;;  %775 = vmatpush.bf16.msra.mxu0 %v742_v35  ;;  %v1633_v56 = vpack.c.bf16 %v726_v47, %v725_v44  ;;  %v581_v61 = vmul.f32 0.001953125, %v559_v52  ;;  %v437_v5 = vld [vmem:[%s2194_s3 + $0x1f8] sm:$0xff]  ;;  %v721_v10 = vld [vmem:[%s1612_s8 + $0x10] sm:$0xff]  ;;  %v509_v12 = vsel %vm454_vm0, %v429_v4, 0.0  ;;  %v564_v26 = vadd.f32 %v563_v14, %v562_v13  ;;  %v427_v47 = vld [vmem:[%s2194_s3 + $0x1a8] sm:$0xff] }
  0x3b   : > { %v589_v62 = vmul.f32 %v1631_v53, %v1631_v53  ;;  %v377_v15 = vld [vmem:[%s2194_s3 + $0x18] sm:$0xff]  ;;  %v565_v20 = vsel %vm454_vm0, %v437_v5, 0.0  ;;  %v510_v32 = vadd.f32 %v509_v12, %v508_v19  ;;  %v403_v52 = vld [vmem:[%s2194_s3 + $0xe8] sm:$0xff]  ;;  %v491_v60 = vsel %vm454_vm0, %v395_v41, 0.0  ;;  %v374_v41 = vld [vmem:[%s2194_s3] sm:$0xff] }
  0x3c   : > { %v385_v16 = vld [vmem:[%s2194_s3 + $0x58] sm:$0xff]  ;;  %v476_v23 = vsel %vm454_vm0, %v377_v15, 0.0  ;;  %v566_v38 = vadd.f32 %v565_v20, %v564_v26  ;;  %v492_v63 = vadd.f32 %v491_v60, %v490_v48  ;;  %v495_v0 = vsel %vm454_vm0, %v427_v47, 0.0  ;;  %v426_v15 = vld [vmem:[%s2194_s3 + $0x1a0] sm:$0xff] }
  0x3d   : > { %v597_v11 = vsub.f32 %v581_v61, %v589_v62  ;;  %v393_v17 = vld [vmem:[%s2194_s3 + $0x98] sm:$0xff]  ;;  %v532_v35 = vsel %vm454_vm0, %v385_v16, 0.0  ;;  %v1716_v44 = vmul.f32 0.001953125, %v510_v32  ;;  %v493_v61 = vsel %vm454_vm0, %v411_v42, 0.0  ;;  %v719_v32 = vld [vmem:[%s1612_s8] sm:$0xff] }
  0x3e   : > { %1321 = vmatpush.bf16.msra.mxu3 %v741_v46  ;;  %776 = vmatpush.bf16.msra.mxu0 %v741_v46  ;;  %v722_v18 = vld [vmem:[%s1612_s8 + $0x18] sm:$0xff]  ;;  %v477_v24 = vsel %vm454_vm0, %v393_v17, 0.0  ;;  %v387_v46 = vld [vmem:[%s2194_s3 + $0x68] sm:$0xff]  ;;  %v582_v49 = vmul.f32 0.001953125, %v566_v38  ;;  %v547_v6 = vsel %vm454_vm0, %v403_v52, 0.0  ;;  %v483_v16 = vsel %vm454_vm0, %v378_v2, 0.0 }
  0x3f   : > { %v401_v21 = vld [vmem:[%s2194_s3 + $0xd8] sm:$0xff]  ;;  %v605_v25 = vmax.f32 %v597_v11, 0.0  ;;  %v478_v29 = vadd.f32 %v477_v24, %v476_v23  ;;  %v1714_v43 = vpack.c.bf16 %v722_v18, %v721_v10  ;;  %v590_v58 = vmul.f32 %v1716_v44, %v1716_v44  ;;  %v434_v38 = vld [vmem:[%s2194_s3 + $0x1e0] sm:$0xff] }
  0x40   : > { %v409_v22 = vld [vmem:[%s2194_s3 + $0x118] sm:$0xff]  ;;  %v533_v36 = vsel %vm454_vm0, %v401_v21, 0.0  ;;  %v546_v1 = vsel %vm454_vm0, %v387_v46, 0.0  ;;  %v494_v10 = vadd.f32 %v493_v61, %v492_v63  ;;  %v484_v17 = vsel %vm454_vm0, %v394_v3, 0.0  ;;  %v390_v48 = vld [vmem:[%s2194_s3 + $0x80] sm:$0xff] }
  0x41   : > { %v417_v27 = vld [vmem:[%s2194_s3 + $0x158] sm:$0xff]  ;;  %v479_v30 = vsel %vm454_vm0, %v409_v22, 0.0  ;;  %v1706_v37 = vadd.f32 1e-05, %v605_v25  ;;  %v534_v40 = vadd.f32 %v533_v36, %v532_v35  ;;  %v598_v4 = vsub.f32 %v582_v49, %v590_v58  ;;  %v386_v25 = vld [vmem:[%s2194_s3 + $0x60] sm:$0xff] }
  0x42   : > { %1322 = vmatpush.bf16.msra.mxu3 %v740_v54  ;;  %777 = vmatpush.bf16.msra.mxu0 %v740_v54  ;;  %v425_v28 = vld [vmem:[%s2194_s3 + $0x198] sm:$0xff]  ;;  %v480_v39 = vadd.f32 %v479_v30, %v478_v29  ;;  %v535_v45 = vsel %vm454_vm0, %v417_v27, 0.0  ;;  %v419_v54 = vld [vmem:[%s2194_s3 + $0x168] sm:$0xff]  ;;  %v548_v11 = vadd.f32 %v547_v6, %v546_v1  ;;  %v485_v20 = vadd.f32 %v484_v17, %v483_v16  ;;  %v418_v29 = vld [vmem:[%s2194_s3 + $0x160] sm:$0xff] }
  0x43   : > { %v433_v33 = vld [vmem:[%s2194_s3 + $0x1d8] sm:$0xff]  ;;  %v481_v34 = vsel %vm454_vm0, %v425_v28, 0.0  ;;  %1396 = vrsqrt.f32 %v1706_v37  ;;  %v536_v59 = vadd.f32 %v535_v45, %v534_v40  ;;  %v549_v7 = vsel %vm454_vm0, %v419_v54, 0.0  ;;  %v402_v28 = vld [vmem:[%s2194_s3 + $0xe0] sm:$0xff] }
  0x44   : > { %v482_v50 = vadd.f32 %v481_v34, %v480_v39  ;;  %v537_v51 = vsel %vm454_vm0, %v433_v33, 0.0  ;;  %v606_v13 = vmax.f32 %v598_v4, 0.0  ;;  %v550_v19 = vadd.f32 %v549_v7, %v548_v11  ;;  %v720_v33 = vld [vmem:[%s1612_s8 + $0x8] sm:$0xff]  ;;  %v406_v54 = vld [vmem:[%s2194_s3 + $0x100] sm:$0xff]  ;;  %v444_v4 = vld [vmem:[%s2195_s4 + $0x30] sm:$0xff]  ;;  %s1307_s8 = sshll.u32 %s2219_s17, 8 }
  0x45   : > { %v538_v5 = vadd.f32 %v537_v51, %v536_v59  ;;  %v486_v21 = vsel %vm454_vm0, %v410_v8, 0.0  ;;  %vm681_vm1 = vweird.f32 %v1706_v37  ;;  %v488_v31 = vsel %vm454_vm0, %v426_v15, 0.0  ;;  %v398_v1 = vld [vmem:[%s2194_s3 + $0xc0] sm:$0xff]  ;;  %s2104_s30 = scalar_lea.vmem %s2197_s6, %s1307_s8 }
  0x46   : > { %1323 = vmatpush.bf16.msra.mxu3 %v739_v55  ;;  %778 = vmatpush.bf16.msra.mxu0 %v739_v55  ;;  %v435_v55 = vld [vmem:[%s2194_s3 + $0x1e8] sm:$0xff]  ;;  %v1741_v62 = vmul.f32 0.001953125, %v482_v50  ;;  %v1772_v23 = vadd.f32 1e-05, %v606_v13  ;;  %v487_v30 = vadd.f32 %v486_v21, %v485_v20  ;;  %v539_v40 = vsel %vm454_vm0, %v386_v25, 0.0  ;;  %v1308_v6 = vld [vmem:[%s2192_s1] sm:$0xff] }
  0x47   : > { %v551_v12 = vsel %vm454_vm0, %v435_v55, 0.0  ;;  %v578_v14 = vmul.f32 0.001953125, %v538_v5  ;;  %v540_v46 = vsel %vm454_vm0, %v402_v28, 0.0  ;;  %v542_v47 = vsel %vm454_vm0, %v418_v29, 0.0  ;;  %v422_v55 = vld [vmem:[%s2194_s3 + $0x180] sm:$0xff]  ;;  %v376_v29 = vld [vmem:[%s2194_s3 + $0x10] sm:$0xff] }
  0x48   : > { %v586_v9 = vmul.f32 %v1741_v62, %v1741_v62  ;;  %v552_v26 = vadd.f32 %v551_v12, %v550_v19  ;;  %1398 = vrsqrt.f32 %v1772_v23  ;;  %v489_v39 = vadd.f32 %v488_v31, %v487_v30  ;;  %v414_v13 = vld [vmem:[%s2194_s3 + $0x140] sm:$0xff] }
  0x49   : > { %v1766_v18 = vpop.eup %1396  ;;  %v735_v49 = vpack.c.bf16 %v720_v33, %v719_v32  ;;  %v541_v51 = vadd.f32 %v540_v46, %v539_v40  ;;  %v544_v59 = vsel %vm454_vm0, %v434_v38, 0.0  ;;  %v455_v60 = vsel %vm454_vm0, %v374_v41, 0.0  ;;  %v430_v21 = vld [vmem:[%s2194_s3 + $0x1c0] sm:$0xff]  ;;  %v392_v33 = vld [vmem:[%s2194_s3 + $0x90] sm:$0xff] }
  0x4a   : > { %1324 = vmatpush.bf16.msra.mxu3 %v1633_v56  ;;  %779 = vmatpush.bf16.msra.mxu0 %v1633_v56  ;;  %v496_v56 = vadd.f32 %v495_v0, %v494_v10  ;;  %v676_v22 = vmul.f32 %v1766_v18, %v1706_v37  ;;  %v594_v24 = vsub.f32 %v578_v14, %v586_v9  ;;  %vm682_vm2 = vweird.f32 %v1766_v18  ;;  %v382_v0 = vld [vmem:[%s2194_s3 + $0x40] sm:$0xff]  ;;  %v1309_v37 = vld [vmem:[%s2192_s1 + $0x8] sm:$0xff] }
  0x4b   : > { %v580_v35 = vmul.f32 0.001953125, %v552_v26  ;;  %v1811_v52 = vmul.f32 0.001953125, %v489_v39  ;;  %vm1826_vm3 = vmor %vm681_vm1, %vm682_vm2  ;;  %vm691_vm4 = vweird.f32 %v1772_v23  ;;  %v543_v63 = vadd.f32 %v542_v47, %v541_v51 }
  0x4c   : > { %v1779_v27 = vmul.f32 0.001953125, %v496_v56  ;;  %v677_v34 = vmul.f32 %v1766_v18, %v676_v22  ;;  %v456_v2 = vsel %vm454_vm0, %v390_v48, 0.0  ;;  %v458_v9 = vsel %vm454_vm0, %v406_v54, 0.0 }
  0x4d   : > { %v587_v7 = vmul.f32 %v1811_v52, %v1811_v52  ;;  %v457_v8 = vadd.f32 %v456_v2, %v455_v60  ;;  %v545_v12 = vadd.f32 %v544_v59, %v543_v63  ;;  %v460_v14 = vsel %vm454_vm0, %v422_v55, 0.0  ;;  %v384_v63 = vld [vmem:[%s2194_s3 + $0x50] sm:$0xff] }
  0x4e   : > { %1325 = vmatpush.bf16.msra.mxu3 %v1635_v57  ;;  %780 = vmatpush.bf16.msra.mxu0 %v1635_v57  ;;  %v602_v57 = vmax.f32 %v594_v24, 0.0  ;;  %v588_v36 = vmul.f32 %v1779_v27, %v1779_v27  ;;  %v678_v42 = vmul.f32 0.5, %v677_v34  ;;  %v1838_v3 = vpop.eup %1398  ;;  %v511_v17 = vsel %vm454_vm0, %v382_v0, 0.0  ;;  %v400_v2 = vld [vmem:[%s2194_s3 + $0xd0] sm:$0xff] }
  0x4f   : > { %v686_v10 = vmul.f32 %v1838_v3, %v1772_v23  ;;  %v459_v16 = vadd.f32 %v458_v9, %v457_v8  ;;  %v512_v56 = vsel %vm454_vm0, %v398_v1, 0.0  ;;  %vm692_vm6 = vweird.f32 %v1838_v3  ;;  %v445_v23 = vld [vmem:[%s2195_s4 + $0x38] sm:$0xff] }
  0x50   : > { %v1802_v45 = vadd.f32 1e-05, %v602_v57  ;;  %v596_v50 = vsub.f32 %v580_v35, %v588_v36  ;;  %v679_v58 = vsub.f32 1.5, %v678_v42  ;;  %v579_v24 = vmul.f32 0.001953125, %v545_v12  ;;  %vm1901_vm8 = vmor %vm691_vm4, %vm692_vm6  ;;  %v453_v8 = vld [vmem:[%s2196_s5 + $0x38] sm:$0xff] }
  0x51   : > { %v687_v20 = vmul.f32 %v1838_v3, %v686_v10  ;;  %v461_v25 = vadd.f32 %v460_v14, %v459_v16  ;;  %v513_v26 = vadd.f32 %v512_v56, %v511_v17  ;;  %v514_v28 = vsel %vm454_vm0, %v414_v13, 0.0  ;;  %v375_v56 = vld [vmem:[%s2194_s3 + $0x8] sm:$0xff] }
  0x52   : > { %1326 = vmatpush.bf16.msra.mxu3 %v1714_v43  ;;  %781 = vmatpush.bf16.msra.mxu0 %v1714_v43  ;;  %1400 = vrsqrt.f32 %v1802_v45  ;;  %v604_v61 = vmax.f32 %v596_v50, 0.0  ;;  %v680_v5 = vmul.f32 %v1766_v18, %v679_v58  ;;  %vm651_vm5 = vweird.f32 %v1802_v45 }
  0x53   : > { %v688_v31 = vmul.f32 0.5, %v687_v20  ;;  %v595_v34 = vsub.f32 %v579_v24, %v587_v7  ;;  %v515_v57 = vadd.f32 %v514_v28, %v513_v26  ;;  %v516_v35 = vsel %vm454_vm0, %v430_v21, 0.0  ;;  %v441_v20 = vld [vmem:[%s2195_s4 + $0x18] sm:$0xff]  ;;  %v407_v24 = vld [vmem:[%s2194_s3 + $0x108] sm:$0xff]  ;;  %v1310_v26 = vld [vmem:[%s2192_s1 + $0x10] sm:$0xff] }
  0x54   : > { %v1856_v11 = vadd.f32 1e-05, %v604_v61  ;;  %v684_v15 = vsel %vm1826_vm3, %v1766_v18, %v680_v5  ;;  %v452_v18 = vld [vmem:[%s2196_s5 + $0x30] sm:$0xff]  ;;  %v1890_v36 = vmul.f32 0.001953125, %v461_v25  ;;  %v469_v41 = vsel %vm454_vm0, %v376_v29, 0.0 }
  0x55   : > { %v701_v19 = vmul.f32 %v684_v15, %v444_v4  ;;  %v689_v39 = vsub.f32 1.5, %v688_v31  ;;  %v603_v46 = vmax.f32 %v595_v34, 0.0  ;;  %v517_v47 = vadd.f32 %v516_v35, %v515_v57 }
  0x56   : > { %1327 = vmatpush.bf16.msra.mxu3 %v735_v49  ;;  %782 = vmatpush.bf16.msra.mxu0 %v735_v49  ;;  %1402 = vrsqrt.f32 %v1856_v11  ;;  %v583_v48 = vmul.f32 %v1890_v36, %v1890_v36  ;;  %v424_v49 = vld [vmem:[%s2194_s3 + $0x190] sm:$0xff]  ;;  %v470_v50 = vsel %vm454_vm0, %v392_v33, 0.0  ;;  %vm671_vm9 = vweird.f32 %v1856_v11  ;;  %v423_v33 = vld [vmem:[%s2194_s3 + $0x188] sm:$0xff] }
  0x57   : > { %836 = vperm.xlu0 %1393, %v701_v19   ;;  %v709_v30 = vmul.f32 %v701_v19, %v1631_v53  ;;  %v408_v53 = vld [vmem:[%s2194_s3 + $0x110] sm:$0xff]  ;;  %v690_v54 = vmul.f32 %v1838_v3, %v689_v39  ;;  %v471_v59 = vadd.f32 %v470_v50, %v469_v41  ;;  %v1921_v43 = vadd.f32 1e-05, %v603_v46  ;;  %v391_v19 = vld [vmem:[%s2194_s3 + $0x88] sm:$0xff] }
  0x58   : > { %v1873_v22 = vpop.eup %1400  ;;  %v472_v55 = vsel %vm454_vm0, %v408_v53, 0.0  ;;  %v575_v61 = vmul.f32 0.001953125, %v517_v47  ;;  %v474_v5 = vsel %vm454_vm0, %v424_v49, 0.0  ;;  %v525_v13 = vsel %vm454_vm0, %v384_v63, 0.0  ;;  %v383_v39 = vld [vmem:[%s2194_s3 + $0x48] sm:$0xff] }
  0x59   : > { %788 = vmatmul.bf16.vlgmr.msra.gmra.mxu3 %v1309_v37  ;;  %783 = vmatmul.bf16.vlgmr.msra.gmra.mxu0 %v1308_v6  ;;  %v646_v32 = vmul.f32 %v1873_v22, %v1802_v45  ;;  %vm652_vm7 = vweird.f32 %v1873_v22  ;;  %v717_v38 = vsub.f32 %v452_v18, %v709_v30  ;;  %v694_v0 = vsel %vm1901_vm8, %v1838_v3, %v690_v54  ;;  %v416_v37 = vld [vmem:[%s2194_s3 + $0x150] sm:$0xff] }
  0x5a   : > { %v473_v4 = vadd.f32 %v472_v55, %v471_v59  ;;  %v702_v6 = vmul.f32 %v694_v0, %v445_v23  ;;  %vm1940_vm10 = vmor %vm651_vm5, %vm652_vm7  ;;  %1404 = vrsqrt.f32 %v1921_v43  ;;  %v591_v10 = vsub.f32 %v575_v61, %v583_v48  ;;  %v432_v45 = vld [vmem:[%s2194_s3 + $0x1d0] sm:$0xff]  ;;  %v415_v48 = vld [vmem:[%s2194_s3 + $0x148] sm:$0xff] }
  0x5b   : > { %v647_v40 = vmul.f32 %v1873_v22, %v646_v32  ;;  %884 = vperm.xlu1 %1395, %v717_v38   ;;  %v526_v16 = vsel %vm454_vm0, %v400_v2, 0.0  ;;  %v528_v17 = vsel %vm454_vm0, %v416_v37, 0.0  ;;  %v530_v29 = vsel %vm454_vm0, %v432_v45, 0.0  ;;  %v431_v23 = vld [vmem:[%s2194_s3 + $0x1c8] sm:$0xff] }
  0x5c   : > { %v1911_v51 = vpop.eup %1402  ;;  %v475_v12 = vadd.f32 %v474_v5, %v473_v4  ;;  %v710_v14 = vmul.f32 %v702_v6, %v1716_v44  ;;  %v599_v21 = vmax.f32 %v591_v10, 0.0  ;;  %v527_v18 = vadd.f32 %v526_v16, %v525_v13 }
  0x5d   : > { %v648_v58 = vmul.f32 0.5, %v647_v40  ;;  %v666_v60 = vmul.f32 %v1911_v51, %v1856_v11  ;;  %vm672_vm11 = vweird.f32 %v1911_v51  ;;  %v462_v34 = vsel %vm454_vm0, %v375_v56, 0.0  ;;  %v443_v11 = vld [vmem:[%s2195_s4 + $0x28] sm:$0xff] }
  0x5e   : > { %v718_v25 = vsub.f32 %v453_v8, %v710_v14  ;;  %v1977_v30 = vmul.f32 0.001953125, %v475_v12  ;;  %vm1983_vm12 = vmor %vm671_vm9, %vm672_vm11  ;;  %v1987_v31 = vadd.f32 1e-05, %v599_v21  ;;  %v529_v32 = vadd.f32 %v528_v17, %v527_v18  ;;  %v399_v40 = vld [vmem:[%s2194_s3 + $0xc8] sm:$0xff]  ;;  %v1311_v18 = vld [vmem:[%s2192_s1 + $0x18] sm:$0xff] }
  0x5f   : > { %v649_v1 = vsub.f32 1.5, %v648_v58  ;;  %v667_v3 = vmul.f32 %v1911_v51, %v666_v60  ;;  %841 = vperm.xlu0 %1393, %v702_v6   ;;  %v463_v57 = vsel %vm454_vm0, %v391_v19, 0.0  ;;  %v465_v42 = vsel %vm454_vm0, %v407_v24, 0.0 }
  0x60   : > { %v1405_v35 = vpop.eup %1404  ;;  %v464_v41 = vadd.f32 %v463_v57, %v462_v34  ;;  %vm661_vm13 = vweird.f32 %v1921_v43  ;;  %1406 = vrsqrt.f32 %v1987_v31  ;;  %v585_v47 = vmul.f32 %v1977_v30, %v1977_v30  ;;  %v450_v57 = vld [vmem:[%s2196_s5 + $0x20] sm:$0xff] }
  0x61   : > { %v650_v9 = vmul.f32 %v1873_v22, %v649_v1  ;;  %v668_v15 = vmul.f32 0.5, %v667_v3  ;;  %v656_v46 = vmul.f32 %v1405_v35, %v1921_v43  ;;  %v531_v50 = vadd.f32 %v530_v29, %v529_v32 }
  0x62   : > { %v466_v54 = vadd.f32 %v465_v42, %v464_v41  ;;  %v467_v58 = vsel %vm454_vm0, %v423_v33, 0.0  ;;  %v518_v60 = vsel %vm454_vm0, %v383_v39, 0.0  ;;  %v519_v61 = vsel %vm454_vm0, %v399_v40, 0.0  ;;  %v440_v41 = vld [vmem:[%s2195_s4 + $0x10] sm:$0xff] }
  0x63   : > { %v654_v44 = vsel %vm1940_vm10, %v1873_v22, %v650_v9  ;;  %v669_v28 = vsub.f32 1.5, %v668_v15  ;;  %889 = vperm.xlu1 %1395, %v718_v25   ;;  %v657_v55 = vmul.f32 %v1405_v35, %v656_v46  ;;  %v577_v63 = vmul.f32 0.001953125, %v531_v50  ;;  %v438_v25 = vld [vmem:[%s2195_s4] sm:$0xff] }
  0x64   : > { %v1994_v53 = vmul.f32 %v654_v44, %v441_v20  ;;  %v468_v0 = vadd.f32 %v467_v58, %v466_v54  ;;  %v520_v1 = vadd.f32 %v519_v61, %v518_v60  ;;  %v521_v2 = vsel %vm454_vm0, %v415_v48, 0.0  ;;  %v449_v58 = vld [vmem:[%s2196_s5 + $0x18] sm:$0xff] }
  0x65   : > { %v670_v38 = vmul.f32 %v1911_v51, %v669_v28  ;;  %v658_v4 = vmul.f32 0.5, %v657_v55  ;;  %vm662_vm14 = vweird.f32 %v1405_v35  ;;  %v523_v5 = vsel %vm454_vm0, %v431_v23, 0.0  ;;  %v439_v55 = vld [vmem:[%s2195_s4 + $0x8] sm:$0xff] }
  0x66   : > { %v593_v6 = vsub.f32 %v577_v63, %v585_v47  ;;  %v522_v7 = vadd.f32 %v521_v2, %v520_v1  ;;  %v2031_v3 = vmul.f32 0.001953125, %v468_v0  ;;  %v1407_v8 = vpop.eup %1406  ;;  %vm663_vm15 = vmor %vm661_vm13, %vm662_vm14  ;;  %vm621_vm1 = vweird.f32 %v1987_v31  ;;  %v447_v63 = vld [vmem:[%s2196_s5 + $0x8] sm:$0xff]  ;;  %v446_v1 = vld [vmem:[%s2196_s5] sm:$0xff] }
  0x67   : > { %v674_v49 = vsel %vm1983_vm12, %v1911_v51, %v670_v38  ;;  %821 = vperm.xlu0 %1393, %v1994_v53   ;;  %v451_v51 = vld [vmem:[%s2196_s5 + $0x28] sm:$0xff]  ;;  %v659_v10 = vsub.f32 1.5, %v658_v4  ;;  %v616_v45 = vmul.f32 %v1407_v8, %v1987_v31  ;;  %vm622_vm2 = vweird.f32 %v1407_v8 }
  0x68   : > { %v700_v59 = vmul.f32 %v674_v49, %v443_v11  ;;  %v601_v12 = vmax.f32 %v593_v6, 0.0  ;;  %v524_v13 = vadd.f32 %v523_v5, %v522_v7  ;;  %v584_v15 = vmul.f32 %v2031_v3, %v2031_v3  ;;  %vm623_vm3 = vmor %vm621_vm1, %vm622_vm2  ;;  %v448_v49 = vld [vmem:[%s2196_s5 + $0x10] sm:$0xff] }
  0x69   : > { %793 = vmatmul.bf16.gmra.mxu3 %v1310_v26  ;;  %v660_v14 = vmul.f32 %v1405_v35, %v659_v10  ;;  %v617_v16 = vmul.f32 %v1407_v8, %v616_v45  ;;  %v706_v54 = vmul.f32 %v1994_v53, %v1741_v62  ;;  %vm968_vm10 = vcmask 523264  }
  0x6a   : > { %v708_v37 = vmul.f32 %v700_v59, %v1779_v27  ;;  %v442_v27 = vld [vmem:[%s2195_s4 + $0x20] sm:$0xff]  ;;  %v609_v17 = vadd.f32 1e-05, %v601_v12  ;;  %v576_v56 = vmul.f32 0.001953125, %v524_v13 }
  0x6b   : > { %v664_v19 = vsel %vm663_vm15, %v1405_v35, %v660_v14  ;;  %v618_v20 = vmul.f32 0.5, %v617_v16 }
  0x6c   : > { %v716_v9 = vsub.f32 %v451_v51, %v708_v37  ;;  %v699_v43 = vmul.f32 %v664_v19, %v442_v27  ;;  %1408 = vrsqrt.f32 %v609_v17  ;;  %v592_v44 = vsub.f32 %v576_v56, %v584_v15 }
  0x6d   : > { %v619_v21 = vsub.f32 1.5, %v618_v20  ;;  %vm641_vm4 = vweird.f32 %v609_v17  ;;  %v714_v51 = vsub.f32 %v449_v58, %v706_v54 }
  0x6e   : > { %879 = vperm.xlu1 %1395, %v716_v9   ;;  %826 = vperm.xlu2 %1394, %v699_v43   ;;  %v600_v24 = vmax.f32 %v592_v44, 0.0  ;;  %v707_v33 = vmul.f32 %v699_v43, %v1811_v52 }
  0x6f   : > { %v620_v26 = vmul.f32 %v1407_v8, %v619_v21 }
  0x70   : > { %v608_v28 = vadd.f32 1e-05, %v600_v24  ;;  %v715_v39 = vsub.f32 %v450_v57, %v707_v33 }
  0x71   : > { %v624_v22 = vsel %vm623_vm3, %v1407_v8, %v620_v26 }
  0x72   : > { %v1409_v29 = vpop.eup %1408  ;;  %v695_v31 = vmul.f32 %v624_v22, %v438_v25  ;;  %1410 = vrsqrt.f32 %v608_v28  ;;  %vm631_vm7 = vweird.f32 %v608_v28 }
  0x73   : > { %v636_v32 = vmul.f32 %v1409_v29, %v609_v17  ;;  %vm642_vm5 = vweird.f32 %v1409_v29 }
  0x74   : > { %806 = vperm.xlu0 %1393, %v695_v31   ;;  %vm643_vm6 = vmor %vm641_vm4, %vm642_vm5  ;;  %v703_v53 = vmul.f32 %v695_v31, %v1890_v36 }
  0x75   : > { %v637_v34 = vmul.f32 %v1409_v29, %v636_v32 }
  0x76   : > { %831 = vperm.xlu2 %1394, %v700_v59   ;;  %v711_v2 = vsub.f32 %v446_v1, %v703_v53 }
  0x77   : > { %v638_v35 = vmul.f32 0.5, %v637_v34 }
  0x78   : > { %v1411_v11 = vpop.eup %1410 }
  0x79   : > { %798 = vmatmul.bf16.gmra.mxu3 %v1311_v18  ;;  %v639_v38 = vsub.f32 1.5, %v638_v35  ;;  %v626_v40 = vmul.f32 %v1411_v11, %v608_v28  ;;  %vm632_vm8 = vweird.f32 %v1411_v11 }
  0x7a   : > { %vm633_vm9 = vmor %vm631_vm7, %vm632_vm8 }
  0x7b   : > { %v640_v52 = vmul.f32 %v1409_v29, %v639_v38  ;;  %v627_v42 = vmul.f32 %v1411_v11, %v626_v40 }
  0x7c   : > { %874 = vperm.xlu0 %1393, %v715_v39  }
  0x7d   : > { %v644_v46 = vsel %vm643_vm6, %v1409_v29, %v640_v52  ;;  %v628_v48 = vmul.f32 0.5, %v627_v42 }
  0x7e   : > { %v697_v47 = vmul.f32 %v644_v46, %v440_v41 }
  0x7f   : > { %v629_v23 = vsub.f32 1.5, %v628_v48 }
  0x80   : > { %v705_v50 = vmul.f32 %v697_v47, %v1977_v30  ;;  %816 = vperm.xlu2 %1394, %v697_v47  }
  0x81   : > { %v630_v60 = vmul.f32 %v1411_v11, %v629_v23 }
  0x82   : > { %v713_v59 = vsub.f32 %v448_v49, %v705_v50 }
  0x83   : > { %v634_v61 = vsel %vm633_vm9, %v1411_v11, %v630_v60  ;;  %v1316_v60 = vld [vmem:[%s2193_s2 + $0x20] sm:$0xff] }
  0x84   : > { %864 = vperm.xlu1 %1395, %v713_v59   ;;  %v696_v30 = vmul.f32 %v634_v61, %v439_v55  ;;  %v1312_v59 = vld [vmem:[%s2193_s2] sm:$0xff]  ;;  %v1313_v55 = vld [vmem:[%s2193_s2 + $0x8] sm:$0xff]  ;;  %v1314_v61 = vld [vmem:[%s2193_s2 + $0x10] sm:$0xff] }
  0x86   : > { %v704_v62 = vmul.f32 %v696_v30, %v2031_v3 }
  0x88   : > { %869 = vperm.xlu2 %1394, %v714_v51   ;;  %v712_v0 = vsub.f32 %v447_v63, %v704_v62  ;;  %v1317_v51 = vld [vmem:[%s2193_s2 + $0x28] sm:$0xff]  ;;  %v1318_v63 = vld [vmem:[%s2193_s2 + $0x30] sm:$0xff]  ;;  %v1319_v62 = vld [vmem:[%s2193_s2 + $0x38] sm:$0xff] }
  0x8a   : > { %859 = vperm.xlu0 %1393, %v712_v0  }
  0x8c   : > { %811 = vperm.xlu1 %1395, %v696_v30   ;;  %v1315_v30 = vld [vmem:[%s2193_s2 + $0x18] sm:$0xff] }
  0x90   : > { %854 = vperm.xlu2 %1394, %v711_v2  }
  0xc8   : > { %v827_v8 = vpop.permute.xlu2 %826 }
  0xc9   : > { %v837_v37 = vpop.permute.xlu0 %836 }
  0xcd   : > { %v885_v5 = vpop.permute.xlu1 %884 }
  0xd0   : > { %v832_v45 = vpop.permute.xlu2 %831 }
  0xd1   : > { %v842_v6 = vpop.permute.xlu0 %841 }
  0xd5   : > { %v890_v9 = vpop.permute.xlu1 %889 }
  0xd6   : > { %v784_v16 = vpop.f32.mrf.mxu0 }
  0xd9   : > { %v822_v10 = vpop.permute.xlu0 %821 }
  0xda   : > { %v817_v27 = vpop.permute.xlu2 %816 }
  0xdc   : > { %v789_v4 = vpop.f32.mrf.mxu3 }
  0xdd   : > { %v846_v26 = vmul.f32 %v817_v27, %v789_v4 }
  0xde   : > { %v786_v33 = vpop.f32.mrf.mxu0 }
  0xe0   : > { %v880_v12 = vpop.permute.xlu1 %879 }
  0xe2   : > { %v870_v43 = vpop.permute.xlu2 %869 }
  0xe4   : > { %v791_v7 = vpop.f32.mrf.mxu3 }
  0xe5   : > { %v847_v28 = vmul.f32 %v822_v10, %v791_v7 }
  0xe6   : > { %v807_v13 = vpop.permute.xlu0 %806 }
  0xe7   : > { %v895_v38 = vadd.f32 %v870_v43, %v847_v28  ;;  %v844_v39 = vmul.f32 %v807_v13, %v784_v16 }
  0xe9   : > { %v903_v48 = vmax.f32 %v895_v38, 0.0 }
  0xea   : > { %v855_v52 = vpop.permute.xlu2 %854 }
  0xeb   : > { %v892_v49 = vadd.f32 %v855_v52, %v844_v39 }
  0xec   : > { %v794_v3 = vpop.f32.mrf.mxu3 }
  0xed   : > { %v848_v44 = vmul.f32 %v827_v8, %v794_v3  ;;  %v900_v54 = vmax.f32 %v892_v49, 0.0 }
  0xee   : > { %v875_v56 = vpop.permute.xlu0 %874 }
  0xef   : > { %v896_v29 = vadd.f32 %v875_v56, %v848_v44 }
  0xf1   : > { %v904_v40 = vmax.f32 %v896_v29, 0.0 }
  0xf4   : > { %v796_v36 = vpop.f32.mrf.mxu3 }
  0xf5   : > { %v849_v19 = vmul.f32 %v832_v45, %v796_v36 }
  0xf6   : > { %v865_v15 = vpop.permute.xlu1 %864 }
  0xf7   : > { %v897_v24 = vadd.f32 %v880_v12, %v849_v19  ;;  %v894_v34 = vadd.f32 %v865_v15, %v846_v26 }
  0xf9   : > { %v905_v57 = vmax.f32 %v897_v24, 0.0  ;;  %v902_v42 = vmax.f32 %v894_v34, 0.0 }
  0xfb   : > { %v926_v47 = vpack.c.bf16 %v905_v57, %v904_v40  ;;  %v925_v50 = vpack.c.bf16 %v903_v48, %v902_v42 }
  0xfc   : > { %v799_v14 = vpop.f32.mrf.mxu3  ;;  %v860_v11 = vpop.permute.xlu0 %859 }
  0xfd   : > { %v850_v17 = vmul.f32 %v837_v37, %v799_v14 }
  0xfe   : > { %v812_v32 = vpop.permute.xlu1 %811 }
  0xff   : > { %v898_v21 = vadd.f32 %v885_v5, %v850_v17  ;;  %v845_v41 = vmul.f32 %v812_v32, %v786_v33 }
 0x101   : > { %v906_v22 = vmax.f32 %v898_v21, 0.0  ;;  %v893_v46 = vadd.f32 %v860_v11, %v845_v41 }
 0x103   : > { %v901_v23 = vmax.f32 %v893_v46, 0.0 }
 0x104   : > { %v801_v20 = vpop.f32.mrf.mxu3 }
 0x105   : > { %v851_v18 = vmul.f32 %v842_v6, %v801_v20  ;;  %v924_v58 = vpack.c.bf16 %v901_v23, %v900_v54 }
 0x107   : > { %v899_v25 = vadd.f32 %v890_v9, %v851_v18 }
 0x109   : > { %v907_v31 = vmax.f32 %v899_v25, 0.0 }
 0x10b   : > { %v927_v35 = vpack.c.bf16 %v907_v31, %v906_v22 }
 0x10d   : > { %997 = vmatpush.bf16.msrb.mxu0 %v927_v35  ;;  %1328 = vmatpush.bf16.msra.mxu1 %v927_v35 }
 0x10e   : > { %1329 = vmatpush.bf16.msra.mxu2 %v927_v35 }
 0x111   : > { %998 = vmatpush.bf16.msrb.mxu0 %v926_v47  ;;  %1330 = vmatpush.bf16.msra.mxu1 %v926_v47 }
 0x112   : > { %1331 = vmatpush.bf16.msra.mxu2 %v926_v47 }
 0x115   : > { %999 = vmatpush.bf16.msrb.mxu0 %v925_v50  ;;  %1332 = vmatpush.bf16.msra.mxu1 %v925_v50 }
 0x116   : > { %1333 = vmatpush.bf16.msra.mxu2 %v925_v50 }
 0x119   : > { %1000 = vmatpush.bf16.msrb.mxu0 %v924_v58  ;;  %1334 = vmatpush.bf16.msra.mxu1 %v924_v58 }
 0x11a   : > { %1335 = vmatpush.bf16.msra.mxu2 %v924_v58 }
 0x11c   : > { %1297 = vmatmul.msk.bf16.vlgmr.msrb.gmra.mxu0 %vm968_vm10, %v1312_v59  ;;  %1298 = vmatmul.msk.bf16.vlgmr.msra.gmra.mxu1 %vm968_vm10, %v1313_v55 }
 0x11d   : > { %1301 = vmatmul.msk.bf16.vlgmr.msra.gmra.mxu2 %vm968_vm10, %v1316_v60 }
 0x12c   : > { %1299 = vmatmul.msk.bf16.gmra.mxu1 %vm968_vm10, %v1314_v61 }
 0x12d   : > { %1302 = vmatmul.msk.bf16.gmra.mxu2 %vm968_vm10, %v1317_v51 }
 0x13c   : > { %1300 = vmatmul.msk.bf16.gmra.mxu1 %vm968_vm10, %v1315_v30 }
 0x13d   : > { %1303 = vmatmul.msk.bf16.gmra.mxu2 %vm968_vm10, %v1318_v63 }
 0x14d   : > { %1304 = vmatmul.msk.bf16.gmra.mxu2 %vm968_vm10, %v1319_v62 }
 0x199   : > { %v1002_v53 = vpop.f32.mrf.mxu0  ;;  %v1007_v0 = vpop.f32.mrf.mxu1 }
 0x19a   : > { %1046 = vadd.xlane.f32.xlu0 %v1007_v0  ;;  %1042 = vadd.xlane.f32.xlu1 %v1002_v53  ;;  %v1076_v1 = vmul.f32 %v1007_v0, %v1007_v0  ;;  %v1074_v2 = vmul.f32 %v1002_v53, %v1002_v53 }
 0x1a0   : > { %v1022_v37 = vpop.f32.mrf.mxu2 }
 0x1a1   : > { %1058 = vadd.xlane.f32.xlu2 %v1022_v37  ;;  %v1009_v4 = vpop.f32.mrf.mxu1  ;;  %v1004_v5 = vpop.f32.mrf.mxu0  ;;  %v1082_v7 = vmul.f32 %v1022_v37, %v1022_v37 }
 0x1a2   : > { %1094 = vadd.xlane.f32.xlu0 %v1076_v1  ;;  %1090 = vadd.xlane.f32.xlu1 %v1074_v2  ;;  %v1077_v8 = vmul.f32 %v1009_v4, %v1009_v4  ;;  %v1075_v36 = vmul.f32 %v1004_v5, %v1004_v5 }
 0x1a8   : > { %v1024_v6 = vpop.f32.mrf.mxu2 }
 0x1a9   : > { %1044 = vadd.xlane.f32.xlu2 %v1004_v5  ;;  %v1012_v9 = vpop.f32.mrf.mxu1  ;;  %v1083_v13 = vmul.f32 %v1024_v6, %v1024_v6 }
 0x1aa   : > { %1106 = vadd.xlane.f32.xlu0 %v1082_v7  ;;  %1096 = vadd.xlane.f32.xlu1 %v1077_v8  ;;  %v1078_v27 = vmul.f32 %v1012_v9, %v1012_v9 }
 0x1b0   : > { %v1027_v3 = vpop.f32.mrf.mxu2 }
 0x1b1   : > { %1048 = vadd.xlane.f32.xlu2 %v1009_v4  ;;  %v1014_v10 = vpop.f32.mrf.mxu1  ;;  %v1084_v19 = vmul.f32 %v1027_v3, %v1027_v3 }
 0x1b2   : > { %1060 = vadd.xlane.f32.xlu0 %v1024_v6  ;;  %1050 = vadd.xlane.f32.xlu1 %v1012_v9  ;;  %v1079_v45 = vmul.f32 %v1014_v10, %v1014_v10 }
 0x1b8   : > { %v1029_v12 = vpop.f32.mrf.mxu2 }
 0x1b9   : > { %1092 = vadd.xlane.f32.xlu2 %v1075_v36  ;;  %v1017_v14 = vpop.f32.mrf.mxu1  ;;  %v1085_v56 = vmul.f32 %v1029_v12, %v1029_v12 }
 0x1ba   : > { %1100 = vadd.xlane.f32.xlu0 %v1079_v45  ;;  %1108 = vadd.xlane.f32.xlu1 %v1083_v13  ;;  %v1080_v16 = vmul.f32 %v1017_v14, %v1017_v14 }
 0x1c0   : > { %v1032_v15 = vpop.f32.mrf.mxu2 }
 0x1c1   : > { %1098 = vadd.xlane.f32.xlu2 %v1078_v27  ;;  %v1019_v20 = vpop.f32.mrf.mxu1  ;;  %v1086_v21 = vmul.f32 %v1032_v15, %v1032_v15 }
 0x1c2   : > { %1054 = vadd.xlane.f32.xlu0 %v1017_v14  ;;  %1062 = vadd.xlane.f32.xlu1 %v1027_v3  ;;  %v1081_v24 = vmul.f32 %v1019_v20, %v1019_v20 }
 0x1c8   : > { %v1034_v17 = vpop.f32.mrf.mxu2 }
 0x1c9   : > { %1052 = vadd.xlane.f32.xlu2 %v1014_v10  ;;  %v1087_v26 = vmul.f32 %v1034_v17, %v1034_v17 }
 0x1ca   : > { %1112 = vadd.xlane.f32.xlu0 %v1085_v56  ;;  %1102 = vadd.xlane.f32.xlu1 %v1080_v16 }
 0x1d0   : > { %v1037_v43 = vpop.f32.mrf.mxu2 }
 0x1d1   : > { %1110 = vadd.xlane.f32.xlu2 %v1084_v19  ;;  %v1088_v18 = vmul.f32 %v1037_v43, %v1037_v43 }
 0x1d2   : > { %1066 = vadd.xlane.f32.xlu0 %v1032_v15  ;;  %1056 = vadd.xlane.f32.xlu1 %v1019_v20 }
 0x1d8   : > { %v1039_v44 = vpop.f32.mrf.mxu2 }
 0x1d9   : > { %1064 = vadd.xlane.f32.xlu2 %v1029_v12  ;;  %v1089_v25 = vmul.f32 %v1039_v44, %v1039_v44 }
 0x1da   : > { %1072 = vadd.xlane.f32.xlu0 %v1039_v44  ;;  %1114 = vadd.xlane.f32.xlu1 %v1086_v21 }
 0x1e1   : > { %1104 = vadd.xlane.f32.xlu2 %v1081_v24 }
 0x1e2   : > { %1118 = vadd.xlane.f32.xlu0 %v1088_v18  ;;  %1068 = vadd.xlane.f32.xlu1 %v1034_v17 }
 0x1e9   : > { %1070 = vadd.xlane.f32.xlu2 %v1037_v43 }
 0x1ea   : > { %1120 = vadd.xlane.f32.xlu1 %v1089_v25 }
 0x1f1   : > { %1116 = vadd.xlane.f32.xlu2 %v1087_v26 }
 0x20d   : > { %v1047_v28 = vpop.xlane.xlu0 %1046  ;;  %v1043_v29 = vpop.xlane.xlu1 %1042 }
 0x20e   : > { %1124 = vst.msk [vmem:[%s2104_s30 + $0x10] sm:$0xff] %vm454_vm0, %v1047_v28 }
 0x20f   : > { %1122 = vst.msk [vmem:[%s2104_s30] sm:$0xff] %vm454_vm0, %v1043_v29 }
 0x214   : > { %v1059_v22 = vpop.xlane.xlu2 %1058 }
 0x215   : > { %1130 = vst.msk [vmem:[%s2104_s30 + $0x40] sm:$0xff] %vm454_vm0, %v1059_v22  ;;  %v1095_v31 = vpop.xlane.xlu0 %1094  ;;  %v1091_v32 = vpop.xlane.xlu1 %1090 }
 0x216   : > { %1140 = vst.msk [vmem:[%s2104_s30 + $0x90] sm:$0xff] %vm454_vm0, %v1095_v31 }
 0x217   : > { %1138 = vst.msk [vmem:[%s2104_s30 + $0x80] sm:$0xff] %vm454_vm0, %v1091_v32 }
 0x21c   : > { %v1045_v33 = vpop.xlane.xlu2 %1044 }
 0x21d   : > { %1123 = vst.msk [vmem:[%s2104_s30 + $0x8] sm:$0xff] %vm454_vm0, %v1045_v33  ;;  %v1107_v34 = vpop.xlane.xlu0 %1106  ;;  %v1097_v57 = vpop.xlane.xlu1 %1096 }
 0x21e   : > { %1146 = vst.msk [vmem:[%s2104_s30 + $0xc0] sm:$0xff] %vm454_vm0, %v1107_v34 }
 0x21f   : > { %1141 = vst.msk [vmem:[%s2104_s30 + $0x98] sm:$0xff] %vm454_vm0, %v1097_v57 }
 0x224   : > { %v1049_v35 = vpop.xlane.xlu2 %1048 }
 0x225   : > { %1125 = vst.msk [vmem:[%s2104_s30 + $0x18] sm:$0xff] %vm454_vm0, %v1049_v35  ;;  %v1061_v11 = vpop.xlane.xlu0 %1060  ;;  %v1051_v38 = vpop.xlane.xlu1 %1050 }
 0x226   : > { %1131 = vst.msk [vmem:[%s2104_s30 + $0x48] sm:$0xff] %vm454_vm0, %v1061_v11 }
 0x227   : > { %1126 = vst.msk [vmem:[%s2104_s30 + $0x20] sm:$0xff] %vm454_vm0, %v1051_v38 }
 0x22c   : > { %v1093_v39 = vpop.xlane.xlu2 %1092 }
 0x22d   : > { %1139 = vst.msk [vmem:[%s2104_s30 + $0x88] sm:$0xff] %vm454_vm0, %v1093_v39  ;;  %v1101_v40 = vpop.xlane.xlu0 %1100  ;;  %v1109_v41 = vpop.xlane.xlu1 %1108 }
 0x22e   : > { %1143 = vst.msk [vmem:[%s2104_s30 + $0xa8] sm:$0xff] %vm454_vm0, %v1101_v40 }
 0x22f   : > { %1147 = vst.msk [vmem:[%s2104_s30 + $0xc8] sm:$0xff] %vm454_vm0, %v1109_v41 }
 0x234   : > { %v1099_v52 = vpop.xlane.xlu2 %1098 }
 0x235   : > { %1142 = vst.msk [vmem:[%s2104_s30 + $0xa0] sm:$0xff] %vm454_vm0, %v1099_v52  ;;  %v1055_v42 = vpop.xlane.xlu0 %1054  ;;  %v1063_v46 = vpop.xlane.xlu1 %1062 }
 0x236   : > { %1128 = vst.msk [vmem:[%s2104_s30 + $0x30] sm:$0xff] %vm454_vm0, %v1055_v42 }
 0x237   : > { %1132 = vst.msk [vmem:[%s2104_s30 + $0x50] sm:$0xff] %vm454_vm0, %v1063_v46 }
 0x23c   : > { %v1053_v47 = vpop.xlane.xlu2 %1052 }
 0x23d   : > { %1127 = vst.msk [vmem:[%s2104_s30 + $0x28] sm:$0xff] %vm454_vm0, %v1053_v47  ;;  %v1113_v48 = vpop.xlane.xlu0 %1112  ;;  %v1103_v49 = vpop.xlane.xlu1 %1102 }
 0x23e   : > { %1149 = vst.msk [vmem:[%s2104_s30 + $0xd8] sm:$0xff] %vm454_vm0, %v1113_v48 }
 0x23f   : > { %1144 = vst.msk [vmem:[%s2104_s30 + $0xb0] sm:$0xff] %vm454_vm0, %v1103_v49 }
 0x244   : > { %v1111_v50 = vpop.xlane.xlu2 %1110 }
 0x245   : > { %1148 = vst.msk [vmem:[%s2104_s30 + $0xd0] sm:$0xff] %vm454_vm0, %v1111_v50  ;;  %v1067_v23 = vpop.xlane.xlu0 %1066  ;;  %v1057_v54 = vpop.xlane.xlu1 %1056 }
 0x246   : > { %1134 = vst.msk [vmem:[%s2104_s30 + $0x60] sm:$0xff] %vm454_vm0, %v1067_v23 }
 0x247   : > { %1129 = vst.msk [vmem:[%s2104_s30 + $0x38] sm:$0xff] %vm454_vm0, %v1057_v54 }
 0x24c   : > { %v1065_v58 = vpop.xlane.xlu2 %1064 }
 0x24d   : > { %1133 = vst.msk [vmem:[%s2104_s30 + $0x58] sm:$0xff] %vm454_vm0, %v1065_v58  ;;  %v1073_v59 = vpop.xlane.xlu0 %1072  ;;  %v1115_v55 = vpop.xlane.xlu1 %1114 }
 0x24e   : > { %1137 = vst.msk [vmem:[%s2104_s30 + $0x78] sm:$0xff] %vm454_vm0, %v1073_v59 }
 0x24f   : > { %1150 = vst.msk [vmem:[%s2104_s30 + $0xe0] sm:$0xff] %vm454_vm0, %v1115_v55 }
 0x254   : > { %v1105_v60 = vpop.xlane.xlu2 %1104 }
 0x255   : > { %1145 = vst.msk [vmem:[%s2104_s30 + $0xb8] sm:$0xff] %vm454_vm0, %v1105_v60  ;;  %v1119_v61 = vpop.xlane.xlu0 %1118  ;;  %v1069_v51 = vpop.xlane.xlu1 %1068 }
 0x256   : > { %1152 = vst.msk [vmem:[%s2104_s30 + $0xf0] sm:$0xff] %vm454_vm0, %v1119_v61 }
 0x257   : > { %1135 = vst.msk [vmem:[%s2104_s30 + $0x68] sm:$0xff] %vm454_vm0, %v1069_v51 }
 0x25c   : > { %v1071_v30 = vpop.xlane.xlu2 %1070 }
 0x25d   : > { %1136 = vst.msk [vmem:[%s2104_s30 + $0x70] sm:$0xff] %vm454_vm0, %v1071_v30  ;;  %v1121_v63 = vpop.xlane.xlu1 %1120 }
 0x25e   : > { %1153 = vst.msk [vmem:[%s2104_s30 + $0xf8] sm:$0xff] %vm454_vm0, %v1121_v63 }
 0x264   : > { %v1117_v62 = vpop.xlane.xlu2 %1116 }
 0x265   : > { %1151 = vst.msk [vmem:[%s2104_s30 + $0xe8] sm:$0xff] %vm454_vm0, %v1117_v62 }
 0x266 PF: > { %s16_s27 = sadd.s32 1, %s1466_s27   ;;  %s2206_s21 = smov %s1446_s22 }
 0x267   : > { %p13_p11 = scmp.ge.s32.totalorder %s16_s27, 6   ;;  %s2207_s22 = smov %s1555_s10 }
 0x268   : > { %s2208_s23 = smov %s1458_s25  ;;  %s2209_s24 = smov %s1462_s26 }
 0x269   : > { %s2210_s25 = smov %s2213_s28  ;;  %s2211_s26 = smov %s2217_s29 }
 0x26a   :  { %15 = sbr.rel (!%p13_p11) target bundleno = 4 (0x4), region = 117 }

// kernel: multi_scale_combiner_forward.5
= control target key start
LH: loop header
LB: loop body
LE: loop exit
PB: predicated region body
PF: predicated region fallthrough
CT: control target
= control target key end

     0   :  { %s2543_s30 = smov 0   ;;  %s2545_s10 = smov 0   ;;  %s4406_s0 = inlined_call_operand.vmem [shape: f32[2,128,256], index: 0, kind: input, shape index: {}]   ;;  %s4407_s1 = inlined_call_operand.vmem [shape: bf16[64,128], index: 1, kind: input, shape index: {}]   ;;  %s4408_s2 = inlined_call_operand.vmem [shape: bf16[128,64], index: 2, kind: input, shape index: {}]   ;;  %s4409_s3 = inlined_call_operand.vmem [shape: f32[4,128,1], index: 3, kind: input, shape index: {}]   ;;  %s4410_s4 = inlined_call_operand.vmem [shape: f32[64,1], index: 4, kind: input, shape index: {}]   ;;  %s4411_s5 = inlined_call_operand.vmem [shape: f32[64,1], index: 5, kind: input, shape index: {}]   ;;  %s4412_s6 = inlined_call_operand.vmem [shape: f32[4,256,1], index: 6, kind: input, shape index: {}]   ;;  %s4413_s7 = inlined_call_operand.vmem [shape: f32[128,1], index: 7, kind: input, shape index: {}]   ;;  %s4414_s8 = inlined_call_operand.vmem [shape: f32[128,1], index: 8, kind: input, shape index: {}]   ;;  %s4415_s9 = inlined_call_operand.vmem [shape: f32[2,128,256], index: 9, kind: output, shape index: {}]  }
   0x1   :  { %s2547_s11 = smov 0   ;;  %s2549_s12 = smov 0  }
   0x2   :  { %s2551_s13 = smov 0   ;;  %s2553_s14 = smov 0  }
   0x3   :  { %s2555_s15 = smov 0  }
   0x4 LB: > { %s28_s16 = sadd.s32 1, %s2482_s13  ;;  %s31_s17 = sadd.s32 1, %s2486_s14  ;;  %s2490_s15 = sphi %s2555_s15, %s19_s15   ;;  %s2486_s14 = sphi %s2553_s14, %s4465_s14   ;;  %s2482_s13 = sphi %s2551_s13, %s4464_s13   ;;  %s2478_s12 = sphi %s2549_s12, %s4463_s12   ;;  %s2474_s11 = sphi %s2547_s11, %s4462_s11   ;;  %s2470_s10 = sphi %s2545_s10, %s4461_s10   ;;  %s2466_s30 = sphi %s2543_s30, %s4460_s30  }
   0x5   : > { %p29_p0 = scmp.ge.s32.totalorder %s28_s16, 2  ;;  %s2213_s18 = sadd.s32 4294967295, %s2490_s15  }
   0x6   : > { %p47_p1 = scmp.ne.s32.totalorder %s2470_s10, %s2466_s30  ;;  %p48_p2 = scmp.eq.s32.totalorder %s2490_s15, 0 }
   0x7   : > { %s4467_s16 = smov (%p29_p0, %s28_s16), 0  ;;  %s4469_s17 = smov (!%p29_p0, %s31_s17), %s2486_s14 }
   0x8   : > { %4417 = sst [smem:[#allocation4_spill]] %s4467_s16  ;;  %p33_p3 = scmp.ge.s32.totalorder %s4469_s17, 2 }
   0x9   : > { %p247_p4 = scmp.eq.s32.totalorder %s2213_s18, 3  ;;  %s36_s19 = ssub.s32 %s2482_s13, %s4467_s16 }
   0xa   : > { %p49_p5 = por %p48_p2, %p47_p1  ;;  %s4471_s17 = smov (%p33_p3, %s4469_s17), 0 }
   0xb   : > { %p2591_p6 = por %p247_p4, %p47_p1  ;;  %s35_s21 = ssub.s32 %s2486_s14, %s4471_s17 }
   0xc   : > { %s37_s22 = sor.u32 %s36_s19, %s35_s21  ;;  %s40_s23 = sadd.s32 1, %s2470_s10 }
   0xd   : > { %p38_p7 = scmp.eq.s32.totalorder %s37_s22, 0  ;;  %p2216_p8 = scmp.ge.s32.totalorder %s2490_s15, 4 }
   0xf   : > { %s2599_s24 = scalar_select %p38_p7, %s2470_s10, %s40_s23  }
  0x10   : > { %293 = sbr.rel (%p2216_p8) target bundleno = 43 (0x2b), region = 48 }
  0x15   : > { %296 = sbr.rel (!%p49_p5) target bundleno = 43 (0x2b), region = 52  ;;  %s298_s25 = sand.u32 (%p49_p5), 1, %s2470_s10  }
  0x16   : > { %s2218_s26 = sshll.u32 (%p49_p5), %s2486_s14, 5  ;;  %s2217_s27 = sshll.u32 (%p49_p5), %s298_s25, 7 }
  0x17   : > { %s302_s28 = sadd.s32 (%p49_p5), %s2482_s13, %s2218_s26  ;;  %s300_s21 = scalar_lea.vmem (%p49_p5), [#allocation2], %s2217_s27 }
  0x18   : > { %s2219_s29 = sshll.u32 (%p49_p5), %s302_s28, 3 }
  0x19   : > { %s2608_s19 = scalar_lea.vmem (%p49_p5), %s4406_s0, %s2219_s29 }
  0x1a   : > { %v363_v0 = vld [vmem:[%s2608_s19] sm:$0xff]  ;;  %v365_v1 = vld [vmem:[%s2608_s19 + $0x10] sm:$0xff] }
  0x1b   : > { %v367_v2 = vld [vmem:[%s2608_s19 + $0x20] sm:$0xff]  ;;  %364 = vst [vmem:[%s300_s21] sm:$0xff] %v363_v0  ;;  %v369_v3 = vld [vmem:[%s2608_s19 + $0x30] sm:$0xff] }
  0x1c   : > { %366 = vst [vmem:[%s300_s21 + $0x8] sm:$0xff] %v365_v1  ;;  %v371_v4 = vld [vmem:[%s2608_s19 + $0x40] sm:$0xff]  ;;  %v373_v5 = vld [vmem:[%s2608_s19 + $0x50] sm:$0xff] }
  0x1d   : > { %368 = vst [vmem:[%s300_s21 + $0x10] sm:$0xff] %v367_v2  ;;  %v375_v6 = vld [vmem:[%s2608_s19 + $0x60] sm:$0xff]  ;;  %v377_v7 = vld [vmem:[%s2608_s19 + $0x70] sm:$0xff] }
  0x1e   : > { %370 = vst [vmem:[%s300_s21 + $0x18] sm:$0xff] %v369_v3  ;;  %v379_v8 = vld [vmem:[%s2608_s19 + $0x80] sm:$0xff]  ;;  %v381_v9 = vld [vmem:[%s2608_s19 + $0x90] sm:$0xff] }
  0x1f   : > { %372 = vst [vmem:[%s300_s21 + $0x20] sm:$0xff] %v371_v4  ;;  %v383_v10 = vld [vmem:[%s2608_s19 + $0xa0] sm:$0xff]  ;;  %v385_v11 = vld [vmem:[%s2608_s19 + $0xb0] sm:$0xff] }
  0x20   : > { %374 = vst [vmem:[%s300_s21 + $0x28] sm:$0xff] %v373_v5  ;;  %v387_v12 = vld [vmem:[%s2608_s19 + $0xc0] sm:$0xff]  ;;  %v389_v13 = vld [vmem:[%s2608_s19 + $0xd0] sm:$0xff] }
  0x21   : > { %376 = vst [vmem:[%s300_s21 + $0x30] sm:$0xff] %v375_v6  ;;  %v391_v14 = vld [vmem:[%s2608_s19 + $0xe0] sm:$0xff]  ;;  %v393_v15 = vld [vmem:[%s2608_s19 + $0xf0] sm:$0xff] }
  0x22   : > { %378 = vst [vmem:[%s300_s21 + $0x38] sm:$0xff] %v377_v7 }
  0x23   : > { %380 = vst [vmem:[%s300_s21 + $0x40] sm:$0xff] %v379_v8 }
  0x24   : > { %382 = vst [vmem:[%s300_s21 + $0x48] sm:$0xff] %v381_v9 }
  0x25   : > { %384 = vst [vmem:[%s300_s21 + $0x50] sm:$0xff] %v383_v10 }
  0x26   : > { %386 = vst [vmem:[%s300_s21 + $0x58] sm:$0xff] %v385_v11 }
  0x27   : > { %388 = vst [vmem:[%s300_s21 + $0x60] sm:$0xff] %v387_v12 }
  0x28   : > { %390 = vst [vmem:[%s300_s21 + $0x68] sm:$0xff] %v389_v13 }
  0x29   : > { %392 = vst [vmem:[%s300_s21 + $0x70] sm:$0xff] %v391_v14 }
  0x2a   : > { %394 = vst [vmem:[%s300_s21 + $0x78] sm:$0xff] %v393_v15 }
  0x2b PF: > { %p2220_p9 = scmp.ge.s32.totalorder %s2490_s15, 1  ;;  %p399_p10 = scmp.lt.s32.totalorder %s2490_s15, 5 }
  0x2d   : > { %p400_p11 = pnand %p2220_p9, %p399_p10 }
  0x2e   : > { %s406_s16 = sand.u32 (!%p400_p11), 1, %s2466_s30  }
  0x2f   : > { %403 = sbr.rel (%p400_p11) target bundleno = 513 (0x201), region = 90  ;;  %s2638_s29 = sshll.u32 (!%p400_p11), %s406_s16, 7 }
  0x30   : > { %s2658_s28 = scalar_lea.vmem (!%p400_p11), [#allocation2], %s2638_s29  ;;  %s4319_s26 = scalar_lea.vmem (!%p400_p11), [#allocation3], %s2638_s29 }
  0x34   : > { %v445_v16 = vld [vmem:[%s4409_s3 + $0x20] sm:$0xff]  ;;  %vm521_vm0 = vcmask 7168   ;;  %v1488_v27 = vld [vmem:[%s2658_s28 + $0x70] sm:$0xff]  ;;  %v1489_v28 = vld [vmem:[%s2658_s28 + $0x78] sm:$0xff]  ;;  %v2492_v30 = vmov 0   ;;  %s2280_s29 = sshll.u32 (%p2591_p6), %s2478_s12, 5 }
  0x35   : > { %v453_v17 = vld [vmem:[%s4409_s3 + $0x60] sm:$0xff]  ;;  %v550_v22 = vsel %vm521_vm0, %v445_v16, 0.0  ;;  %2371 = vset.pattern.permute.xlu2 %v2492_v30  ;;  %2370 = vset.pattern.permute.xlu1 %v2492_v30  ;;  %v1505_v34 = vpack.c.bf16 %v1489_v28, %v1488_v27  ;;  %v1487_v35 = vld [vmem:[%s2658_s28 + $0x68] sm:$0xff]  ;;  %v1484_v36 = vld [vmem:[%s2658_s28 + $0x50] sm:$0xff] }
  0x36   : > { %v461_v18 = vld [vmem:[%s4409_s3 + $0xa0] sm:$0xff]  ;;  %v606_v33 = vsel %vm521_vm0, %v453_v17, 0.0  ;;  %v1485_v37 = vld [vmem:[%s2658_s28 + $0x58] sm:$0xff]  ;;  %2369 = vset.pattern.permute.xlu0 %v2492_v30  ;;  %v1483_v42 = vld [vmem:[%s2658_s28 + $0x48] sm:$0xff] }
  0x37   : > { %v469_v19 = vld [vmem:[%s4409_s3 + $0xe0] sm:$0xff]  ;;  %v551_v23 = vsel %vm521_vm0, %v461_v18, 0.0  ;;  %v1480_v43 = vld [vmem:[%s2658_s28 + $0x30] sm:$0xff]  ;;  %2296 = vmatpush.bf16.msra.mxu3 %v1505_v34  ;;  %1530 = vmatpush.bf16.msra.mxu0 %v1505_v34  ;;  %v1481_v46 = vld [vmem:[%s2658_s28 + $0x38] sm:$0xff]  ;;  %v1503_v52 = vpack.c.bf16 %v1485_v37, %v1484_v36 }
  0x38   : > { %v477_v20 = vld [vmem:[%s4409_s3 + $0x120] sm:$0xff]  ;;  %v552_v26 = vadd.f32 %v551_v23, %v550_v22  ;;  %v607_v39 = vsel %vm521_vm0, %v469_v19, 0.0  ;;  %v1479_v48 = vld [vmem:[%s2658_s28 + $0x28] sm:$0xff]  ;;  %v443_v55 = vld [vmem:[%s4409_s3 + $0x10] sm:$0xff]  ;;  %v2685_v56 = vpack.c.bf16 %v1481_v46, %v1480_v43 }
  0x39   : > { %v485_v21 = vld [vmem:[%s4409_s3 + $0x160] sm:$0xff]  ;;  %v553_v31 = vsel %vm521_vm0, %v477_v20, 0.0  ;;  %v608_v44 = vadd.f32 %v607_v39, %v606_v33  ;;  %v451_v59 = vld [vmem:[%s4409_s3 + $0x50] sm:$0xff]  ;;  %v536_v62 = vsel %vm521_vm0, %v443_v55, 0.0 }
  0x3a   : > { %v493_v24 = vld [vmem:[%s4409_s3 + $0x1a0] sm:$0xff]  ;;  %v554_v38 = vadd.f32 %v553_v31, %v552_v26  ;;  %v609_v40 = vsel %vm521_vm0, %v485_v21, 0.0  ;;  %v459_v60 = vld [vmem:[%s4409_s3 + $0x90] sm:$0xff]  ;;  %v592_v4 = vsel %vm521_vm0, %v451_v59, 0.0 }
  0x3b   : > { %v501_v25 = vld [vmem:[%s4409_s3 + $0x1e0] sm:$0xff]  ;;  %v555_v32 = vsel %vm521_vm0, %v493_v24, 0.0  ;;  %v610_v51 = vadd.f32 %v609_v40, %v608_v44  ;;  %v467_v61 = vld [vmem:[%s4409_s3 + $0xd0] sm:$0xff]  ;;  %v537_v3 = vsel %vm521_vm0, %v459_v60, 0.0 }
  0x3c   : > { %v1486_v29 = vld [vmem:[%s2658_s28 + $0x60] sm:$0xff]  ;;  %v556_v49 = vadd.f32 %v555_v32, %v554_v38  ;;  %v611_v50 = vsel %vm521_vm0, %v501_v25, 0.0  ;;  %v475_v0 = vld [vmem:[%s4409_s3 + $0x110] sm:$0xff]  ;;  %v593_v5 = vsel %vm521_vm0, %v467_v61, 0.0  ;;  %v538_v8 = vadd.f32 %v537_v3, %v536_v62  ;;  %v1477_v38 = vld [vmem:[%s2658_s28 + $0x18] sm:$0xff] }
  0x3d   : > { %v1482_v41 = vld [vmem:[%s2658_s28 + $0x40] sm:$0xff]  ;;  %v1504_v45 = vpack.c.bf16 %v1487_v35, %v1486_v29  ;;  %v612_v58 = vadd.f32 %v611_v50, %v610_v51  ;;  %v483_v1 = vld [vmem:[%s4409_s3 + $0x150] sm:$0xff]  ;;  %v539_v9 = vsel %vm521_vm0, %v475_v0, 0.0  ;;  %v594_v12 = vadd.f32 %v593_v5, %v592_v4  ;;  %v444_v3 = vld [vmem:[%s4409_s3 + $0x18] sm:$0xff] }
  0x3e   : > { %v1478_v47 = vld [vmem:[%s2658_s28 + $0x20] sm:$0xff]  ;;  %v2678_v53 = vpack.c.bf16 %v1483_v42, %v1482_v41  ;;  %v2680_v54 = vmul.f32 0.001953125, %v556_v49  ;;  %v491_v2 = vld [vmem:[%s4409_s3 + $0x190] sm:$0xff]  ;;  %v595_v13 = vsel %vm521_vm0, %v483_v1, 0.0  ;;  %v540_v20 = vadd.f32 %v539_v9, %v538_v8  ;;  %v460_v4 = vld [vmem:[%s4409_s3 + $0x98] sm:$0xff] }
  0x3f   : > { %v2687_v57 = vpack.c.bf16 %v1479_v48, %v1478_v47  ;;  %2297 = vmatpush.bf16.msra.mxu3 %v1504_v45  ;;  %1531 = vmatpush.bf16.msra.mxu0 %v1504_v45  ;;  %v646_v6 = vmul.f32 0.001953125, %v612_v58  ;;  %v499_v7 = vld [vmem:[%s4409_s3 + $0x1d0] sm:$0xff]  ;;  %v541_v10 = vsel %vm521_vm0, %v491_v2, 0.0  ;;  %v441_v11 = vld [vmem:[%s4409_s3] sm:$0xff]  ;;  %v596_v26 = vadd.f32 %v595_v13, %v594_v12 }
  0x40   : > { %v654_v63 = vmul.f32 %v2680_v54, %v2680_v54  ;;  %v597_v14 = vsel %vm521_vm0, %v499_v7, 0.0  ;;  %v449_v15 = vld [vmem:[%s4409_s3 + $0x40] sm:$0xff]  ;;  %v522_v18 = vsel %vm521_vm0, %v441_v11, 0.0  ;;  %v447_v31 = vld [vmem:[%s4409_s3 + $0x30] sm:$0xff]  ;;  %v542_v33 = vadd.f32 %v541_v10, %v540_v20  ;;  %v1475_v10 = vld [vmem:[%s2658_s28 + $0x8] sm:$0xff] }
  0x41   : > { %v457_v16 = vld [vmem:[%s4409_s3 + $0x80] sm:$0xff]  ;;  %v578_v25 = vsel %vm521_vm0, %v449_v15, 0.0  ;;  %v463_v36 = vld [vmem:[%s4409_s3 + $0xb0] sm:$0xff]  ;;  %v598_v39 = vadd.f32 %v597_v14, %v596_v26  ;;  %v564_v47 = vsel %vm521_vm0, %v447_v31, 0.0  ;;  %v476_v15 = vld [vmem:[%s4409_s3 + $0x118] sm:$0xff]  ;;  %v544_v20 = vsel %vm521_vm0, %v460_v4, 0.0 }
  0x42   : > { %v465_v17 = vld [vmem:[%s4409_s3 + $0xc0] sm:$0xff]  ;;  %v662_v19 = vsub.f32 %v646_v6, %v654_v63  ;;  %v523_v24 = vsel %vm521_vm0, %v457_v16, 0.0  ;;  %v1476_v37 = vld [vmem:[%s2658_s28 + $0x10] sm:$0xff]  ;;  %v2765_v45 = vmul.f32 0.001953125, %v542_v33  ;;  %v565_v48 = vsel %vm521_vm0, %v463_v36, 0.0  ;;  %v492_v16 = vld [vmem:[%s4409_s3 + $0x198] sm:$0xff] }
  0x43   : > { %v473_v21 = vld [vmem:[%s4409_s3 + $0x100] sm:$0xff]  ;;  %2298 = vmatpush.bf16.msra.mxu3 %v1503_v52  ;;  %1532 = vmatpush.bf16.msra.mxu0 %v1503_v52  ;;  %v524_v28 = vadd.f32 %v523_v24, %v522_v18  ;;  %v579_v34 = vsel %vm521_vm0, %v465_v17, 0.0  ;;  %v479_v43 = vld [vmem:[%s4409_s3 + $0x130] sm:$0xff]  ;;  %v644_v49 = vmul.f32 0.001953125, %v598_v39  ;;  %v566_v59 = vadd.f32 %v565_v48, %v564_v47 }
  0x44   : > { %v481_v22 = vld [vmem:[%s4409_s3 + $0x140] sm:$0xff]  ;;  %v525_v29 = vsel %vm521_vm0, %v473_v21, 0.0  ;;  %v670_v32 = vmax.f32 %v662_v19, 0.0  ;;  %v580_v41 = vadd.f32 %v579_v34, %v578_v25  ;;  %v495_v46 = vld [vmem:[%s4409_s3 + $0x1b0] sm:$0xff]  ;;  %v2783_v60 = vpack.c.bf16 %v1477_v38, %v1476_v37  ;;  %v484_v34 = vld [vmem:[%s4409_s3 + $0x158] sm:$0xff] }
  0x45   : > { %v489_v23 = vld [vmem:[%s4409_s3 + $0x180] sm:$0xff]  ;;  %v581_v35 = vsel %vm521_vm0, %v481_v22, 0.0  ;;  %v526_v40 = vadd.f32 %v525_v29, %v524_v28  ;;  %v455_v52 = vld [vmem:[%s4409_s3 + $0x70] sm:$0xff]  ;;  %v567_v61 = vsel %vm521_vm0, %v479_v43, 0.0  ;;  %v569_v2 = vsel %vm521_vm0, %v495_v46, 0.0  ;;  %v468_v28 = vld [vmem:[%s4409_s3 + $0xd8] sm:$0xff] }
  0x46   : > { %v497_v27 = vld [vmem:[%s4409_s3 + $0x1c0] sm:$0xff]  ;;  %v527_v30 = vsel %vm521_vm0, %v489_v23, 0.0  ;;  %v2763_v44 = vadd.f32 1e-05, %v670_v32  ;;  %v582_v51 = vadd.f32 %v581_v35, %v580_v41  ;;  %v471_v55 = vld [vmem:[%s4409_s3 + $0xf0] sm:$0xff]  ;;  %v568_v1 = vadd.f32 %v567_v61, %v566_v59  ;;  %v500_v37 = vld [vmem:[%s4409_s3 + $0x1d8] sm:$0xff] }
  0x47   : > { %v583_v42 = vsel %vm521_vm0, %v497_v27, 0.0  ;;  %2299 = vmatpush.bf16.msra.mxu3 %v2678_v53  ;;  %1533 = vmatpush.bf16.msra.mxu0 %v2678_v53  ;;  %v528_v50 = vadd.f32 %v527_v30, %v526_v40  ;;  %v487_v58 = vld [vmem:[%s4409_s3 + $0x170] sm:$0xff]  ;;  %v652_v53 = vmul.f32 %v2765_v45, %v2765_v45  ;;  %v1474_v5 = vld [vmem:[%s2658_s28] sm:$0xff]  ;;  %v620_v7 = vsel %vm521_vm0, %v455_v52, 0.0  ;;  %v458_v43 = vld [vmem:[%s4409_s3 + $0x88] sm:$0xff] }
  0x48   : > { %2372 = vrsqrt.f32 %v2763_v44  ;;  %v584_v62 = vadd.f32 %v583_v42, %v582_v51  ;;  %v503_v0 = vld [vmem:[%s4409_s3 + $0x1f0] sm:$0xff]  ;;  %v621_v8 = vsel %vm521_vm0, %v471_v55, 0.0  ;;  %v623_v9 = vsel %vm521_vm0, %v487_v58, 0.0  ;;  %v442_v42 = vld [vmem:[%s4409_s3 + $0x8] sm:$0xff] }
  0x49   : > { %v2789_v63 = vmul.f32 0.001953125, %v528_v50  ;;  %v660_v6 = vsub.f32 %v644_v49, %v652_v53  ;;  %v570_v13 = vadd.f32 %v569_v2, %v568_v1  ;;  %v622_v14 = vadd.f32 %v621_v8, %v620_v7  ;;  %v474_v49 = vld [vmem:[%s4409_s3 + $0x108] sm:$0xff] }
  0x4a   : > { %v642_v11 = vmul.f32 0.001953125, %v584_v62  ;;  %v625_v18 = vsel %vm521_vm0, %v503_v0, 0.0  ;;  %v543_v19 = vsel %vm521_vm0, %v444_v3, 0.0  ;;  %v1498_v26 = vpack.c.bf16 %v1475_v10, %v1474_v5  ;;  %v490_v59 = vld [vmem:[%s4409_s3 + $0x188] sm:$0xff] }
  0x4b   : > { %2300 = vmatpush.bf16.msra.mxu3 %v2685_v56  ;;  %1534 = vmatpush.bf16.msra.mxu0 %v2685_v56  ;;  %v650_v12 = vmul.f32 %v2789_v63, %v2789_v63  ;;  %v668_v17 = vmax.f32 %v660_v6, 0.0  ;;  %v452_v56 = vld [vmem:[%s4409_s3 + $0x58] sm:$0xff]  ;;  %v624_v22 = vadd.f32 %v623_v9, %v622_v14  ;;  %v2822_v23 = vmul.f32 0.001953125, %v570_v13  ;;  %v466_v1 = vld [vmem:[%s4409_s3 + $0xc8] sm:$0xff]  ;;  %v509_v9 = vld [vmem:[%s4410_s4 + $0x20] sm:$0xff] }
  0x4c   : > { %v545_v24 = vadd.f32 %v544_v20, %v543_v19  ;;  %v546_v29 = vsel %vm521_vm0, %v476_v15, 0.0  ;;  %v548_v30 = vsel %vm521_vm0, %v492_v16, 0.0  ;;  %v599_v35 = vsel %vm521_vm0, %v452_v56, 0.0  ;;  %v2285_v5 = vld [vmem:[%s4407_s1 + $0x8] sm:$0xff] }
  0x4d   : > { %v658_v21 = vsub.f32 %v642_v11, %v650_v12  ;;  %v2826_v27 = vadd.f32 1e-05, %v668_v17  ;;  %v626_v33 = vadd.f32 %v625_v18, %v624_v22  ;;  %vm728_vm1 = vweird.f32 %v2763_v44  ;;  %v482_v12 = vld [vmem:[%s4409_s3 + $0x148] sm:$0xff] }
  0x4e   : > { %v2824_v25 = vpop.eup %2372  ;;  %v656_v36 = vmul.f32 %v2822_v23, %v2822_v23  ;;  %v547_v38 = vadd.f32 %v546_v29, %v545_v24  ;;  %v600_v41 = vsel %vm521_vm0, %v468_v28, 0.0  ;;  %v602_v48 = vsel %vm521_vm0, %v484_v34, 0.0  ;;  %v498_v20 = vld [vmem:[%s4409_s3 + $0x1c8] sm:$0xff]  ;;  %v464_v28 = vld [vmem:[%s4409_s3 + $0xb8] sm:$0xff] }
  0x4f   : > { %2301 = vmatpush.bf16.msra.mxu3 %v2687_v57  ;;  %v723_v31 = vmul.f32 %v2824_v25, %v2763_v44  ;;  %v666_v32 = vmax.f32 %v658_v21, 0.0  ;;  %1535 = vmatpush.bf16.msra.mxu0 %v2687_v57  ;;  %2374 = vrsqrt.f32 %v2826_v27  ;;  %v648_v40 = vmul.f32 0.001953125, %v626_v33  ;;  %v448_v21 = vld [vmem:[%s4409_s3 + $0x38] sm:$0xff] }
  0x50   : > { %vm729_vm2 = vweird.f32 %v2824_v25  ;;  %v549_v46 = vadd.f32 %v548_v30, %v547_v38  ;;  %v601_v47 = vadd.f32 %v600_v41, %v599_v35  ;;  %v604_v52 = vsel %vm521_vm0, %v500_v37, 0.0  ;;  %v496_v41 = vld [vmem:[%s4409_s3 + $0x1b8] sm:$0xff] }
  0x51   : > { %v724_v57 = vmul.f32 %v2824_v25, %v723_v31  ;;  %v2849_v39 = vadd.f32 1e-05, %v666_v32  ;;  %v664_v51 = vsub.f32 %v648_v40, %v656_v36  ;;  %v529_v53 = vsel %vm521_vm0, %v442_v42, 0.0  ;;  %vm2890_vm3 = vmor %vm728_vm1, %vm729_vm2  ;;  %v480_v32 = vld [vmem:[%s4409_s3 + $0x138] sm:$0xff]  ;;  %v2284_v40 = vld [vmem:[%s4407_s1] sm:$0xff] }
  0x52   : > { %v603_v55 = vadd.f32 %v602_v48, %v601_v47  ;;  %v2867_v58 = vmul.f32 0.001953125, %v549_v46  ;;  %v530_v61 = vsel %vm521_vm0, %v458_v43, 0.0  ;;  %v532_v3 = vsel %vm521_vm0, %v474_v49, 0.0  ;;  %v486_v43 = vld [vmem:[%s4409_s3 + $0x168] sm:$0xff] }
  0x53   : > { %2302 = vmatpush.bf16.msra.mxu3 %v2783_v60  ;;  %v725_v50 = vmul.f32 0.5, %v724_v57  ;;  %2376 = vrsqrt.f32 %v2849_v39  ;;  %1536 = vmatpush.bf16.msra.mxu0 %v2783_v60  ;;  %v672_v0 = vmax.f32 %v664_v51, 0.0  ;;  %v450_v60 = vld [vmem:[%s4409_s3 + $0x48] sm:$0xff]  ;;  %v531_v2 = vadd.f32 %v530_v61, %v529_v53  ;;  %v507_v51 = vld [vmem:[%s4410_s4 + $0x10] sm:$0xff] }
  0x54   : > { %vm708_vm4 = vweird.f32 %v2826_v27  ;;  %vm688_vm5 = vweird.f32 %v2849_v39  ;;  %v605_v7 = vadd.f32 %v604_v52, %v603_v55  ;;  %v653_v8 = vmul.f32 %v2867_v58, %v2867_v58 }
  0x55   : > { %v726_v62 = vsub.f32 1.5, %v725_v50  ;;  %v2881_v4 = vpop.eup %2374  ;;  %v2904_v11 = vadd.f32 1e-05, %v672_v0  ;;  %v534_v13 = vsel %vm521_vm0, %v490_v59, 0.0  ;;  %v533_v15 = vadd.f32 %v532_v3, %v531_v2  ;;  %v456_v59 = vld [vmem:[%s4409_s3 + $0x78] sm:$0xff] }
  0x56   : > { %v703_v44 = vmul.f32 %v2881_v4, %v2826_v27  ;;  %v645_v14 = vmul.f32 0.001953125, %v605_v7  ;;  %v585_v16 = vsel %vm521_vm0, %v450_v60, 0.0  ;;  %v586_v17 = vsel %vm521_vm0, %v466_v1, 0.0  ;;  %v488_v0 = vld [vmem:[%s4409_s3 + $0x178] sm:$0xff]  ;;  %v505_v7 = vld [vmem:[%s4410_s4] sm:$0xff] }
  0x57   : > { %2303 = vmatpush.bf16.msra.mxu3 %v1498_v26  ;;  %v727_v10 = vmul.f32 %v2824_v25, %v726_v62  ;;  %1537 = vmatpush.bf16.msra.mxu0 %v1498_v26  ;;  %vm709_vm6 = vweird.f32 %v2881_v4  ;;  %2378 = vrsqrt.f32 %v2904_v11  ;;  %v588_v26 = vsel %vm521_vm0, %v482_v12, 0.0  ;;  %v472_v62 = vld [vmem:[%s4409_s3 + $0xf8] sm:$0xff] }
  0x58   : > { %v704_v19 = vmul.f32 %v2881_v4, %v703_v44  ;;  %v535_v30 = vadd.f32 %v534_v13, %v533_v15  ;;  %v587_v31 = vadd.f32 %v586_v17, %v585_v16  ;;  %v590_v35 = vsel %vm521_vm0, %v498_v20, 0.0  ;;  %vm2955_vm8 = vmor %vm708_vm4, %vm709_vm6  ;;  %v462_v15 = vld [vmem:[%s4409_s3 + $0xa8] sm:$0xff] }
  0x59   : > { %v2912_v18 = vpop.eup %2376  ;;  %v731_v56 = vsel %vm2890_vm3, %v2824_v25, %v727_v10  ;;  %v661_v25 = vsub.f32 %v645_v14, %v653_v8  ;;  %v571_v36 = vsel %vm521_vm0, %v448_v21, 0.0  ;;  %v572_v42 = vsel %vm521_vm0, %v464_v28, 0.0  ;;  %v446_v14 = vld [vmem:[%s4409_s3 + $0x28] sm:$0xff]  ;;  %v2286_v28 = vld [vmem:[%s4407_s1 + $0x10] sm:$0xff] }
  0x5a   : > { %1543 = vmatmul.bf16.vlgmr.msra.gmra.mxu3 %v2285_v5  ;;  %v2926_v22 = vmul.f32 %v731_v56, %v509_v9  ;;  %v683_v24 = vmul.f32 %v2912_v18, %v2849_v39  ;;  %v705_v29 = vmul.f32 0.5, %v704_v19  ;;  %vm689_vm7 = vweird.f32 %v2912_v18  ;;  %1538 = vmatmul.bf16.vlgmr.msra.gmra.mxu0 %v2284_v40  ;;  %v504_v39 = vld [vmem:[%s4409_s3 + $0x1f8] sm:$0xff]  ;;  %v470_v40 = vld [vmem:[%s4409_s3 + $0xe8] sm:$0xff] }
  0x5b   : > { %v669_v34 = vmax.f32 %v661_v25, 0.0  ;;  %v589_v38 = vadd.f32 %v588_v26, %v587_v31  ;;  %v2942_v57 = vmul.f32 0.001953125, %v535_v30  ;;  %v573_v48 = vadd.f32 %v572_v42, %v571_v36  ;;  %vm2990_vm9 = vmor %vm688_vm5, %vm689_vm7 }
  0x5c   : > { %1581 = vperm.xlu2 %2371, %v2926_v22   ;;  %v684_v33 = vmul.f32 %v2912_v18, %v683_v24  ;;  %v706_v37 = vsub.f32 1.5, %v705_v29  ;;  %v574_v49 = vsel %vm521_vm0, %v480_v32, 0.0  ;;  %v576_v60 = vsel %vm521_vm0, %v496_v41, 0.0 }
  0x5d   : > { %v2959_v47 = vadd.f32 1e-05, %v669_v34  ;;  %v2962_v50 = vpop.eup %2378  ;;  %v591_v55 = vadd.f32 %v590_v35, %v589_v38  ;;  %v651_v27 = vmul.f32 %v2942_v57, %v2942_v57  ;;  %vm748_vm10 = vweird.f32 %v2904_v11  ;;  %v454_v38 = vld [vmem:[%s4409_s3 + $0x68] sm:$0xff] }
  0x5e   : > { %v685_v46 = vmul.f32 0.5, %v684_v33  ;;  %v707_v52 = vmul.f32 %v2881_v4, %v706_v37  ;;  %v743_v61 = vmul.f32 %v2962_v50, %v2904_v11  ;;  %v575_v5 = vadd.f32 %v574_v49, %v573_v48  ;;  %v866_v33 = vld [vmem:[%s4412_s6 + $0x280] sm:$0xff] }
  0x5f   : > { %2380 = vrsqrt.f32 %v2959_v47  ;;  %v643_v3 = vmul.f32 0.001953125, %v591_v55  ;;  %v627_v9 = vsel %vm521_vm0, %v456_v59, 0.0  ;;  %v628_v12 = vsel %vm521_vm0, %v472_v62, 0.0 }
  0x60   : > { %v686_v53 = vsub.f32 1.5, %v685_v46  ;;  %v711_v1 = vsel %vm2955_vm8, %v2881_v4, %v707_v52  ;;  %v744_v8 = vmul.f32 %v2962_v50, %v743_v61  ;;  %v577_v44 = vadd.f32 %v576_v60, %v575_v5 }
  0x61   : > { %v2995_v6 = vmul.f32 %v711_v1, %v507_v51  ;;  %v659_v10 = vsub.f32 %v643_v3, %v651_v27  ;;  %v630_v13 = vsel %vm521_vm0, %v488_v0, 0.0  ;;  %vm749_vm11 = vweird.f32 %v2962_v50  ;;  %v502_v51 = vld [vmem:[%s4409_s3 + $0x1e8] sm:$0xff]  ;;  %v786_v27 = vld [vmem:[%s4412_s6] sm:$0xff] }
  0x62   : > { %v687_v4 = vmul.f32 %v2912_v18, %v686_v53  ;;  %v745_v17 = vmul.f32 0.5, %v744_v8  ;;  %v629_v56 = vadd.f32 %v628_v12, %v627_v9  ;;  %v632_v21 = vsel %vm521_vm0, %v504_v39, 0.0  ;;  %vm3043_vm12 = vmor %vm748_vm10, %vm749_vm11  ;;  %v850_v3 = vld [vmem:[%s4412_s6 + $0x200] sm:$0xff] }
  0x63   : > { %1571 = vperm.xlu1 %2370, %v2995_v6   ;;  %v667_v20 = vmax.f32 %v659_v10, 0.0  ;;  %v3022_v24 = vmul.f32 0.001953125, %v577_v44  ;;  %v557_v30 = vsel %vm521_vm0, %v446_v14, 0.0  ;;  %v558_v31 = vsel %vm521_vm0, %v462_v15, 0.0  ;;  %v3122_v15 = vld [vmem:[%s4411_s5 + $0x30] sm:$0xff] }
  0x64   : > { %v691_v16 = vsel %vm2990_vm9, %v2912_v18, %v687_v4  ;;  %v746_v26 = vsub.f32 1.5, %v745_v17  ;;  %v631_v29 = vadd.f32 %v630_v13, %v629_v56  ;;  %v478_v18 = vld [vmem:[%s4409_s3 + $0x128] sm:$0xff]  ;;  %v3036_v32 = vmul.f32 %v2926_v22, %v2680_v54  ;;  %v511_v22 = vld [vmem:[%s4410_s4 + $0x30] sm:$0xff] }
  0x65   : > { %v3019_v19 = vmul.f32 %v691_v16, %v505_v7  ;;  %v3024_v25 = vpop.eup %2380  ;;  %vm718_vm13 = vweird.f32 %v2959_v47  ;;  %v3050_v35 = vadd.f32 1e-05, %v667_v20  ;;  %v494_v54 = vld [vmem:[%s4409_s3 + $0x1a8] sm:$0xff]  ;;  %v657_v37 = vmul.f32 %v3022_v24, %v3022_v24 }
  0x66   : > { %v713_v34 = vmul.f32 %v3024_v25, %v2959_v47  ;;  %v747_v11 = vmul.f32 %v2962_v50, %v746_v26  ;;  %v633_v36 = vadd.f32 %v632_v21, %v631_v29  ;;  %v559_v41 = vadd.f32 %v558_v31, %v557_v30  ;;  %v508_v47 = vld [vmem:[%s4410_s4 + $0x18] sm:$0xff]  ;;  %v802_v21 = vld [vmem:[%s4412_s6 + $0x80] sm:$0xff] }
  0x67   : > { %1561 = vperm.xlu0 %2369, %v3019_v19   ;;  %vm719_vm14 = vweird.f32 %v3024_v25  ;;  %2382 = vrsqrt.f32 %v3050_v35  ;;  %v560_v46 = vsel %vm521_vm0, %v478_v18, 0.0  ;;  %v562_v55 = vsel %vm521_vm0, %v494_v54, 0.0  ;;  %v882_v26 = vld [vmem:[%s4412_s6 + $0x300] sm:$0xff]  ;;  %v3164_v54 = vld [vmem:[%s4411_s5 + $0x10] sm:$0xff] }
  0x68   : > { %v714_v42 = vmul.f32 %v3024_v25, %v713_v34  ;;  %v751_v48 = vsel %vm3043_vm12, %v2962_v50, %v747_v11  ;;  %v649_v49 = vmul.f32 0.001953125, %v633_v36  ;;  %v561_v52 = vadd.f32 %v560_v46, %v559_v41  ;;  %v818_v50 = vld [vmem:[%s4412_s6 + $0x100] sm:$0xff]  ;;  %vm3102_vm15 = vmor %vm718_vm13, %vm719_vm14 }
  0x69   : > { %v768_v59 = vmul.f32 %v751_v48, %v511_v22  ;;  %v613_v61 = vsel %vm521_vm0, %v454_v38, 0.0  ;;  %v614_v62 = vsel %vm521_vm0, %v470_v40, 0.0  ;;  %v616_v2 = vsel %vm521_vm0, %v486_v43, 0.0  ;;  %v898_v40 = vld [vmem:[%s4412_s6 + $0x380] sm:$0xff]  ;;  %v819_v43 = vld [vmem:[%s4412_s6 + $0x108] sm:$0xff] }
  0x6a   : > { %1548 = vmatmul.bf16.gmra.mxu3 %v2286_v28  ;;  %v715_v53 = vmul.f32 0.5, %v714_v42  ;;  %v665_v0 = vsub.f32 %v649_v49, %v657_v37  ;;  %v563_v60 = vadd.f32 %v562_v55, %v561_v52  ;;  %v615_v1 = vadd.f32 %v614_v62, %v613_v61  ;;  %v787_v42 = vld [vmem:[%s4412_s6 + $0x8] sm:$0xff]  ;;  %v2287_v55 = vld [vmem:[%s4407_s1 + $0x18] sm:$0xff] }
  0x6b   : > { %1591 = vperm.xlu2 %2371, %v768_v59   ;;  %v3094_v7 = vmul.f32 %v768_v59, %v2822_v23  ;;  %v618_v4 = vsel %vm521_vm0, %v502_v51, 0.0  ;;  %v946_v8 = vsel %vm521_vm0, %v786_v27, 0.0  ;;  %v947_v12 = vsel %vm521_vm0, %v818_v50, 0.0  ;;  %v851_v51 = vld [vmem:[%s4412_s6 + $0x208] sm:$0xff]  ;;  %v3211_v50 = vld [vmem:[%s4411_s5] sm:$0xff]  ;;  %v837_v61 = vld [vmem:[%s4412_s6 + $0x198] sm:$0xff] }
  0x6c   : > { %v716_v5 = vsub.f32 1.5, %v715_v53  ;;  %v673_v9 = vmax.f32 %v665_v0, 0.0  ;;  %v617_v10 = vadd.f32 %v616_v2, %v615_v1  ;;  %v3106_v44 = vmul.f32 0.001953125, %v563_v60  ;;  %v803_v60 = vld [vmem:[%s4412_s6 + $0x88] sm:$0xff] }
  0x6d   : > { %v3109_v23 = vpop.eup %2382  ;;  %v3113_v13 = vmul.f32 %v2995_v6, %v2765_v45  ;;  %v948_v16 = vadd.f32 %v947_v12, %v946_v8  ;;  %v949_v17 = vsel %vm521_vm0, %v850_v3, 0.0  ;;  %v3127_v56 = vmul.f32 %v3019_v19, %v2789_v63  ;;  %v3148_v19 = vld [vmem:[%s4411_s5 + $0x20] sm:$0xff]  ;;  %v506_v3 = vld [vmem:[%s4410_s4 + $0x8] sm:$0xff] }
  0x6e   : > { %v717_v14 = vmul.f32 %v3024_v25, %v716_v5  ;;  %v693_v45 = vmul.f32 %v3109_v23, %v3050_v35  ;;  %v3131_v6 = vadd.f32 1e-05, %v673_v9  ;;  %v619_v20 = vadd.f32 %v618_v4, %v617_v10  ;;  %v883_v8 = vld [vmem:[%s4412_s6 + $0x308] sm:$0xff] }
  0x6f   : > { %vm698_vm1 = vweird.f32 %v3050_v35  ;;  %v655_v63 = vmul.f32 %v3106_v44, %v3106_v44  ;;  %v950_v29 = vadd.f32 %v949_v17, %v948_v16  ;;  %v784_v31 = vsub.f32 %v3122_v15, %v3094_v7 }
  0x70   : > { %v721_v28 = vsel %vm3102_vm15, %v3024_v25, %v717_v14  ;;  %v694_v30 = vmul.f32 %v3109_v23, %v693_v45  ;;  %2384 = vrsqrt.f32 %v3131_v6  ;;  %v834_v25 = vld [vmem:[%s4412_s6 + $0x180] sm:$0xff]  ;;  %vm699_vm2 = vweird.f32 %v3109_v23  ;;  %v867_v14 = vld [vmem:[%s4412_s6 + $0x288] sm:$0xff] }
  0x71   : > { %v765_v18 = vmul.f32 %v721_v28, %v508_v47  ;;  %v647_v34 = vmul.f32 0.001953125, %v619_v20  ;;  %v951_v22 = vsel %vm521_vm0, %v882_v26, 0.0  ;;  %v1058_v11 = vsel %vm521_vm0, %v802_v21, 0.0  ;;  %vm3204_vm4 = vmor %vm698_vm1, %vm699_vm2  ;;  %v835_v47 = vld [vmem:[%s4412_s6 + $0x188] sm:$0xff] }
  0x72   : > { %v695_v36 = vmul.f32 0.5, %v694_v30  ;;  %v782_v37 = vsub.f32 %v3148_v19, %v3036_v32  ;;  %v952_v41 = vadd.f32 %v951_v22, %v950_v29  ;;  %vm758_vm3 = vweird.f32 %v3131_v6  ;;  %v899_v20 = vld [vmem:[%s4412_s6 + $0x388] sm:$0xff]  ;;  %v821_v29 = vld [vmem:[%s4412_s6 + $0x118] sm:$0xff] }
  0x73   : > { %1576 = vperm.xlu1 %2370, %v765_v18   ;;  %v3171_v38 = vmul.f32 %v765_v18, %v2867_v58  ;;  %v663_v46 = vsub.f32 %v647_v34, %v655_v63  ;;  %v3186_v58 = vld [vmem:[%s4411_s5 + $0x18] sm:$0xff]  ;;  %v1059_v48 = vsel %vm521_vm0, %v834_v25, 0.0  ;;  %v1061_v49 = vsel %vm521_vm0, %v866_v33, 0.0 }
  0x74   : > { %v696_v52 = vsub.f32 1.5, %v695_v36  ;;  %v780_v27 = vsub.f32 %v3164_v54, %v3113_v13  ;;  %v1060_v59 = vadd.f32 %v1059_v48, %v1058_v11  ;;  %v3198_v53 = vmul.f32 0.001953125, %v952_v41  ;;  %v853_v36 = vld [vmem:[%s4412_s6 + $0x218] sm:$0xff] }
  0x75   : > { %v671_v62 = vmax.f32 %v663_v46, 0.0  ;;  %v1063_v0 = vsel %vm521_vm0, %v898_v40, 0.0  ;;  %v953_v1 = vsel %vm521_vm0, %v787_v42, 0.0  ;;  %v954_v35 = vsel %vm521_vm0, %v819_v43, 0.0 }
  0x76   : > { %v3219_v2 = vpop.eup %2384  ;;  %v697_v5 = vmul.f32 %v3109_v23, %v696_v52  ;;  %v781_v7 = vsub.f32 %v3186_v58, %v3171_v38  ;;  %v1062_v4 = vadd.f32 %v1061_v49, %v1060_v59  ;;  %v956_v39 = vsel %vm521_vm0, %v851_v51, 0.0  ;;  %v805_v49 = vld [vmem:[%s4412_s6 + $0x98] sm:$0xff]  ;;  %v518_v38 = vld [vmem:[%s4411_s5 + $0x28] sm:$0xff] }
  0x77   : > { %v753_v9 = vmul.f32 %v3219_v2, %v3131_v6  ;;  %v3233_v10 = vadd.f32 1e-05, %v671_v62  ;;  %v778_v12 = vsub.f32 %v3211_v50, %v3127_v56  ;;  %v955_v15 = vadd.f32 %v954_v35, %v953_v1  ;;  %v512_v6 = vld [vmem:[%s4410_s4 + $0x38] sm:$0xff]  ;;  %v855_v56 = vld [vmem:[%s4412_s6 + $0x228] sm:$0xff] }
  0x78   : > { %v701_v16 = vsel %vm3204_vm4, %v3109_v23, %v697_v5  ;;  %v1064_v17 = vadd.f32 %v1063_v0, %v1062_v4  ;;  %v1202_v45 = vmul.f32 %v3198_v53, %v3198_v53  ;;  %v1065_v21 = vsel %vm521_vm0, %v803_v60, 0.0  ;;  %v789_v23 = vld [vmem:[%s4412_s6 + $0x18] sm:$0xff] }
  0x79   : > { %v763_v26 = vmul.f32 %v701_v16, %v506_v3  ;;  %v754_v28 = vmul.f32 %v3219_v2, %v753_v9  ;;  %2386 = vrsqrt.f32 %v3233_v10  ;;  %v958_v63 = vsel %vm521_vm0, %v883_v8, 0.0  ;;  %v869_v9 = vld [vmem:[%s4412_s6 + $0x298] sm:$0xff] }
  0x7a   : > { %1553 = vmatmul.bf16.gmra.mxu3 %v2287_v55  ;;  %v1186_v18 = vmul.f32 0.001953125, %v1064_v17  ;;  %v957_v30 = vadd.f32 %v956_v39, %v955_v15  ;;  %v1066_v25 = vsel %vm521_vm0, %v835_v47, 0.0  ;;  %v1068_v33 = vsel %vm521_vm0, %v867_v14, 0.0  ;;  %v901_v47 = vld [vmem:[%s4412_s6 + $0x398] sm:$0xff] }
  0x7b   : > { %1639 = vperm.xlu1 %2370, %v784_v31   ;;  %1566 = vperm.xlu0 %2369, %v763_v26   ;;  %v755_v34 = vmul.f32 0.5, %v754_v28  ;;  %vm759_vm5 = vweird.f32 %v3219_v2  ;;  %v1067_v22 = vadd.f32 %v1066_v25, %v1065_v21  ;;  %v1070_v11 = vsel %vm521_vm0, %v899_v20, 0.0  ;;  %v885_v31 = vld [vmem:[%s4412_s6 + $0x318] sm:$0xff]  ;;  %v884_v25 = vld [vmem:[%s4412_s6 + $0x310] sm:$0xff] }
  0x7c   : > { %v1218_v40 = vsub.f32 %v1186_v18, %v1202_v45  ;;  %v959_v41 = vadd.f32 %v958_v63, %v957_v30  ;;  %v967_v42 = vsel %vm521_vm0, %v789_v23, 0.0  ;;  %v968_v43 = vsel %vm521_vm0, %v821_v29, 0.0  ;;  %vm3279_vm7 = vmor %vm758_vm3, %vm759_vm5  ;;  %v788_v45 = vld [vmem:[%s4412_s6 + $0x10] sm:$0xff]  ;;  %v520_v28 = vld [vmem:[%s4411_s5 + $0x38] sm:$0xff] }
  0x7d   : > { %v756_v46 = vsub.f32 1.5, %v755_v34  ;;  %vm738_vm6 = vweird.f32 %v3233_v10  ;;  %v1069_v48 = vadd.f32 %v1068_v33, %v1067_v22  ;;  %v969_v51 = vadd.f32 %v968_v43, %v967_v42  ;;  %v804_v30 = vld [vmem:[%s4412_s6 + $0x90] sm:$0xff] }
  0x7e   : > { %v1234_v55 = vmax.f32 %v1218_v40, 0.0  ;;  %v3283_v59 = vmul.f32 0.001953125, %v959_v41  ;;  %v970_v62 = vsel %vm521_vm0, %v853_v36, 0.0  ;;  %v972_v0 = vsel %vm521_vm0, %v885_v31, 0.0  ;;  %v868_v41 = vld [vmem:[%s4412_s6 + $0x290] sm:$0xff] }
  0x7f   : > { %v3290_v60 = vpop.eup %2386  ;;  %v757_v1 = vmul.f32 %v3219_v2, %v756_v46  ;;  %v3297_v35 = vmul.f32 %v763_v26, %v2942_v57  ;;  %v1071_v3 = vadd.f32 %v1070_v11, %v1069_v48  ;;  %v971_v5 = vadd.f32 %v970_v62, %v969_v51  ;;  %v852_v26 = vld [vmem:[%s4412_s6 + $0x210] sm:$0xff] }
  0x80   : > { %v733_v4 = vmul.f32 %v3290_v60, %v3233_v10  ;;  %v3301_v8 = vadd.f32 1e-05, %v1234_v55  ;;  %v1203_v39 = vmul.f32 %v3283_v59, %v3283_v59  ;;  %v1079_v57 = vsel %vm521_vm0, %v805_v49, 0.0  ;;  %v510_v55 = vld [vmem:[%s4410_s4 + $0x28] sm:$0xff]  ;;  %v900_v62 = vld [vmem:[%s4412_s6 + $0x390] sm:$0xff] }
  0x81   : > { %v761_v14 = vsel %vm3279_vm7, %v3219_v2, %v757_v1  ;;  %v1187_v15 = vmul.f32 0.001953125, %v1071_v3  ;;  %v973_v16 = vadd.f32 %v972_v0, %v971_v5  ;;  %v1080_v17 = vsel %vm521_vm0, %v837_v61, 0.0  ;;  %v820_v2 = vld [vmem:[%s4412_s6 + $0x110] sm:$0xff]  ;;  %v790_v1 = vld [vmem:[%s4412_s6 + $0x20] sm:$0xff] }
  0x82   : > { %v769_v20 = vmul.f32 %v761_v14, %v512_v6  ;;  %v734_v21 = vmul.f32 %v3290_v60, %v733_v4  ;;  %vm739_vm8 = vweird.f32 %v3290_v60  ;;  %2388 = vrsqrt.f32 %v3301_v8  ;;  %v822_v4 = vld [vmem:[%s4412_s6 + $0x120] sm:$0xff] }
  0x83   : > { %1629 = vperm.xlu1 %2370, %v782_v37   ;;  %v1219_v63 = vsub.f32 %v1187_v15, %v1203_v39  ;;  %v1081_v23 = vadd.f32 %v1080_v17, %v1079_v57  ;;  %v1082_v29 = vsel %vm521_vm0, %v869_v9, 0.0  ;;  %v1084_v32 = vsel %vm521_vm0, %v901_v47, 0.0  ;;  %vm3359_vm10 = vmor %vm738_vm6, %vm739_vm8  ;;  %v854_v14 = vld [vmem:[%s4412_s6 + $0x220] sm:$0xff] }
  0x84   : > { %v777_v19 = vmul.f32 %v769_v20, %v3022_v24  ;;  %1596 = vperm.xlu0 %2369, %v769_v20   ;;  %v735_v37 = vmul.f32 0.5, %v734_v21  ;;  %v3337_v18 = vmul.f32 0.001953125, %v973_v16  ;;  %v960_v33 = vsel %vm521_vm0, %v788_v45, 0.0  ;;  %v836_v24 = vld [vmem:[%s4412_s6 + $0x190] sm:$0xff] }
  0x85   : > { %v1235_v34 = vmax.f32 %v1219_v63, 0.0  ;;  %v1083_v22 = vadd.f32 %v1082_v29, %v1081_v23  ;;  %v961_v11 = vsel %vm521_vm0, %v820_v2, 0.0  ;;  %v963_v36 = vsel %vm521_vm0, %v852_v26, 0.0 }
  0x86   : > { %v785_v31 = vsub.f32 %v520_v28, %v777_v19  ;;  %v736_v40 = vsub.f32 1.5, %v735_v37  ;;  %vm1272_vm9 = vweird.f32 %v3301_v8  ;;  %v962_v42 = vadd.f32 %v961_v11, %v960_v33  ;;  %v806_v28 = vld [vmem:[%s4412_s6 + $0xa0] sm:$0xff] }
  0x87   : > { %v3363_v46 = vadd.f32 1e-05, %v1235_v34  ;;  %v1085_v48 = vadd.f32 %v1084_v32, %v1083_v22  ;;  %v965_v49 = vsel %vm521_vm0, %v884_v25, 0.0  ;;  %v1072_v51 = vsel %vm521_vm0, %v804_v30, 0.0  ;;  %v838_v37 = vld [vmem:[%s4412_s6 + $0x1a0] sm:$0xff] }
  0x88   : > { %v3367_v52 = vpop.eup %2388  ;;  %1644 = vperm.xlu2 %2371, %v785_v31   ;;  %v737_v10 = vmul.f32 %v3290_v60, %v736_v40  ;;  %v1205_v61 = vmul.f32 %v3337_v18, %v3337_v18  ;;  %v964_v0 = vadd.f32 %v963_v36, %v962_v42  ;;  %v1073_v6 = vsel %vm521_vm0, %v836_v24, 0.0  ;;  %v870_v34 = vld [vmem:[%s4412_s6 + $0x2a0] sm:$0xff] }
  0x89   : > { %v1267_v3 = vmul.f32 %v3367_v52, %v3301_v8  ;;  %vm1273_vm11 = vweird.f32 %v3367_v52  ;;  %2390 = vrsqrt.f32 %v3363_v46  ;;  %v1075_v5 = vsel %vm521_vm0, %v868_v41, 0.0  ;;  %v902_v40 = vld [vmem:[%s4412_s6 + $0x3a0] sm:$0xff] }
  0x8a   : > { %v741_v39 = vsel %vm3359_vm10, %v3290_v60, %v737_v10  ;;  %v1189_v9 = vmul.f32 0.001953125, %v1085_v48  ;;  %v966_v47 = vadd.f32 %v965_v49, %v964_v0  ;;  %v1074_v57 = vadd.f32 %v1073_v6, %v1072_v51  ;;  %v886_v60 = vld [vmem:[%s4412_s6 + $0x320] sm:$0xff]  ;;  %vm3432_vm13 = vmor %vm1272_vm9, %vm1273_vm11  ;;  %v792_v49 = vld [vmem:[%s4412_s6 + $0x30] sm:$0xff] }
  0x8b   : > { %1624 = vperm.xlu1 %2370, %v781_v7   ;;  %v767_v15 = vmul.f32 %v741_v39, %v510_v55  ;;  %v1268_v16 = vmul.f32 %v3367_v52, %v1267_v3  ;;  %v1077_v17 = vsel %vm521_vm0, %v900_v62, 0.0  ;;  %v974_v45 = vsel %vm521_vm0, %v790_v1, 0.0  ;;  %v914_v8 = vld [vmem:[%s4413_s7] sm:$0xff]  ;;  %v3456_v51 = vld [vmem:[%s4411_s5 + $0x8] sm:$0xff]  ;;  %v824_v62 = vld [vmem:[%s4412_s6 + $0x130] sm:$0xff] }
  0x8c   : > { %v1221_v58 = vsub.f32 %v1189_v9, %v1205_v61  ;;  %v1076_v7 = vadd.f32 %v1075_v5, %v1074_v57  ;;  %v3408_v20 = vmul.f32 0.001953125, %v966_v47  ;;  %v975_v21 = vsel %vm521_vm0, %v822_v4, 0.0  ;;  %v856_v0 = vld [vmem:[%s4412_s6 + $0x230] sm:$0xff] }
  0x8d   : > { %v775_v2 = vmul.f32 %v767_v15, %v3106_v44  ;;  %1586 = vperm.xlu0 %2369, %v767_v15   ;;  %v1269_v26 = vmul.f32 0.5, %v1268_v16  ;;  %v976_v63 = vadd.f32 %v975_v21, %v974_v45  ;;  %v977_v23 = vsel %vm521_vm0, %v854_v14, 0.0  ;;  %v808_v47 = vld [vmem:[%s4412_s6 + $0xb0] sm:$0xff] }
  0x8e   : > { %v1237_v29 = vmax.f32 %v1221_v58, 0.0  ;;  %v1078_v32 = vadd.f32 %v1077_v17, %v1076_v7  ;;  %v1204_v19 = vmul.f32 %v3408_v20, %v3408_v20  ;;  %v979_v44 = vsel %vm521_vm0, %v886_v60, 0.0  ;;  %v840_v57 = vld [vmem:[%s4412_s6 + $0x1b0] sm:$0xff] }
  0x8f   : > { %v3422_v30 = vpop.eup %2390  ;;  %v783_v25 = vsub.f32 %v518_v38, %v775_v2  ;;  %v1270_v33 = vsub.f32 1.5, %v1269_v26  ;;  %vm1282_vm12 = vweird.f32 %v3363_v46  ;;  %v978_v22 = vadd.f32 %v977_v23, %v976_v63  ;;  %v872_v17 = vld [vmem:[%s4412_s6 + $0x2b0] sm:$0xff] }
  0x90   : > { %v1277_v11 = vmul.f32 %v3422_v30, %v3363_v46  ;;  %v3438_v36 = vadd.f32 1e-05, %v1237_v29  ;;  %v1188_v31 = vmul.f32 0.001953125, %v1078_v32  ;;  %v1086_v41 = vsel %vm521_vm0, %v806_v28, 0.0  ;;  %v904_v7 = vld [vmem:[%s4412_s6 + $0x3b0] sm:$0xff]  ;;  %v791_v28 = vld [vmem:[%s4412_s6 + $0x28] sm:$0xff] }
  0x91   : > { %1634 = vperm.xlu2 %2371, %v783_v25   ;;  %v1271_v42 = vmul.f32 %v3367_v52, %v1270_v33  ;;  %vm1283_vm14 = vweird.f32 %v3422_v30  ;;  %v980_v43 = vadd.f32 %v979_v44, %v978_v22  ;;  %v1087_v48 = vsel %vm521_vm0, %v838_v37, 0.0  ;;  %v915_v32 = vld [vmem:[%s4413_s7 + $0x8] sm:$0xff] }
  0x92   : > { %v1278_v55 = vmul.f32 %v3422_v30, %v1277_v11  ;;  %2392 = vrsqrt.f32 %v3438_v36  ;;  %v1220_v10 = vsub.f32 %v1188_v31, %v1204_v19  ;;  %v1089_v61 = vsel %vm521_vm0, %v870_v34, 0.0  ;;  %vm3504_vm15 = vmor %vm1282_vm12, %vm1283_vm14  ;;  %v823_v25 = vld [vmem:[%s4412_s6 + $0x128] sm:$0xff] }
  0x93   : > { %v1275_v6 = vsel %vm3432_vm13, %v3367_v52, %v1271_v42  ;;  %v1088_v1 = vadd.f32 %v1087_v48, %v1086_v41  ;;  %v1091_v3 = vsel %vm521_vm0, %v902_v40, 0.0  ;;  %v3471_v5 = vmul.f32 0.001953125, %v980_v43  ;;  %v888_v52 = vld [vmem:[%s4412_s6 + $0x330] sm:$0xff]  ;;  %v807_v31 = vld [vmem:[%s4412_s6 + $0xa8] sm:$0xff] }
  0x94   : > { %v3473_v4 = vmul.f32 %v1275_v6, %v914_v8  ;;  %v1279_v39 = vmul.f32 0.5, %v1278_v55  ;;  %v1236_v9 = vmax.f32 %v1220_v10, 0.0  ;;  %v988_v14 = vsel %vm521_vm0, %v792_v49, 0.0  ;;  %v887_v40 = vld [vmem:[%s4412_s6 + $0x328] sm:$0xff] }
  0x95   : > { %1619 = vperm.xlu0 %2369, %v780_v27   ;;  %v779_v15 = vsub.f32 %v3456_v51, %v3297_v35  ;;  %v1090_v16 = vadd.f32 %v1089_v61, %v1088_v1  ;;  %v989_v60 = vsel %vm521_vm0, %v824_v62, 0.0  ;;  %v991_v45 = vsel %vm521_vm0, %v856_v0, 0.0  ;;  %v871_v42 = vld [vmem:[%s4412_s6 + $0x2a8] sm:$0xff] }
  0x96   : > { %1799 = vperm.xlu1 %2370, %v3473_v4   ;;  %v1280_v38 = vsub.f32 1.5, %v1279_v39  ;;  %v3496_v58 = vadd.f32 1e-05, %v1236_v9  ;;  %v1206_v13 = vmul.f32 %v3471_v5, %v3471_v5  ;;  %v990_v54 = vadd.f32 %v989_v60, %v988_v14  ;;  %v903_v0 = vld [vmem:[%s4412_s6 + $0x3a8] sm:$0xff]  ;;  %v825_v60 = vld [vmem:[%s4412_s6 + $0x138] sm:$0xff] }
  0x97   : > { %v1092_v35 = vadd.f32 %v1091_v3, %v1090_v16  ;;  %v993_v21 = vsel %vm521_vm0, %v888_v52, 0.0  ;;  %v1100_v2 = vsel %vm521_vm0, %v808_v47, 0.0  ;;  %v1101_v26 = vsel %vm521_vm0, %v840_v57, 0.0  ;;  %v793_v52 = vld [vmem:[%s4412_s6 + $0x38] sm:$0xff] }
  0x98   : > { %v3517_v46 = vpop.eup %2392  ;;  %v1281_v63 = vmul.f32 %v3422_v30, %v1280_v38  ;;  %2394 = vrsqrt.f32 %v3496_v58  ;;  %v992_v23 = vadd.f32 %v991_v45, %v990_v54  ;;  %v1103_v29 = vsel %vm521_vm0, %v872_v17, 0.0  ;;  %v857_v45 = vld [vmem:[%s4412_s6 + $0x238] sm:$0xff] }
  0x99   : > { %1609 = vperm.xlu2 %2371, %v778_v12   ;;  %v1297_v19 = vmul.f32 %v3517_v46, %v3438_v36  ;;  %vm1302_vm1 = vweird.f32 %v3438_v36  ;;  %v1190_v37 = vmul.f32 0.001953125, %v1092_v35  ;;  %v1102_v44 = vadd.f32 %v1101_v26, %v1100_v2  ;;  %v917_v36 = vld [vmem:[%s4413_s7 + $0x18] sm:$0xff] }
  0x9a   : > { %v1285_v50 = vsel %vm3504_vm15, %v3422_v30, %v1281_v63  ;;  %v994_v12 = vadd.f32 %v993_v21, %v992_v23  ;;  %v1105_v33 = vsel %vm521_vm0, %v904_v7, 0.0  ;;  %v981_v34 = vsel %vm521_vm0, %v791_v28, 0.0  ;;  %v839_v30 = vld [vmem:[%s4412_s6 + $0x1a8] sm:$0xff]  ;;  %v809_v21 = vld [vmem:[%s4412_s6 + $0xb8] sm:$0xff] }
  0x9b   : > { %v1298_v22 = vmul.f32 %v3517_v46, %v1297_v19  ;;  %vm1303_vm2 = vweird.f32 %v3517_v46  ;;  %vm1292_vm3 = vweird.f32 %v3496_v58  ;;  %v1222_v24 = vsub.f32 %v1190_v37, %v1206_v13  ;;  %v889_v2 = vld [vmem:[%s4412_s6 + $0x338] sm:$0xff] }
  0x9c   : > { %v1104_v11 = vadd.f32 %v1103_v29, %v1102_v44  ;;  %v3554_v41 = vmul.f32 %v1285_v50, %v915_v32  ;;  %v3556_v8 = vmul.f32 0.001953125, %v994_v12  ;;  %v982_v43 = vsel %vm521_vm0, %v823_v25, 0.0  ;;  %vm3585_vm4 = vmor %vm1302_vm1, %vm1303_vm2  ;;  %v841_v23 = vld [vmem:[%s4412_s6 + $0x1b8] sm:$0xff] }
  0x9d   : > { %v984_v48 = vsel %vm521_vm0, %v855_v56, 0.0  ;;  %1614 = vperm.xlu0 %2369, %v779_v15   ;;  %v1299_v49 = vmul.f32 0.5, %v1298_v22  ;;  %v1238_v51 = vmax.f32 %v1222_v24, 0.0  ;;  %v983_v10 = vadd.f32 %v982_v43, %v981_v34  ;;  %v873_v56 = vld [vmem:[%s4412_s6 + $0x2b8] sm:$0xff] }
  0x9e   : > { %v1106_v55 = vadd.f32 %v1105_v33, %v1104_v11  ;;  %v3563_v61 = vpop.eup %2394  ;;  %v1208_v62 = vmul.f32 %v3556_v8, %v3556_v8  ;;  %v986_v6 = vsel %vm521_vm0, %v887_v40, 0.0  ;;  %v1093_v1 = vsel %vm521_vm0, %v807_v31, 0.0  ;;  %v916_v40 = vld [vmem:[%s4413_s7 + $0x10] sm:$0xff] }
  0x9f   : > { %v1094_v3 = vsel %vm521_vm0, %v839_v30, 0.0  ;;  %v1300_v39 = vsub.f32 1.5, %v1299_v49  ;;  %v1287_v9 = vmul.f32 %v3563_v61, %v3496_v58  ;;  %v3575_v47 = vadd.f32 1e-05, %v1238_v51  ;;  %v795_v51 = vld [vmem:[%s4412_s6 + $0x48] sm:$0xff] }
  0xa0   : > { %v1096_v57 = vsel %vm521_vm0, %v871_v42, 0.0  ;;  %vm1293_vm5 = vweird.f32 %v3563_v61  ;;  %v1192_v15 = vmul.f32 0.001953125, %v1106_v55  ;;  %v985_v16 = vadd.f32 %v984_v48, %v983_v10  ;;  %v905_v42 = vld [vmem:[%s4412_s6 + $0x3b8] sm:$0xff]  ;;  %v827_v10 = vld [vmem:[%s4412_s6 + $0x148] sm:$0xff] }
  0xa1   : > { %v1095_v17 = vadd.f32 %v1094_v3, %v1093_v1  ;;  %1804 = vperm.xlu2 %2371, %v3554_v41   ;;  %v1301_v38 = vmul.f32 %v3517_v46, %v1300_v39  ;;  %v1288_v13 = vmul.f32 %v3563_v61, %v1287_v9  ;;  %2396 = vrsqrt.f32 %v3575_v47  ;;  %vm3633_vm6 = vmor %vm1292_vm3, %vm1293_vm5  ;;  %v859_v3 = vld [vmem:[%s4412_s6 + $0x248] sm:$0xff] }
  0xa2   : > { %v1098_v54 = vsel %vm521_vm0, %v903_v0, 0.0  ;;  %v1224_v27 = vsub.f32 %v1192_v15, %v1208_v62  ;;  %v987_v35 = vadd.f32 %v986_v6, %v985_v16  ;;  %v995_v26 = vsel %vm521_vm0, %v793_v52, 0.0  ;;  %v891_v39 = vld [vmem:[%s4412_s6 + $0x348] sm:$0xff] }
  0xa3   : > { %v1097_v7 = vadd.f32 %v1096_v57, %v1095_v17  ;;  %v1305_v28 = vsel %vm3585_vm4, %v3517_v46, %v1301_v38  ;;  %v1289_v63 = vmul.f32 0.5, %v1288_v13  ;;  %v996_v29 = vsel %vm521_vm0, %v825_v60, 0.0  ;;  %v843_v60 = vld [vmem:[%s4412_s6 + $0x1c8] sm:$0xff] }
  0xa4   : > { %v998_v32 = vsel %vm521_vm0, %v857_v45, 0.0  ;;  %v3619_v19 = vmul.f32 %v1305_v28, %v917_v36  ;;  %v1240_v37 = vmax.f32 %v1224_v27, 0.0  ;;  %v3621_v25 = vmul.f32 0.001953125, %v987_v35  ;;  %v875_v38 = vld [vmem:[%s4412_s6 + $0x2c8] sm:$0xff] }
  0xa5   : > { %v1099_v44 = vadd.f32 %v1098_v54, %v1097_v7  ;;  %v1290_v46 = vsub.f32 1.5, %v1289_v63  ;;  %v997_v50 = vadd.f32 %v996_v29, %v995_v26  ;;  %v1000_v12 = vsel %vm521_vm0, %v889_v2, 0.0  ;;  %v907_v63 = vld [vmem:[%s4412_s6 + $0x3c8] sm:$0xff] }
  0xa6   : > { %v1107_v33 = vsel %vm521_vm0, %v809_v21, 0.0  ;;  %1814 = vperm.xlu1 %2370, %v3619_v19   ;;  %v3637_v22 = vadd.f32 1e-05, %v1240_v37  ;;  %v1207_v11 = vmul.f32 %v3621_v25, %v3621_v25  ;;  %v1108_v31 = vsel %vm521_vm0, %v841_v23, 0.0  ;;  %v826_v37 = vld [vmem:[%s4412_s6 + $0x140] sm:$0xff] }
  0xa7   : > { %v1191_v24 = vmul.f32 0.001953125, %v1099_v44  ;;  %v3642_v30 = vpop.eup %2396  ;;  %v1291_v58 = vmul.f32 %v3563_v61, %v1290_v46  ;;  %v999_v43 = vadd.f32 %v998_v32, %v997_v50  ;;  %v1109_v48 = vadd.f32 %v1108_v31, %v1107_v33  ;;  %v794_v32 = vld [vmem:[%s4412_s6 + $0x40] sm:$0xff] }
  0xa8   : > { %v1110_v49 = vsel %vm521_vm0, %v873_v56, 0.0  ;;  %v1307_v55 = vmul.f32 %v3642_v30, %v3575_v47  ;;  %vm1312_vm7 = vweird.f32 %v3575_v47  ;;  %vm1313_vm8 = vweird.f32 %v3642_v30  ;;  %v918_v50 = vld [vmem:[%s4413_s7 + $0x20] sm:$0xff] }
  0xa9   : > { %2398 = vrsqrt.f32 %v3637_v22  ;;  %v1295_v62 = vsel %vm3633_vm6, %v3563_v61, %v1291_v58  ;;  %v1223_v0 = vsub.f32 %v1191_v24, %v1207_v11  ;;  %v1001_v6 = vadd.f32 %v1000_v12, %v999_v43  ;;  %v811_v61 = vld [vmem:[%s4412_s6 + $0xc8] sm:$0xff]  ;;  %vm3714_vm10 = vmor %vm1312_vm7, %vm1313_vm8  ;;  %v858_v24 = vld [vmem:[%s4412_s6 + $0x240] sm:$0xff] }
  0xaa   : > { %v1111_v1 = vadd.f32 %v1110_v49, %v1109_v48  ;;  %v3672_v9 = vmul.f32 %v1295_v62, %v916_v40  ;;  %v1308_v57 = vmul.f32 %v3642_v30, %v1307_v55  ;;  %v1112_v52 = vsel %vm521_vm0, %v905_v42, 0.0  ;;  %v890_v40 = vld [vmem:[%s4412_s6 + $0x340] sm:$0xff] }
  0xab   : > { %v1009_v14 = vsel %vm521_vm0, %v795_v51, 0.0  ;;  %v1239_v15 = vmax.f32 %v1223_v0, 0.0  ;;  %v3680_v17 = vmul.f32 0.001953125, %v1001_v6  ;;  %v1010_v45 = vsel %vm521_vm0, %v827_v10, 0.0  ;;  %v810_v55 = vld [vmem:[%s4412_s6 + $0xc0] sm:$0xff] }
  0xac   : > { %v1113_v16 = vadd.f32 %v1112_v52, %v1111_v1  ;;  %1809 = vperm.xlu0 %2369, %v3672_v9   ;;  %v1309_v36 = vmul.f32 0.5, %v1308_v57  ;;  %v1011_v13 = vadd.f32 %v1010_v45, %v1009_v14  ;;  %v1012_v54 = vsel %vm521_vm0, %v859_v3, 0.0  ;;  %v842_v10 = vld [vmem:[%s4412_s6 + $0x1c0] sm:$0xff] }
  0xad   : > { %v1014_v27 = vsel %vm521_vm0, %v891_v39, 0.0  ;;  %v3692_v35 = vadd.f32 1e-05, %v1239_v15  ;;  %v1209_v21 = vmul.f32 %v3680_v17, %v3680_v17  ;;  %v1121_v2 = vsel %vm521_vm0, %v811_v61, 0.0  ;;  %v874_v14 = vld [vmem:[%s4412_s6 + $0x2c0] sm:$0xff] }
  0xae   : > { %v1193_v7 = vmul.f32 0.001953125, %v1113_v16  ;;  %v1310_v28 = vsub.f32 1.5, %v1309_v36  ;;  %vm1332_vm9 = vweird.f32 %v3637_v22  ;;  %v1013_v23 = vadd.f32 %v1012_v54, %v1011_v13  ;;  %v906_v15 = vld [vmem:[%s4412_s6 + $0x3c0] sm:$0xff]  ;;  %v796_v36 = vld [vmem:[%s4412_s6 + $0x50] sm:$0xff] }
  0xaf   : > { %v3697_v26 = vpop.eup %2398  ;;  %v1122_v29 = vsel %vm521_vm0, %v843_v60, 0.0  ;;  %2400 = vrsqrt.f32 %v3692_v35  ;;  %v1124_v46 = vsel %vm521_vm0, %v875_v38, 0.0  ;;  %v1126_v31 = vsel %vm521_vm0, %v907_v63, 0.0  ;;  %v920_v54 = vld [vmem:[%s4413_s7 + $0x30] sm:$0xff]  ;;  %v862_v38 = vld [vmem:[%s4412_s6 + $0x260] sm:$0xff] }
  0xb0   : > { %v1327_v56 = vmul.f32 %v3697_v26, %v3637_v22  ;;  %vm1333_vm11 = vweird.f32 %v3697_v26  ;;  %v1311_v12 = vmul.f32 %v3642_v30, %v1310_v28  ;;  %v1225_v47 = vsub.f32 %v1193_v7, %v1209_v21  ;;  %v860_v28 = vld [vmem:[%s4412_s6 + $0x250] sm:$0xff] }
  0xb1   : > { %v1015_v33 = vadd.f32 %v1014_v27, %v1013_v23  ;;  %v1123_v34 = vadd.f32 %v1122_v29, %v1121_v2  ;;  %v1002_v58 = vsel %vm521_vm0, %v794_v32, 0.0  ;;  %v1003_v42 = vsel %vm521_vm0, %v826_v37, 0.0  ;;  %vm3774_vm12 = vmor %vm1332_vm9, %vm1333_vm11  ;;  %v828_v2 = vld [vmem:[%s4412_s6 + $0x150] sm:$0xff] }
  0xb2   : > { %v1328_v11 = vmul.f32 %v3697_v26, %v1327_v56  ;;  %v1315_v43 = vsel %vm3714_vm10, %v3642_v30, %v1311_v12  ;;  %v1241_v48 = vmax.f32 %v1225_v47, 0.0  ;;  %v1004_v6 = vadd.f32 %v1003_v42, %v1002_v58  ;;  %v844_v12 = vld [vmem:[%s4412_s6 + $0x1d0] sm:$0xff] }
  0xb3   : > { %v1125_v49 = vadd.f32 %v1124_v46, %v1123_v34  ;;  %v3740_v51 = vmul.f32 0.001953125, %v1015_v33  ;;  %v3748_v62 = vmul.f32 %v1315_v43, %v918_v50  ;;  %v1005_v1 = vsel %vm521_vm0, %v858_v24, 0.0  ;;  %v812_v50 = vld [vmem:[%s4412_s6 + $0xd0] sm:$0xff] }
  0xb4   : > { %v1329_v0 = vmul.f32 0.5, %v1328_v11  ;;  %v3751_v3 = vadd.f32 1e-05, %v1241_v48  ;;  %v1007_v57 = vsel %vm521_vm0, %v890_v40, 0.0  ;;  %v1006_v16 = vadd.f32 %v1005_v1, %v1004_v6  ;;  %v892_v34 = vld [vmem:[%s4412_s6 + $0x350] sm:$0xff] }
  0xb5   : > { %v1127_v30 = vadd.f32 %v1126_v31, %v1125_v49  ;;  %v1211_v39 = vmul.f32 %v3740_v51, %v3740_v51  ;;  %v3756_v52 = vpop.eup %2400  ;;  %1819 = vperm.xlu2 %2371, %v3748_v62   ;;  %v1114_v60 = vsel %vm521_vm0, %v810_v55, 0.0  ;;  %v1115_v45 = vsel %vm521_vm0, %v842_v10, 0.0  ;;  %v876_v58 = vld [vmem:[%s4412_s6 + $0x2d0] sm:$0xff] }
  0xb6   : > { %v1330_v61 = vsub.f32 1.5, %v1329_v0  ;;  %v1317_v13 = vmul.f32 %v3756_v52, %v3692_v35  ;;  %vm1322_vm13 = vweird.f32 %v3692_v35  ;;  %vm1323_vm14 = vweird.f32 %v3756_v52  ;;  %v919_v35 = vld [vmem:[%s4413_s7 + $0x28] sm:$0xff] }
  0xb7   : > { %2402 = vrsqrt.f32 %v3751_v3  ;;  %v1195_v22 = vmul.f32 0.001953125, %v1127_v30  ;;  %v1008_v7 = vadd.f32 %v1007_v57, %v1006_v16  ;;  %v1116_v21 = vadd.f32 %v1115_v45, %v1114_v60  ;;  %vm3830_vm1 = vmor %vm1322_vm13, %vm1323_vm14  ;;  %v908_v30 = vld [vmem:[%s4412_s6 + $0x3d0] sm:$0xff]  ;;  %v798_v16 = vld [vmem:[%s4412_s6 + $0x60] sm:$0xff] }
  0xb8   : > { %v1331_v27 = vmul.f32 %v3697_v26, %v1330_v61  ;;  %v1318_v63 = vmul.f32 %v3756_v52, %v1317_v13  ;;  %v1117_v23 = vsel %vm521_vm0, %v874_v14, 0.0  ;;  %v1119_v29 = vsel %vm521_vm0, %v906_v15, 0.0 }
  0xb9   : > { %v1016_v32 = vsel %vm521_vm0, %v796_v36, 0.0  ;;  %v1227_v44 = vsub.f32 %v1195_v22, %v1211_v39  ;;  %v1118_v56 = vadd.f32 %v1117_v23, %v1116_v21  ;;  %v3800_v46 = vmul.f32 0.001953125, %v1008_v7  ;;  %v830_v36 = vld [vmem:[%s4412_s6 + $0x160] sm:$0xff] }
  0xba   : > { %v1335_v37 = vsel %vm3774_vm12, %v3697_v26, %v1331_v27  ;;  %v1319_v33 = vmul.f32 0.5, %v1318_v63  ;;  %v1017_v26 = vsel %vm521_vm0, %v828_v2, 0.0  ;;  %v1019_v24 = vsel %vm521_vm0, %v860_v28, 0.0  ;;  %v894_v7 = vld [vmem:[%s4412_s6 + $0x360] sm:$0xff] }
  0xbb   : > { %v3808_v47 = vmul.f32 %v1335_v37, %v920_v54  ;;  %v1243_v11 = vmax.f32 %v1227_v44, 0.0  ;;  %v1120_v31 = vadd.f32 %v1119_v29, %v1118_v56  ;;  %v1210_v40 = vmul.f32 %v3800_v46, %v3800_v46  ;;  %v814_v63 = vld [vmem:[%s4412_s6 + $0xe0] sm:$0xff] }
  0xbc   : > { %v1018_v42 = vadd.f32 %v1017_v26, %v1016_v32  ;;  %v1320_v48 = vsub.f32 1.5, %v1319_v33  ;;  %vm1342_vm15 = vweird.f32 %v3751_v3  ;;  %v1128_v49 = vsel %vm521_vm0, %v812_v50, 0.0 }
  0xbd   : > { %v3820_v43 = vpop.eup %2402  ;;  %1829 = vperm.xlu1 %2370, %v3808_v47   ;;  %v1129_v55 = vsel %vm521_vm0, %v844_v12, 0.0  ;;  %v3836_v6 = vadd.f32 1e-05, %v1243_v11  ;;  %v1194_v1 = vmul.f32 0.001953125, %v1120_v31  ;;  %v1021_v39 = vsel %vm521_vm0, %v892_v34, 0.0  ;;  %v878_v11 = vld [vmem:[%s4412_s6 + $0x2e0] sm:$0xff] }
  0xbe   : > { %v1337_v0 = vmul.f32 %v3820_v43, %v3751_v3  ;;  %v1321_v57 = vmul.f32 %v3756_v52, %v1320_v48  ;;  %v1020_v61 = vadd.f32 %v1019_v24, %v1018_v42  ;;  %v1130_v14 = vadd.f32 %v1129_v55, %v1128_v49  ;;  %v910_v31 = vld [vmem:[%s4412_s6 + $0x3e0] sm:$0xff]  ;;  %v921_v42 = vld [vmem:[%s4413_s7 + $0x38] sm:$0xff] }
  0xbf   : > { %v1131_v15 = vsel %vm521_vm0, %v876_v58, 0.0  ;;  %vm1343_vm2 = vweird.f32 %v3820_v43  ;;  %2404 = vrsqrt.f32 %v3836_v6  ;;  %v1226_v45 = vsub.f32 %v1194_v1, %v1210_v40  ;;  %v797_v1 = vld [vmem:[%s4412_s6 + $0x58] sm:$0xff] }
  0xc0   : > { %v1338_v60 = vmul.f32 %v3820_v43, %v1337_v0  ;;  %v1325_v13 = vsel %vm3830_vm1, %v3756_v52, %v1321_v57  ;;  %v1022_v54 = vadd.f32 %v1021_v39, %v1020_v61  ;;  %v1132_v27 = vadd.f32 %v1131_v15, %v1130_v14  ;;  %v846_v52 = vld [vmem:[%s4412_s6 + $0x1e0] sm:$0xff]  ;;  %vm3887_vm3 = vmor %vm1342_vm15, %vm1343_vm2  ;;  %v861_v39 = vld [vmem:[%s4412_s6 + $0x258] sm:$0xff] }
  0xc1   : > { %v1133_v22 = vsel %vm521_vm0, %v908_v30, 0.0  ;;  %v3866_v21 = vmul.f32 %v1325_v13, %v919_v35  ;;  %v1242_v28 = vmax.f32 %v1226_v45, 0.0  ;;  %v1030_v23 = vsel %vm521_vm0, %v798_v16, 0.0  ;;  %v829_v30 = vld [vmem:[%s4412_s6 + $0x158] sm:$0xff] }
  0xc2   : > { %v1339_v2 = vmul.f32 0.5, %v1338_v60  ;;  %v1134_v29 = vadd.f32 %v1133_v22, %v1132_v27  ;;  %v3875_v32 = vmul.f32 0.001953125, %v1022_v54  ;;  %v1031_v37 = vsel %vm521_vm0, %v830_v36, 0.0  ;;  %v813_v36 = vld [vmem:[%s4412_s6 + $0xd8] sm:$0xff] }
  0xc3   : > { %v1033_v44 = vsel %vm521_vm0, %v862_v38, 0.0  ;;  %1824 = vperm.xlu0 %2369, %v3866_v21   ;;  %v3880_v50 = vadd.f32 1e-05, %v1242_v28  ;;  %v1032_v12 = vadd.f32 %v1031_v37, %v1030_v23  ;;  %v1035_v33 = vsel %vm521_vm0, %v894_v7, 0.0  ;;  %v845_v38 = vld [vmem:[%s4412_s6 + $0x1d8] sm:$0xff] }
  0xc4   : > { %v1340_v56 = vsub.f32 1.5, %v1339_v2  ;;  %v1196_v26 = vmul.f32 0.001953125, %v1134_v29  ;;  %v1212_v24 = vmul.f32 %v3875_v32, %v3875_v32  ;;  %v1142_v40 = vsel %vm521_vm0, %v814_v63, 0.0  ;;  %v893_v13 = vld [vmem:[%s4412_s6 + $0x358] sm:$0xff] }
  0xc5   : > { %v1143_v3 = vsel %vm521_vm0, %v846_v52, 0.0  ;;  %v3901_v58 = vpop.eup %2404  ;;  %vm1362_vm4 = vweird.f32 %v3836_v6  ;;  %2406 = vrsqrt.f32 %v3880_v50  ;;  %v1034_v49 = vadd.f32 %v1033_v44, %v1032_v12  ;;  %v877_v29 = vld [vmem:[%s4412_s6 + $0x2d8] sm:$0xff] }
  0xc6   : > { %v1341_v48 = vmul.f32 %v3820_v43, %v1340_v56  ;;  %v1357_v55 = vmul.f32 %v3901_v58, %v3836_v6  ;;  %vm1363_vm5 = vweird.f32 %v3901_v58  ;;  %v1228_v10 = vsub.f32 %v1196_v26, %v1212_v24  ;;  %v909_v37 = vld [vmem:[%s4412_s6 + $0x3d8] sm:$0xff]  ;;  %v799_v26 = vld [vmem:[%s4412_s6 + $0x68] sm:$0xff] }
  0xc7   : > { %v1144_v0 = vadd.f32 %v1143_v3, %v1142_v40  ;;  %v1036_v57 = vadd.f32 %v1035_v33, %v1034_v49  ;;  %v1145_v61 = vsel %vm521_vm0, %v878_v11, 0.0  ;;  %v1147_v14 = vsel %vm521_vm0, %v910_v31, 0.0  ;;  %vm3970_vm7 = vmor %vm1362_vm4, %vm1363_vm5  ;;  %v831_v3 = vld [vmem:[%s4412_s6 + $0x168] sm:$0xff] }
  0xc8   : > { %v1345_v35 = vsel %vm3887_vm3, %v3820_v43, %v1341_v48  ;;  %v1358_v16 = vmul.f32 %v3901_v58, %v1357_v55  ;;  %v1244_v60 = vmax.f32 %v1228_v10, 0.0  ;;  %v1023_v54 = vsel %vm521_vm0, %v797_v1, 0.0  ;;  %v923_v6 = vld [vmem:[%s4413_s7 + $0x48] sm:$0xff] }
  0xc9   : > { %v3926_v15 = vmul.f32 %v1345_v35, %v921_v42  ;;  %v1146_v45 = vadd.f32 %v1145_v61, %v1144_v0  ;;  %v3935_v43 = vmul.f32 0.001953125, %v1036_v57  ;;  %v1024_v27 = vsel %vm521_vm0, %v829_v30, 0.0  ;;  %v863_v42 = vld [vmem:[%s4412_s6 + $0x268] sm:$0xff] }
  0xca   : > { %v1026_v22 = vsel %vm521_vm0, %v861_v39, 0.0  ;;  %v1359_v7 = vmul.f32 0.5, %v1358_v16  ;;  %v3944_v2 = vadd.f32 1e-05, %v1244_v60  ;;  %v1025_v63 = vadd.f32 %v1024_v27, %v1023_v54  ;;  %v815_v39 = vld [vmem:[%s4412_s6 + $0xe8] sm:$0xff] }
  0xcb   : > { %1834 = vperm.xlu2 %2371, %v3926_v15   ;;  %v1148_v28 = vadd.f32 %v1147_v14, %v1146_v45  ;;  %v3946_v52 = vpop.eup %2406  ;;  %vm1352_vm6 = vweird.f32 %v3880_v50  ;;  %v1214_v23 = vmul.f32 %v3935_v43, %v3935_v43  ;;  %v1135_v44 = vsel %vm521_vm0, %v813_v36, 0.0  ;;  %v895_v14 = vld [vmem:[%s4412_s6 + $0x368] sm:$0xff] }
  0xcc   : > { %v1136_v56 = vsel %vm521_vm0, %v845_v38, 0.0  ;;  %v1360_v12 = vsub.f32 1.5, %v1359_v7  ;;  %v1347_v33 = vmul.f32 %v3946_v52, %v3880_v50  ;;  %2408 = vrsqrt.f32 %v3944_v2  ;;  %v847_v54 = vld [vmem:[%s4412_s6 + $0x1e8] sm:$0xff]  ;;  %v922_v50 = vld [vmem:[%s4413_s7 + $0x40] sm:$0xff] }
  0xcd   : > { %v1028_v34 = vsel %vm521_vm0, %v893_v13, 0.0  ;;  %vm1353_vm8 = vweird.f32 %v3946_v52  ;;  %v1198_v11 = vmul.f32 0.001953125, %v1148_v28  ;;  %v1027_v31 = vadd.f32 %v1026_v22, %v1025_v63 }
  0xce   : > { %v1137_v40 = vadd.f32 %v1136_v56, %v1135_v44  ;;  %v1361_v48 = vmul.f32 %v3901_v58, %v1360_v12  ;;  %v1348_v49 = vmul.f32 %v3946_v52, %v1347_v33  ;;  %v1138_v55 = vsel %vm521_vm0, %v877_v29, 0.0  ;;  %vm4016_vm10 = vmor %vm1352_vm6, %vm1353_vm8  ;;  %v911_v33 = vld [vmem:[%s4412_s6 + $0x3e8] sm:$0xff] }
  0xcf   : > { %v1140_v10 = vsel %vm521_vm0, %v909_v37, 0.0  ;;  %v1230_v0 = vsub.f32 %v1198_v11, %v1214_v23  ;;  %v1029_v1 = vadd.f32 %v1028_v34, %v1027_v31  ;;  %v1037_v35 = vsel %vm521_vm0, %v799_v26, 0.0  ;;  %v879_v37 = vld [vmem:[%s4412_s6 + $0x2e8] sm:$0xff]  ;;  %v801_v31 = vld [vmem:[%s4412_s6 + $0x78] sm:$0xff] }
  0xd0   : > { %v1139_v30 = vadd.f32 %v1138_v55, %v1137_v40  ;;  %v1365_v57 = vsel %vm3970_vm7, %v3901_v58, %v1361_v48  ;;  %v1349_v61 = vmul.f32 0.5, %v1348_v49  ;;  %v1038_v16 = vsel %vm521_vm0, %v831_v3, 0.0  ;;  %v833_v40 = vld [vmem:[%s4412_s6 + $0x178] sm:$0xff] }
  0xd1   : > { %v1040_v60 = vsel %vm521_vm0, %v863_v42, 0.0  ;;  %v4000_v45 = vmul.f32 %v1365_v57, %v923_v6  ;;  %v1246_v36 = vmax.f32 %v1230_v0, 0.0  ;;  %v4002_v13 = vmul.f32 0.001953125, %v1029_v1  ;;  %v865_v49 = vld [vmem:[%s4412_s6 + $0x278] sm:$0xff] }
  0xd2   : > { %v1141_v38 = vadd.f32 %v1140_v10, %v1139_v30  ;;  %v4007_v58 = vpop.eup %2408  ;;  %v1350_v27 = vsub.f32 1.5, %v1349_v61  ;;  %vm1372_vm9 = vweird.f32 %v3944_v2  ;;  %v1039_v22 = vadd.f32 %v1038_v16, %v1037_v35  ;;  %v817_v30 = vld [vmem:[%s4412_s6 + $0xf8] sm:$0xff] }
  0xd3   : > { %v1149_v7 = vsel %vm521_vm0, %v815_v39, 0.0  ;;  %1844 = vperm.xlu1 %2370, %v4000_v45   ;;  %v1367_v63 = vmul.f32 %v4007_v58, %v3944_v2  ;;  %v4022_v23 = vadd.f32 1e-05, %v1246_v36  ;;  %v1042_v44 = vsel %vm521_vm0, %v895_v14, 0.0  ;;  %v849_v57 = vld [vmem:[%s4412_s6 + $0x1f8] sm:$0xff] }
  0xd4   : > { %v1197_v29 = vmul.f32 0.001953125, %v1141_v38  ;;  %v1351_v56 = vmul.f32 %v3946_v52, %v1350_v27  ;;  %v1213_v12 = vmul.f32 %v4002_v13, %v4002_v13  ;;  %v1041_v34 = vadd.f32 %v1040_v60, %v1039_v22 }
  0xd5   : > { %v1150_v26 = vsel %vm521_vm0, %v847_v54, 0.0  ;;  %v1368_v24 = vmul.f32 %v4007_v58, %v1367_v63  ;;  %vm1373_vm11 = vweird.f32 %v4007_v58  ;;  %2410 = vrsqrt.f32 %v4022_v23 }
  0xd6   : > { %v1151_v11 = vadd.f32 %v1150_v26, %v1149_v7  ;;  %v1355_v3 = vsel %vm4016_vm10, %v3946_v52, %v1351_v56  ;;  %v1229_v42 = vsub.f32 %v1197_v29, %v1213_v12  ;;  %v1043_v6 = vadd.f32 %v1042_v44, %v1041_v34  ;;  %v897_v52 = vld [vmem:[%s4412_s6 + $0x378] sm:$0xff]  ;;  %vm4076_vm12 = vmor %vm1372_vm9, %vm1373_vm11  ;;  %v924_v29 = vld [vmem:[%s4413_s7 + $0x50] sm:$0xff] }
  0xd7   : > { %v1152_v48 = vsel %vm521_vm0, %v879_v37, 0.0  ;;  %v4054_v55 = vmul.f32 %v1355_v3, %v922_v50  ;;  %v1369_v10 = vmul.f32 0.5, %v1368_v24  ;;  %v1154_v1 = vsel %vm521_vm0, %v911_v33, 0.0  ;;  %v881_v44 = vld [vmem:[%s4412_s6 + $0x2f8] sm:$0xff]  ;;  %v800_v34 = vld [vmem:[%s4412_s6 + $0x70] sm:$0xff] }
  0xd8   : > { %v1153_v0 = vadd.f32 %v1152_v48, %v1151_v11  ;;  %v1245_v39 = vmax.f32 %v1229_v42, 0.0  ;;  %v4063_v35 = vmul.f32 0.001953125, %v1043_v6  ;;  %v1051_v61 = vsel %vm521_vm0, %v801_v31, 0.0  ;;  %v913_v50 = vld [vmem:[%s4412_s6 + $0x3f8] sm:$0xff] }
  0xd9   : > { %v1052_v14 = vsel %vm521_vm0, %v833_v40, 0.0  ;;  %1839 = vperm.xlu0 %2369, %v4054_v55   ;;  %v1370_v16 = vsub.f32 1.5, %v1369_v10  ;;  %v1054_v38 = vsel %vm521_vm0, %v865_v49, 0.0  ;;  %v1056_v7 = vsel %vm521_vm0, %v897_v52, 0.0  ;;  %v832_v40 = vld [vmem:[%s4412_s6 + $0x170] sm:$0xff] }
  0xda   : > { %v1155_v60 = vadd.f32 %v1154_v1, %v1153_v0  ;;  %v1053_v36 = vadd.f32 %v1052_v14, %v1051_v61  ;;  %v4080_v27 = vadd.f32 1e-05, %v1245_v39  ;;  %v1215_v22 = vmul.f32 %v4063_v35, %v4063_v35  ;;  %v864_v49 = vld [vmem:[%s4412_s6 + $0x270] sm:$0xff] }
  0xdb   : > { %v1163_v28 = vsel %vm521_vm0, %v817_v30, 0.0  ;;  %v2411_v63 = vpop.eup %2410  ;;  %v1371_v2 = vmul.f32 %v4007_v58, %v1370_v16  ;;  %v1164_v12 = vsel %vm521_vm0, %v849_v57, 0.0  ;;  %v1166_v6 = vsel %vm521_vm0, %v881_v44, 0.0  ;;  %v816_v1 = vld [vmem:[%s4412_s6 + $0xf0] sm:$0xff] }
  0xdc   : > { %v1199_v37 = vmul.f32 0.001953125, %v1155_v60  ;;  %v1055_v56 = vadd.f32 %v1054_v38, %v1053_v36  ;;  %v1387_v33 = vmul.f32 %v2411_v63, %v4022_v23  ;;  %2412 = vrsqrt.f32 %v4080_v27  ;;  %v848_v30 = vld [vmem:[%s4412_s6 + $0x1f0] sm:$0xff] }
  0xdd   : > { %v1375_v26 = vsel %vm4076_vm12, %v4007_v58, %v1371_v2  ;;  %v1165_v31 = vadd.f32 %v1164_v12, %v1163_v28  ;;  %v1168_v48 = vsel %vm521_vm0, %v913_v50, 0.0  ;;  %v1044_v52 = vsel %vm521_vm0, %v800_v34, 0.0  ;;  %v880_v57 = vld [vmem:[%s4412_s6 + $0x2f0] sm:$0xff]  ;;  %v926_v12 = vld [vmem:[%s4413_s7 + $0x60] sm:$0xff] }
  0xde   : > { %v1231_v24 = vsub.f32 %v1199_v37, %v1215_v22  ;;  %v1057_v11 = vadd.f32 %v1056_v7, %v1055_v56  ;;  %v4108_v3 = vmul.f32 %v1375_v26, %v924_v29  ;;  %v1388_v42 = vmul.f32 %v2411_v63, %v1387_v33  ;;  %v896_v61 = vld [vmem:[%s4412_s6 + $0x370] sm:$0xff] }
  0xdf   : > { %v1167_v58 = vadd.f32 %v1166_v6, %v1165_v31  ;;  %vm1392_vm13 = vweird.f32 %v4022_v23  ;;  %vm1393_vm14 = vweird.f32 %v2411_v63  ;;  %v1045_v14 = vsel %vm521_vm0, %v832_v40, 0.0  ;;  %v912_v28 = vld [vmem:[%s4412_s6 + $0x3f0] sm:$0xff] }
  0xe0   : > { %v1247_v10 = vmax.f32 %v1231_v24, 0.0  ;;  %v4115_v0 = vmul.f32 0.001953125, %v1057_v11  ;;  %1849 = vperm.xlu2 %2371, %v4108_v3   ;;  %v1389_v39 = vmul.f32 0.5, %v1388_v42  ;;  %v1046_v36 = vadd.f32 %v1045_v14, %v1044_v52  ;;  %vm4143_vm15 = vmor %vm1392_vm13, %vm1393_vm14 }
  0xe1   : > { %v1169_v60 = vadd.f32 %v1168_v48, %v1167_v58  ;;  %v1047_v38 = vsel %vm521_vm0, %v864_v49, 0.0  ;;  %v1156_v29 = vsel %vm521_vm0, %v816_v1, 0.0  ;;  %v1157_v2 = vsel %vm521_vm0, %v848_v30, 0.0 }
  0xe2   : > { %v1263_v16 = vadd.f32 1e-05, %v1247_v10  ;;  %v2413_v54 = vpop.eup %2412  ;;  %v1390_v22 = vsub.f32 1.5, %v1389_v39  ;;  %v1217_v7 = vmul.f32 %v4115_v0, %v4115_v0  ;;  %v1049_v50 = vsel %vm521_vm0, %v896_v61, 0.0  ;;  %v925_v61 = vld [vmem:[%s4413_s7 + $0x58] sm:$0xff] }
  0xe3   : > { %v1377_v44 = vmul.f32 %v2413_v54, %v4080_v27  ;;  %v1159_v56 = vsel %vm521_vm0, %v880_v57, 0.0  ;;  %v1201_v34 = vmul.f32 0.001953125, %v1169_v60  ;;  %v1048_v26 = vadd.f32 %v1047_v38, %v1046_v36 }
  0xe4   : > { %2414 = vrsqrt.f32 %v1263_v16  ;;  %v1391_v33 = vmul.f32 %v2411_v63, %v1390_v22  ;;  %v1158_v24 = vadd.f32 %v1157_v2, %v1156_v29  ;;  %v1161_v11 = vsel %vm521_vm0, %v912_v28, 0.0 }
  0xe5   : > { %v1378_v23 = vmul.f32 %v2413_v54, %v1377_v44  ;;  %v1233_v40 = vsub.f32 %v1201_v34, %v1217_v7  ;;  %v1050_v42 = vadd.f32 %v1049_v50, %v1048_v26  ;;  %vm1382_vm1 = vweird.f32 %v4080_v27  ;;  %v927_v44 = vld [vmem:[%s4413_s7 + $0x68] sm:$0xff]  ;;  %v930_v26 = vld [vmem:[%s4414_s8] sm:$0xff] }
  0xe6   : > { %v1395_v31 = vsel %vm4143_vm15, %v2411_v63, %v1391_v33  ;;  %v1160_v6 = vadd.f32 %v1159_v56, %v1158_v24  ;;  %vm1383_vm2 = vweird.f32 %v2413_v54  ;;  %vm1402_vm3 = vweird.f32 %v1263_v16 }
  0xe7   : > { %v4156_v48 = vmul.f32 %v1395_v31, %v926_v12  ;;  %v1379_v49 = vmul.f32 0.5, %v1378_v23  ;;  %v1249_v10 = vmax.f32 %v1233_v40, 0.0  ;;  %v4159_v1 = vmul.f32 0.001953125, %v1050_v42  ;;  %vm1384_vm0 = vmor %vm1382_vm1, %vm1383_vm2  ;;  %v929_v31 = vld [vmem:[%s4413_s7 + $0x78] sm:$0xff] }
  0xe8   : > { %v1162_v58 = vadd.f32 %v1161_v11, %v1160_v6  ;;  %v1442_v34 = vmul.f32 %v3473_v4, %v3198_v53  ;;  %v1445_v53 = vmul.f32 %v3619_v19, %v3337_v18  ;;  %v928_v18 = vld [vmem:[%s4413_s7 + $0x70] sm:$0xff]  ;;  %vm1723_vm12 = vcmask 523264  }
  0xe9   : > { %1859 = vperm.xlu1 %2370, %v4156_v48   ;;  %v1380_v52 = vsub.f32 1.5, %v1379_v49  ;;  %v1265_v63 = vadd.f32 1e-05, %v1249_v10  ;;  %v1216_v27 = vmul.f32 %v4159_v1, %v4159_v1 }
  0xea   : > { %v2415_v30 = vpop.eup %2414  ;;  %v1200_v57 = vmul.f32 0.001953125, %v1162_v58  ;;  %v1458_v42 = vsub.f32 %v930_v26, %v1442_v34  ;;  %v945_v34 = vld [vmem:[%s4414_s8 + $0x78] sm:$0xff] }
  0xeb   : > { %v1397_v39 = vmul.f32 %v2415_v30, %v1263_v16  ;;  %v1381_v14 = vmul.f32 %v2413_v54, %v1380_v52  ;;  %2416 = vrsqrt.f32 %v1265_v63  ;;  %vm1403_vm4 = vweird.f32 %v2415_v30  ;;  %v933_v52 = vld [vmem:[%s4414_s8 + $0x18] sm:$0xff] }
  0xec   : > { %v1232_v38 = vsub.f32 %v1200_v57, %v1216_v27  ;;  %vm1404_vm5 = vmor %vm1402_vm3, %vm1403_vm4  ;;  %vm1422_vm6 = vweird.f32 %v1265_v63  ;;  %v1461_v57 = vsub.f32 %v933_v52, %v1445_v53  ;;  %v1447_v27 = vmul.f32 %v3866_v21, %v3621_v25  ;;  %v934_v25 = vld [vmem:[%s4414_s8 + $0x20] sm:$0xff] }
  0xed   : > { %v1398_v60 = vmul.f32 %v2415_v30, %v1397_v39  ;;  %v1385_v36 = vsel %vm1384_vm0, %v2413_v54, %v1381_v14  ;;  %v4196_v39 = vmul.f32 %v4108_v3, %v3875_v32  ;;  %v1443_v14 = vmul.f32 %v3554_v41, %v3283_v59  ;;  %v931_v3 = vld [vmem:[%s4414_s8 + $0x8] sm:$0xff] }
  0xee   : > { %v4167_v22 = vmul.f32 %v1385_v36, %v925_v61  ;;  %v1248_v28 = vmax.f32 %v1232_v38, 0.0  ;;  %v1448_v32 = vmul.f32 %v3808_v47, %v3556_v8  ;;  %v935_v59 = vld [vmem:[%s4414_s8 + $0x28] sm:$0xff]  ;;  %v1446_v8 = vmul.f32 %v3748_v62, %v3471_v5  ;;  %v938_v5 = vld [vmem:[%s4414_s8 + $0x40] sm:$0xff] }
  0xef   : > { %v1399_v7 = vmul.f32 0.5, %v1398_v60  ;;  %v936_v60 = vld [vmem:[%s4414_s8 + $0x30] sm:$0xff]  ;;  %v1459_v41 = vsub.f32 %v931_v3, %v1443_v14  ;;  %v1463_v38 = vsub.f32 %v935_v59, %v1447_v27  ;;  %v1451_v47 = vmul.f32 %v4000_v45, %v3740_v51 }
  0xf0   : > { %1854 = vperm.xlu0 %2369, %v4167_v22   ;;  %v1264_v2 = vadd.f32 1e-05, %v1248_v28  ;;  %v1464_v36 = vsub.f32 %v936_v60, %v1448_v32  ;;  %v1450_v21 = vmul.f32 %v4054_v55, %v3800_v46  ;;  %v4231_v28 = vpop.permute.xlu0 %1561  ;;  %v1462_v51 = vsub.f32 %v934_v25, %v1446_v8  ;;  %v937_v55 = vld [vmem:[%s4414_s8 + $0x38] sm:$0xff] }
  0xf1   : > { %v1400_v29 = vsub.f32 1.5, %v1399_v7  ;;  %v2417_v37 = vpop.eup %2416  ;;  %v939_v7 = vld [vmem:[%s4414_s8 + $0x48] sm:$0xff]  ;;  %v1454_v46 = vmul.f32 %v4156_v48, %v3935_v43 }
  0xf2   : > { %v1417_v56 = vmul.f32 %v2417_v37, %v1265_v63  ;;  %2418 = vrsqrt.f32 %v1264_v2  ;;  %vm1423_vm7 = vweird.f32 %v2417_v37  ;;  %vm1412_vm9 = vweird.f32 %v1264_v2  ;;  %v932_v63 = vld [vmem:[%s4414_s8 + $0x10] sm:$0xff] }
  0xf3   : > { %v1401_v50 = vmul.f32 %v2415_v30, %v1400_v29  ;;  %vm1424_vm8 = vmor %vm1422_vm6, %vm1423_vm7  ;;  %v1544_v29 = vpop.f32.mrf.mxu3  ;;  %v1467_v62 = vsub.f32 %v939_v7, %v1451_v47  ;;  %v1466_v45 = vsub.f32 %v938_v5, %v1450_v21 }
  0xf4   : > { %v1418_v33 = vmul.f32 %v2417_v37, %v1417_v56 }
  0xf5   : > { %v1405_v54 = vsel %vm1404_vm5, %v2415_v30, %v1401_v50  ;;  %v1444_v30 = vmul.f32 %v3672_v9, %v3408_v20  ;;  %v942_v50 = vld [vmem:[%s4414_s8 + $0x60] sm:$0xff] }
  0xf6   : > { %v4173_v12 = vmul.f32 %v1405_v54, %v927_v44  ;;  %v1419_v16 = vmul.f32 0.5, %v1418_v33  ;;  %v1453_v44 = vmul.f32 %v4167_v22, %v4002_v13  ;;  %v1470_v43 = vsub.f32 %v942_v50, %v1454_v46  ;;  %v1582_v33 = vpop.permute.xlu2 %1581  ;;  %v940_v13 = vld [vmem:[%s4414_s8 + $0x50] sm:$0xff] }
  0xf7   : > { %v1460_v9 = vsub.f32 %v932_v63, %v1444_v30 }
  0xf8   : > { %1864 = vperm.xlu2 %2371, %v4173_v12   ;;  %v2419_v24 = vpop.eup %2418  ;;  %v1420_v23 = vsub.f32 1.5, %v1419_v16 }
  0xf9   : > { %v1407_v11 = vmul.f32 %v2419_v24, %v1264_v2  ;;  %vm1413_vm10 = vweird.f32 %v2419_v24  ;;  %v1572_v2 = vpop.permute.xlu1 %1571 }
  0xfa   : > { %v1421_v40 = vmul.f32 %v2417_v37, %v1420_v23  ;;  %vm1414_vm11 = vmor %vm1412_vm9, %vm1413_vm10  ;;  %v944_v23 = vld [vmem:[%s4414_s8 + $0x70] sm:$0xff]  ;;  %v1601_v27 = vmul.f32 %v1572_v2, %v1544_v29 }
  0xfb   : > { %v1408_v6 = vmul.f32 %v2419_v24, %v1407_v11  ;;  %v1546_v56 = vpop.f32.mrf.mxu3  ;;  %v1468_v11 = vsub.f32 %v940_v13, %v4196_v39  ;;  %v1539_v39 = vpop.f32.mrf.mxu0 }
  0xfc   : > { %v1425_v49 = vsel %vm1424_vm8, %v2417_v37, %v1421_v40  ;;  %v1449_v37 = vmul.f32 %v3926_v15, %v3680_v17  ;;  %v941_v17 = vld [vmem:[%s4414_s8 + $0x58] sm:$0xff]  ;;  %v1567_v15 = vpop.permute.xlu0 %1566  ;;  %v1599_v7 = vmul.f32 %v4231_v28, %v1539_v39 }
  0xfd   : > { %v4184_v10 = vmul.f32 %v1425_v49, %v929_v31  ;;  %v1409_v58 = vmul.f32 0.5, %v1408_v6  ;;  %v1469_v48 = vsub.f32 %v941_v17, %v1453_v44  ;;  %v943_v6 = vld [vmem:[%s4414_s8 + $0x68] sm:$0xff] }
  0xfe   : > { %v1465_v54 = vsub.f32 %v937_v55, %v1449_v37  ;;  %v2289_v17 = vld [vmem:[%s4408_s2 + $0x8] sm:$0xff] }
  0xff   : > { %1874 = vperm.xlu1 %2370, %v4184_v10   ;;  %v1410_v4 = vsub.f32 1.5, %v1409_v58  ;;  %v1457_v16 = vmul.f32 %v4184_v10, %v4115_v0 }
 0x100   : > { %1911 = vperm.xlu2 %2371, %v1458_v42   ;;  %v1455_v42 = vmul.f32 %v4173_v12, %v4063_v35 }
 0x101   : > { %v1411_v19 = vmul.f32 %v2419_v24, %v1410_v4  ;;  %v1577_v26 = vpop.permute.xlu1 %1576  ;;  %v1473_v0 = vsub.f32 %v945_v34, %v1457_v16  ;;  %v2295_v16 = vld [vmem:[%s4408_s2 + $0x38] sm:$0xff] }
 0x102   : > { %v1471_v58 = vsub.f32 %v943_v6, %v1455_v42  ;;  %v1602_v60 = vmul.f32 %v1577_v26, %v1546_v56  ;;  %v2288_v56 = vld [vmem:[%s4408_s2] sm:$0xff] }
 0x103   : > { %v1415_v20 = vsel %vm1414_vm11, %v2419_v24, %v1411_v19  ;;  %v1549_v24 = vpop.f32.mrf.mxu3 }
 0x104   : > { %v1440_v61 = vmul.f32 %v1415_v20, %v928_v18  ;;  %v1597_v40 = vpop.permute.xlu0 %1596 }
 0x106   : > { %1869 = vperm.xlu0 %2369, %v1440_v61   ;;  %v1456_v22 = vmul.f32 %v1440_v61, %v4159_v1  ;;  %v1592_v1 = vpop.permute.xlu2 %1591 }
 0x107   : > { %1921 = vperm.xlu1 %2370, %v1460_v9  }
 0x108   : > { %1926 = vperm.xlu2 %2371, %v1461_v57   ;;  %v1472_v31 = vsub.f32 %v944_v23, %v1456_v22  ;;  %v1603_v57 = vmul.f32 %v1582_v33, %v1549_v24  ;;  %v2294_v33 = vld [vmem:[%s4408_s2 + $0x30] sm:$0xff] }
 0x109   : > { %v1640_v10 = vpop.permute.xlu1 %1639 }
 0x10b   : > { %v1551_v49 = vpop.f32.mrf.mxu3 }
 0x10c   : > { %v1587_v53 = vpop.permute.xlu0 %1586 }
 0x10d   : > { %v1604_v19 = vmul.f32 %v1587_v53, %v1551_v49 }
 0x10e   : > { %1916 = vperm.xlu0 %2369, %v1459_v41   ;;  %v1645_v30 = vpop.permute.xlu2 %1644 }
 0x10f   : > { %1936 = vperm.xlu1 %2370, %v1463_v38  }
 0x110   : > { %1941 = vperm.xlu2 %2371, %v1464_v36   ;;  %v1541_v36 = vpop.f32.mrf.mxu0 }
 0x111   : > { %v1630_v52 = vpop.permute.xlu1 %1629  ;;  %v1600_v5 = vmul.f32 %v1567_v15, %v1541_v36  ;;  %v2292_v15 = vld [vmem:[%s4408_s2 + $0x20] sm:$0xff] }
 0x112   : > { %v1651_v59 = vadd.f32 %v1630_v52, %v1603_v57 }
 0x113   : > { %v1554_v4 = vpop.f32.mrf.mxu3 }
 0x114   : > { %v1605_v63 = vmul.f32 %v1592_v1, %v1554_v4  ;;  %v1620_v18 = vpop.permute.xlu0 %1619 }
 0x115   : > { %v1649_v8 = vadd.f32 %v1620_v18, %v1601_v27 }
 0x116   : > { %1931 = vperm.xlu0 %2369, %v1462_v51   ;;  %v1653_v20 = vadd.f32 %v1640_v10, %v1605_v63  ;;  %v1635_v9 = vpop.permute.xlu2 %1634  ;;  %v1659_v51 = vmax.f32 %v1651_v59, 0.0 }
 0x117   : > { %1951 = vperm.xlu1 %2370, %v1466_v45   ;;  %v1652_v14 = vadd.f32 %v1635_v9, %v1604_v19  ;;  %v1657_v45 = vmax.f32 %v1649_v8, 0.0 }
 0x118   : > { %1956 = vperm.xlu2 %2371, %v1467_v62   ;;  %v1661_v41 = vmax.f32 %v1653_v20, 0.0  ;;  %v2421_v20 = vld [vmem:[%s2658_s28 + $0x10] sm:$0xff] }
 0x119   : > { %v1625_v32 = vpop.permute.xlu1 %1624  ;;  %v1660_v47 = vmax.f32 %v1652_v14, 0.0 }
 0x11a   : > { %v1650_v38 = vadd.f32 %v1625_v32, %v1602_v60 }
 0x11b   : > { %v1556_v35 = vpop.f32.mrf.mxu3  ;;  %v1681_v29 = vpack.c.bf16 %v1660_v47, %v1659_v51 }
 0x11c   : > { %v1606_v12 = vmul.f32 %v1597_v40, %v1556_v35  ;;  %v1615_v21 = vpop.permute.xlu0 %1614  ;;  %v1658_v62 = vmax.f32 %v1650_v38, 0.0 }
 0x11d   : > { %v1648_v37 = vadd.f32 %v1615_v21, %v1600_v5  ;;  %v2423_v5 = vld [vmem:[%s2658_s28 + $0x8] sm:$0xff] }
 0x11e   : > { %1946 = vperm.xlu0 %2369, %v1465_v54   ;;  %v1654_v61 = vadd.f32 %v1645_v30, %v1606_v12  ;;  %v1610_v2 = vpop.permute.xlu2 %1609  ;;  %v1680_v55 = vpack.c.bf16 %v1658_v62, %v1657_v45  ;;  %v2290_v54 = vld [vmem:[%s4408_s2 + $0x10] sm:$0xff]  ;;  %v2420_v12 = vld [vmem:[%s2658_s28] sm:$0xff]  ;;  %v2424_v62 = vld [vmem:[%s2658_s28 + $0x18] sm:$0xff] }
 0x11f   : > { %1966 = vperm.xlu1 %2370, %v1469_v48   ;;  %v1647_v46 = vadd.f32 %v1610_v2, %v1599_v7  ;;  %v1656_v44 = vmax.f32 %v1648_v37, 0.0  ;;  %v2291_v48 = vld [vmem:[%s4408_s2 + $0x18] sm:$0xff] }
 0x120   : > { %1971 = vperm.xlu2 %2371, %v1470_v43   ;;  %v1662_v3 = vmax.f32 %v1654_v61, 0.0  ;;  %v2293_v43 = vld [vmem:[%s4408_s2 + $0x28] sm:$0xff] }
 0x121   : > { %v1655_v50 = vmax.f32 %v1647_v46, 0.0  ;;  %v1800_v13 = vpop.permute.xlu1 %1799 }
 0x122   : > { %v1682_v25 = vpack.c.bf16 %v1662_v3, %v1661_v41 }
 0x123   : > { %v1679_v28 = vpack.c.bf16 %v1656_v44, %v1655_v50 }
 0x124   : > { %1752 = vmatpush.bf16.msrb.mxu0 %v1682_v25  ;;  %2304 = vmatpush.bf16.msra.mxu1 %v1682_v25  ;;  %v1810_v26 = vpop.permute.xlu0 %1809 }
 0x125   : > { %2305 = vmatpush.bf16.msra.mxu2 %v1682_v25  ;;  %v2422_v25 = vld [vmem:[%s2658_s28 + $0x40] sm:$0xff] }
 0x126   : > { %1961 = vperm.xlu0 %2369, %v1468_v11   ;;  %v1805_v22 = vpop.permute.xlu2 %1804 }
 0x127   : > { %1981 = vperm.xlu1 %2370, %v1472_v31  }
 0x128   : > { %1986 = vperm.xlu2 %2371, %v1473_v0   ;;  %1753 = vmatpush.bf16.msrb.mxu0 %v1681_v29 }
 0x129   : > { %2306 = vmatpush.bf16.msra.mxu1 %v1681_v29  ;;  %2307 = vmatpush.bf16.msra.mxu2 %v1681_v29  ;;  %v1815_v34 = vpop.permute.xlu1 %1814 }
 0x12c   : > { %1754 = vmatpush.bf16.msrb.mxu0 %v1680_v55 }
 0x12d   : > { %2308 = vmatpush.bf16.msra.mxu1 %v1680_v55  ;;  %2309 = vmatpush.bf16.msra.mxu2 %v1680_v55 }
 0x12e   : > { %1976 = vperm.xlu0 %2369, %v1471_v58   ;;  %v1820_v24 = vpop.permute.xlu2 %1819 }
 0x130   : > { %1755 = vmatpush.bf16.msrb.mxu0 %v1679_v28 }
 0x131   : > { %2310 = vmatpush.bf16.msra.mxu1 %v1679_v28  ;;  %2311 = vmatpush.bf16.msra.mxu2 %v1679_v28  ;;  %v4294_v23 = vpop.permute.xlu1 %1829 }
 0x133   : > { %2271 = vmatmul.msk.bf16.vlgmr.msrb.gmra.mxu0 %vm1723_vm12, %v2288_v56 }
 0x134   : > { %2272 = vmatmul.msk.bf16.vlgmr.msra.gmra.mxu1 %vm1723_vm12, %v2289_v17  ;;  %2275 = vmatmul.msk.bf16.vlgmr.msra.gmra.mxu2 %vm1723_vm12, %v2292_v15 }
 0x135   : > { %v4296_v11 = vpop.permute.xlu0 %1824 }
 0x136   : > { %v4298_v0 = vpop.permute.xlu2 %1834 }
 0x13e   : > { %v4300_v42 = vpop.permute.xlu2 %1849 }
 0x144   : > { %2273 = vmatmul.msk.bf16.gmra.mxu1 %vm1723_vm12, %v2290_v54  ;;  %2276 = vmatmul.msk.bf16.gmra.mxu2 %vm1723_vm12, %v2293_v43  ;;  %v2425_v54 = vld [vmem:[%s2658_s28 + $0x48] sm:$0xff] }
 0x145   : > { %v1845_v31 = vpop.permute.xlu1 %1844 }
 0x14b   : > { %v1840_v40 = vpop.permute.xlu0 %1839 }
 0x152   : > { %v4306_v49 = vpop.permute.xlu2 %1864 }
 0x154   : > { %2274 = vmatmul.msk.bf16.gmra.mxu1 %vm1723_vm12, %v2291_v48  ;;  %2277 = vmatmul.msk.bf16.gmra.mxu2 %vm1723_vm12, %v2294_v33  ;;  %v2426_v33 = vld [vmem:[%s2658_s28 + $0x20] sm:$0xff] }
 0x15a   : > { %v1912_v53 = vpop.permute.xlu2 %1911 }
 0x15b   : > { %v4302_v1 = vpop.permute.xlu1 %1859 }
 0x162   : > { %v4304_v6 = vpop.permute.xlu0 %1854  ;;  %v1927_v52 = vpop.permute.xlu2 %1926 }
 0x164   : > { %2278 = vmatmul.msk.bf16.gmra.mxu2 %vm1723_vm12, %v2295_v16 }
 0x16a   : > { %v4316_v38 = vpop.permute.xlu2 %1941 }
 0x171   : > { %v4308_v10 = vpop.permute.xlu1 %1874 }
 0x172   : > { %v1957_v48 = vpop.permute.xlu2 %1956 }
 0x178   : > { %v4310_v58 = vpop.permute.xlu0 %1869 }
 0x179   : > { %v1922_v4 = vpop.permute.xlu1 %1921 }
 0x180   : > { %v1917_v30 = vpop.permute.xlu0 %1916 }
 0x181   : > { %v4312_v18 = vpop.permute.xlu1 %1936 }
 0x188   : > { %v1932_v32 = vpop.permute.xlu0 %1931 }
 0x189   : > { %v1952_v7 = vpop.permute.xlu1 %1951 }
 0x190   : > { %v1947_v17 = vpop.permute.xlu0 %1946 }
 0x1b0   : > { %v1757_v39 = vpop.f32.mrf.mxu0 }
 0x1b1   : > { %v1762_v63 = vpop.f32.mrf.mxu1  ;;  %v1877_v19 = vmul.f32 %v1800_v13, %v1757_v39  ;;  %v2428_v39 = vld [vmem:[%s2658_s28 + $0x28] sm:$0xff] }
 0x1b2   : > { %v1879_v35 = vmul.f32 %v1810_v26, %v1762_v63 }
 0x1b3   : > { %v1893_v57 = vadd.f32 %v2420_v12, %v1877_v19 }
 0x1b4   : > { %v1895_v9 = vadd.f32 %v2421_v20, %v1879_v35 }
 0x1b5   : > { %v1989_v61 = vadd.f32 %v1912_v53, %v1893_v57 }
 0x1b6   : > { %v1991_v14 = vadd.f32 %v1922_v4, %v1895_v9  ;;  %v2427_v4 = vld [vmem:[%s2658_s28 + $0x50] sm:$0xff] }
 0x1b7   : > { %v2005_v3 = vmax.f32 %v1989_v61, 0.0  ;;  %v1777_v60 = vpop.f32.mrf.mxu2  ;;  %v2429_v61 = vld [vmem:[%s2658_s28 + $0x58] sm:$0xff] }
 0x1b8   : > { %v2007_v27 = vmax.f32 %v1991_v14, 0.0  ;;  %v1885_v59 = vmul.f32 %v1840_v40, %v1777_v60  ;;  %v1759_v41 = vpop.f32.mrf.mxu0 }
 0x1b9   : > { %v1764_v36 = vpop.f32.mrf.mxu1  ;;  %2021 = vst [vmem:[%s4319_s26] sm:$0xff] %v2005_v3  ;;  %v1878_v8 = vmul.f32 %v1805_v22, %v1759_v41  ;;  %v2430_v3 = vld [vmem:[%s2658_s28 + $0x30] sm:$0xff] }
 0x1ba   : > { %v1880_v47 = vmul.f32 %v1815_v34, %v1764_v36  ;;  %2023 = vst [vmem:[%s4319_s26 + $0x10] sm:$0xff] %v2007_v27  ;;  %v1901_v21 = vadd.f32 %v2422_v25, %v1885_v59 }
 0x1bb   : > { %v1894_v51 = vadd.f32 %v2423_v5, %v1878_v8 }
 0x1bc   : > { %v1896_v45 = vadd.f32 %v2424_v62, %v1880_v47  ;;  %v1997_v37 = vadd.f32 %v1952_v7, %v1901_v21  ;;  %v2431_v47 = vld [vmem:[%s2658_s28 + $0x60] sm:$0xff]  ;;  %v1972_v21 = vpop.permute.xlu2 %1971  ;;  %v2432_v7 = vld [vmem:[%s2658_s28 + $0x38] sm:$0xff] }
 0x1bd   : > { %v1990_v29 = vadd.f32 %v1917_v30, %v1894_v51 }
 0x1be   : > { %v1992_v2 = vadd.f32 %v1927_v52, %v1896_v45  ;;  %v2013_v46 = vmax.f32 %v1997_v37, 0.0  ;;  %v1962_v52 = vpop.permute.xlu0 %1961 }
 0x1bf   : > { %v2006_v55 = vmax.f32 %v1990_v29, 0.0  ;;  %v1779_v50 = vpop.f32.mrf.mxu2  ;;  %v2433_v29 = vld [vmem:[%s2658_s28 + $0x68] sm:$0xff] }
 0x1c0   : > { %v2008_v44 = vmax.f32 %v1992_v2, 0.0  ;;  %2029 = vst [vmem:[%s4319_s26 + $0x40] sm:$0xff] %v2013_v46  ;;  %v1886_v28 = vmul.f32 %v1845_v31, %v1779_v50 }
 0x1c1   : > { %v1767_v56 = vpop.f32.mrf.mxu1  ;;  %2022 = vst [vmem:[%s4319_s26 + $0x8] sm:$0xff] %v2006_v55 }
 0x1c2   : > { %v1881_v15 = vmul.f32 %v1820_v24, %v1767_v56  ;;  %2024 = vst [vmem:[%s4319_s26 + $0x18] sm:$0xff] %v2008_v44  ;;  %v1902_v43 = vadd.f32 %v2425_v54, %v1886_v28  ;;  %v2434_v28 = vld [vmem:[%s2658_s28 + $0x70] sm:$0xff] }
 0x1c4   : > { %v1897_v16 = vadd.f32 %v2426_v33, %v1881_v15  ;;  %v1998_v13 = vadd.f32 %v1957_v48, %v1902_v43  ;;  %v2435_v48 = vld [vmem:[%s2658_s28 + $0x78] sm:$0xff]  ;;  %s2045_s28 = sadd.s32 (%p2591_p6), %s2474_s11, %s2280_s29 }
 0x1c5   : > { %s2281_s27 = sshll.u32 (%p2591_p6), %s2045_s28, 3 }
 0x1c6   : > { %v1993_v22 = vadd.f32 %v1932_v32, %v1897_v16  ;;  %v2014_v34 = vmax.f32 %v1998_v13, 0.0  ;;  %v1967_v32 = vpop.permute.xlu1 %1966  ;;  %v1977_v2 = vpop.permute.xlu0 %1976  ;;  %s2047_s20 = scalar_lea.vmem (%p2591_p6), %s4415_s9, %s2281_s27 }
 0x1c7   : > { %v1782_v40 = vpop.f32.mrf.mxu2  ;;  %v1987_v16 = vpop.permute.xlu2 %1986 }
 0x1c8   : > { %v2009_v26 = vmax.f32 %v1993_v22, 0.0  ;;  %2030 = vst [vmem:[%s4319_s26 + $0x48] sm:$0xff] %v2014_v34  ;;  %v1887_v31 = vmul.f32 %v4300_v42, %v1782_v40  ;;  %v2110_v34 = vld [vmem:[%s4319_s26 + $0x10] sm:$0xff] (%p2591_p6) }
 0x1c9   : > { %v1769_v53 = vpop.f32.mrf.mxu1  ;;  %2111 = vst [vmem:[%s2047_s20 + $0x20] sm:$0xff] (%p2591_p6), %v2110_v34 }
 0x1ca   : > { %2025 = vst [vmem:[%s4319_s26 + $0x20] sm:$0xff] %v2009_v26  ;;  %v1882_v24 = vmul.f32 %v4296_v11, %v1769_v53  ;;  %v1903_v30 = vadd.f32 %v2427_v4, %v1887_v31  ;;  %v2112_v26 = vld [vmem:[%s4319_s26 + $0x18] sm:$0xff] (%p2591_p6)  ;;  %v2122_v4 = vld [vmem:[%s4319_s26 + $0x40] sm:$0xff] (%p2591_p6) }
 0x1cb   : > { %2113 = vst [vmem:[%s2047_s20 + $0x30] sm:$0xff] (%p2591_p6), %v2112_v26 }
 0x1cc   : > { %v1898_v63 = vadd.f32 %v2428_v39, %v1882_v24  ;;  %v1999_v19 = vadd.f32 %v1962_v52, %v1903_v30  ;;  %2123 = vst [vmem:[%s2047_s20 + $0x80] sm:$0xff] (%p2591_p6), %v2122_v4 }
 0x1ce   : > { %v1994_v35 = vadd.f32 %v4312_v18, %v1898_v63  ;;  %v2015_v12 = vmax.f32 %v1999_v19, 0.0 }
 0x1cf   : > { %v1784_v20 = vpop.f32.mrf.mxu2  ;;  %v2124_v30 = vld [vmem:[%s4319_s26 + $0x48] sm:$0xff] (%p2591_p6) }
 0x1d0   : > { %v2010_v57 = vmax.f32 %v1994_v35, 0.0  ;;  %2031 = vst [vmem:[%s4319_s26 + $0x50] sm:$0xff] %v2015_v12  ;;  %v1888_v42 = vmul.f32 %v4304_v6, %v1784_v20 }
 0x1d1   : > { %v1772_v9 = vpop.f32.mrf.mxu1  ;;  %v2114_v40 = vld [vmem:[%s4319_s26 + $0x20] sm:$0xff] (%p2591_p6)  ;;  %2125 = vst [vmem:[%s2047_s20 + $0x90] sm:$0xff] (%p2591_p6), %v2124_v30 }
 0x1d2   : > { %2026 = vst [vmem:[%s4319_s26 + $0x28] sm:$0xff] %v2010_v57  ;;  %v1883_v11 = vmul.f32 %v4294_v23, %v1772_v9  ;;  %v1904_v14 = vadd.f32 %v2429_v61, %v1888_v42 }
 0x1d3   : > { %2115 = vst [vmem:[%s2047_s20 + $0x40] sm:$0xff] (%p2591_p6), %v2114_v40 }
 0x1d4   : > { %v1899_v27 = vadd.f32 %v2430_v3, %v1883_v11  ;;  %v2000_v18 = vadd.f32 %v1967_v32, %v1904_v14 }
 0x1d6   : > { %v1995_v60 = vadd.f32 %v4316_v38, %v1899_v27  ;;  %v2016_v59 = vmax.f32 %v2000_v18, 0.0 }
 0x1d7   : > { %v1787_v36 = vpop.f32.mrf.mxu2  ;;  %v2126_v52 = vld [vmem:[%s4319_s26 + $0x50] sm:$0xff] (%p2591_p6) }
 0x1d8   : > { %v2011_v41 = vmax.f32 %v1995_v60, 0.0  ;;  %2032 = vst [vmem:[%s4319_s26 + $0x58] sm:$0xff] %v2016_v59  ;;  %v1889_v6 = vmul.f32 %v4302_v1, %v1787_v36 }
 0x1d9   : > { %v1774_v8 = vpop.f32.mrf.mxu1  ;;  %v2116_v31 = vld [vmem:[%s4319_s26 + $0x28] sm:$0xff] (%p2591_p6)  ;;  %2127 = vst [vmem:[%s2047_s20 + $0xa0] sm:$0xff] (%p2591_p6), %v2126_v52 }
 0x1da   : > { %2027 = vst [vmem:[%s4319_s26 + $0x30] sm:$0xff] %v2011_v41  ;;  %v1884_v23 = vmul.f32 %v4298_v0, %v1774_v8  ;;  %v1905_v25 = vadd.f32 %v2431_v47, %v1889_v6 }
 0x1db   : > { %2117 = vst [vmem:[%s2047_s20 + $0x50] sm:$0xff] (%p2591_p6), %v2116_v31 }
 0x1dc   : > { %v1900_v5 = vadd.f32 %v2432_v7, %v1884_v23  ;;  %v2001_v38 = vadd.f32 %v1972_v21, %v1905_v25 }
 0x1de   : > { %v1996_v51 = vadd.f32 %v1947_v17, %v1900_v5  ;;  %v2017_v62 = vmax.f32 %v2001_v38, 0.0  ;;  %v1982_v17 = vpop.permute.xlu1 %1981 }
 0x1df   : > { %v1789_v37 = vpop.f32.mrf.mxu2  ;;  %v2128_v39 = vld [vmem:[%s4319_s26 + $0x58] sm:$0xff] (%p2591_p6) }
 0x1e0   : > { %v2012_v45 = vmax.f32 %v1996_v51, 0.0  ;;  %2033 = vst [vmem:[%s4319_s26 + $0x60] sm:$0xff] %v2017_v62  ;;  %v1890_v1 = vmul.f32 %v4306_v49, %v1789_v37 }
 0x1e1   : > { %v2118_v53 = vld [vmem:[%s4319_s26 + $0x30] sm:$0xff] (%p2591_p6)  ;;  %2129 = vst [vmem:[%s2047_s20 + $0xb0] sm:$0xff] (%p2591_p6), %v2128_v39 }
 0x1e2   : > { %2028 = vst [vmem:[%s4319_s26 + $0x38] sm:$0xff] %v2012_v45  ;;  %v1906_v0 = vadd.f32 %v2433_v29, %v1890_v1 }
 0x1e3   : > { %2119 = vst [vmem:[%s2047_s20 + $0x60] sm:$0xff] (%p2591_p6), %v2118_v53 }
 0x1e4   : > { %v2002_v46 = vadd.f32 %v1977_v2, %v1906_v0 }
 0x1e6   : > { %v2018_v55 = vmax.f32 %v2002_v46, 0.0 }
 0x1e7   : > { %v1792_v44 = vpop.f32.mrf.mxu2  ;;  %v2130_v63 = vld [vmem:[%s4319_s26 + $0x60] sm:$0xff] (%p2591_p6) }
 0x1e8   : > { %2034 = vst [vmem:[%s4319_s26 + $0x68] sm:$0xff] %v2018_v55  ;;  %v1891_v50 = vmul.f32 %v4310_v58, %v1792_v44  ;;  %v2108_v58 = vld [vmem:[%s4319_s26 + $0x8] sm:$0xff] (%p2591_p6) }
 0x1e9   : > { %2109 = vst [vmem:[%s2047_s20 + $0x10] sm:$0xff] (%p2591_p6), %v2108_v58  ;;  %v2120_v24 = vld [vmem:[%s4319_s26 + $0x38] sm:$0xff] (%p2591_p6) }
 0x1ea   : > { %v1907_v56 = vadd.f32 %v2434_v28, %v1891_v50  ;;  %2121 = vst [vmem:[%s2047_s20 + $0x70] sm:$0xff] (%p2591_p6), %v2120_v24 }
 0x1eb   : > { %2131 = vst [vmem:[%s2047_s20 + $0xc0] sm:$0xff] (%p2591_p6), %v2130_v63 }
 0x1ec   : > { %v2003_v15 = vadd.f32 %v1982_v17, %v1907_v56 }
 0x1ee   : > { %v2019_v54 = vmax.f32 %v2003_v15, 0.0 }
 0x1ef   : > { %v1794_v43 = vpop.f32.mrf.mxu2  ;;  %v2132_v19 = vld [vmem:[%s4319_s26 + $0x68] sm:$0xff] (%p2591_p6) }
 0x1f0   : > { %2035 = vst [vmem:[%s4319_s26 + $0x70] sm:$0xff] %v2019_v54  ;;  %v1892_v49 = vmul.f32 %v4308_v10, %v1794_v43  ;;  %v2106_v10 = vld [vmem:[%s4319_s26] sm:$0xff] (%p2591_p6) }
 0x1f1   : > { %2107 = vst [vmem:[%s2047_s20] sm:$0xff] (%p2591_p6), %v2106_v10 }
 0x1f2   : > { %v1908_v33 = vadd.f32 %v2435_v48, %v1892_v49  ;;  %2133 = vst [vmem:[%s2047_s20 + $0xd0] sm:$0xff] (%p2591_p6), %v2132_v19 }
 0x1f4   : > { %v2004_v13 = vadd.f32 %v1987_v16, %v1908_v33  ;;  %2043 = sbr.rel (!%p2591_p6) target bundleno = 513 (0x201), region = 98 }
 0x1f6   : > { %v2020_v22 = vmax.f32 %v2004_v13, 0.0 }
 0x1f7   : > { %v2134_v35 = vld [vmem:[%s4319_s26 + $0x70] sm:$0xff] (%p2591_p6) }
 0x1f8   : > { %2036 = vst [vmem:[%s4319_s26 + $0x78] sm:$0xff] %v2020_v22 }
 0x1f9   : > { %2135 = vst [vmem:[%s2047_s20 + $0xe0] sm:$0xff] %v2134_v35 }
 0x1ff   : > { %v2136_v12 = vld [vmem:[%s4319_s26 + $0x78] sm:$0xff] }
 0x200   : > { %2137 = vst [vmem:[%s2047_s20 + $0xf0] sm:$0xff] %v2136_v12 }
 0x201 PF: > { %s19_s15 = sadd.s32 1, %s2490_s15   ;;  %s4459_s21 = sld [smem:[#allocation4_spill]] }
 0x202   : > { %p16_p12 = scmp.ge.s32.totalorder %s19_s15, 6   ;;  %s4460_s30 = smov %s2470_s10 }
 0x203   : > { %s4461_s10 = smov %s2599_s24  ;;  %s4462_s11 = smov %s2482_s13 }
 0x204   : > { %s4463_s12 = smov %s2486_s14  ;;  %s4465_s14 = smov %s4471_s17 }
 0x205   :  { %18 = sbr.rel (!%p16_p12) target bundleno = 4 (0x4), region = 167 }
 0x207   : > { %s4464_s13 = smov %s4459_s21 }

</bundles_post_ra>
